<compile_context>
chip_gen: v7x
topology: tpu7x:2x2x1
jax: 0.10.0
libtpu: 0.0.40
codegen_flags: <defaults>
</compile_context>

<pallas_src>
import math
from functools import partial

import jax
import jax.numpy as jnp
from jax.experimental import pallas as pl
from jax.experimental.pallas import tpu as pltpu

# ---- bert-tiny-like configuration (synthetic, deterministic weights) --------
HIDDEN = 128
N_HEADS = 2
HEAD_DIM = HIDDEN // N_HEADS
INTERMEDIATE = 512
N_LAYERS = 2
VOCAB = 1000            # synthetic vocab (last 3 ids = <Sound>, <Rel>, <Attr>)
MAX_POS = 64
EPS = 1e-12
NEG_INF = float(jnp.finfo(jnp.float32).min)   # HF "extended attention mask" value

SOUND_ID = VOCAB - 3
REL_ID = VOCAB - 2
ATTR_ID = VOCAB - 1

ATTN_SCALE = 1.0 / math.sqrt(HEAD_DIM)


# ----------------------------- in-kernel helpers -----------------------------
def _layernorm(x, gamma, beta):
    mu = jnp.mean(x, axis=-1, keepdims=True)
    var = jnp.mean((x - mu) ** 2, axis=-1, keepdims=True)
    return (x - mu) * jax.lax.rsqrt(var + EPS) * gamma + beta


def _gelu(x):
    # TODO(synk): HF BERT uses exact erf-GELU; tanh approximation is used here
    # for robust Mosaic lowering (numerically very close).
    return 0.5 * x * (1.0 + jnp.tanh(0.7978845608028654 * (x + 0.044715 * x * x * x)))


# --------------------------------- kernel ------------------------------------
def _encoder_kernel(B, S_pad,
                    emb_ref, mask_ref, eg_ref, eb_ref,
                    wqkv_ref, bqkv_ref, wo_ref, bo_ref,
                    g1_ref, be1_ref, w1_ref, b1_ref,
                    w2_ref, b2_ref, g2_ref, be2_ref,
                    o_ref, ctx_ref):
    # Embedding LayerNorm (f32), activations stay flattened as (B*S_pad, H).
    x = _layernorm(emb_ref[...], eg_ref[...], eb_ref[...])

    for l in range(N_LAYERS):                               # static unroll
        # Fused QKV projection: one (B*S_pad, H) @ (H, 3H) bf16 MXU matmul.
        qkv = jnp.dot(x.astype(jnp.bfloat16), wqkv_ref[l],
                      preferred_element_type=jnp.float32) + bqkv_ref[l]
        q = qkv[:, 0 * HIDDEN:1 * HIDDEN]
        k = qkv[:, 1 * HIDDEN:2 * HIDDEN]
        v = qkv[:, 2 * HIDDEN:3 * HIDDEN]

        # Attention: static loops over batch / heads; each head's context is
        # stored directly into the (B*S_pad, H) VMEM scratch slab (no concat).
        for b in range(B):
            r0 = b * S_pad
            mb = mask_ref[b]                                # (1, S_pad) additive bias
            for h in range(N_HEADS):
                c0 = h * HEAD_DIM
                qh = q[r0:r0 + S_pad, c0:c0 + HEAD_DIM].astype(jnp.bfloat16)
                kh = k[r0:r0 + S_pad, c0:c0 + HEAD_DIM].astype(jnp.bfloat16)
                vh = v[r0:r0 + S_pad, c0:c0 + HEAD_DIM].astype(jnp.bfloat16)
                s = jax.lax.dot_general(
                    qh, kh, (((1,), (1,)), ((), ())),
                    preferred_element_type=jnp.float32) * ATTN_SCALE + mb
                # Softmax in f32.  With the HF finfo.min additive mask even a
                # fully-masked query row stays finite (no NaN guard needed).
                s = s - jnp.max(s, axis=-1, keepdims=True)
                p = jnp.exp(s)
                p = p * pl.reciprocal(jnp.sum(p, axis=-1, keepdims=True),
                                      approx=True)
                ctx_ref[r0:r0 + S_pad, c0:c0 + HEAD_DIM] = jnp.dot(
                    p.astype(jnp.bfloat16), vh,
                    preferred_element_type=jnp.float32)

        ctx = ctx_ref[...]                                  # (B*S_pad, H) f32
        attn_out = jnp.dot(ctx.astype(jnp.bfloat16), wo_ref[l],
                           preferred_element_type=jnp.float32) + bo_ref[l]
        h1 = _layernorm(x + attn_out, g1_ref[l], be1_ref[l])

        ff = _gelu(jnp.dot(h1.astype(jnp.bfloat16), w1_ref[l],
                           preferred_element_type=jnp.float32) + b1_ref[l])
        ff = jnp.dot(ff.astype(jnp.bfloat16), w2_ref[l],
                     preferred_element_type=jnp.float32) + b2_ref[l]
        x = _layernorm(h1 + ff, g2_ref[l], be2_ref[l])

    o_ref[...] = x


# ------------------------------ kernel wrapper --------------------------------
def run_encoder(emb_flat, mask_bias, params, B, S_pad):
    BS = B * S_pad
    kernel = partial(_encoder_kernel, B, S_pad)
    # No grid: a single kernel invocation, every operand fully VMEM-resident.
    return pl.pallas_call(
        kernel,
        out_shape=jax.ShapeDtypeStruct((BS, HIDDEN), jnp.float32),
        scratch_shapes=[pltpu.VMEM((BS, HIDDEN), jnp.float32)],
    )(emb_flat, mask_bias,
      params["emb_ln_g"], params["emb_ln_b"],
      params["wqkv"], params["bqkv"], params["wo"], params["bo"],
      params["ln1_g"], params["ln1_b"], params["w1"], params["b1"],
      params["w2"], params["b2"], params["ln2_g"], params["ln2_b"])


# --------------------------- parameters & forward ----------------------------
def make_params(key):
    def nrm(k, shape):
        return 0.02 * jax.random.normal(k, shape, jnp.float32)

    keys = jax.random.split(key, 3 + 6 * N_LAYERS)
    params = {
        "word_emb": nrm(keys[0], (VOCAB, HIDDEN)),
        "pos_emb": nrm(keys[1], (MAX_POS, HIDDEN)),
        "type_emb": nrm(keys[2], (2, HIDDEN)),
        "emb_ln_g": jnp.ones((1, HIDDEN), jnp.float32),
        "emb_ln_b": jnp.zeros((1, HIDDEN), jnp.float32),
    }
    wqkv, wo, w1, w2 = [], [], [], []
    for l in range(N_LAYERS):
        kq, kk, kv, ko, k1, k2 = keys[3 + 6 * l: 3 + 6 * (l + 1)]
        wqkv.append(jnp.concatenate(
            [nrm(kq, (HIDDEN, HIDDEN)), nrm(kk, (HIDDEN, HIDDEN)),
             nrm(kv, (HIDDEN, HIDDEN))], axis=1))
        wo.append(nrm(ko, (HIDDEN, HIDDEN)))
        w1.append(nrm(k1, (HIDDEN, INTERMEDIATE)))
        w2.append(nrm(k2, (INTERMEDIATE, HIDDEN)))
    # Matmul weights stacked over layers and stored in bf16 (MXU-native, halves
    # VMEM/DMA bytes); biases and LayerNorm params stay f32.
    params.update({
        "wqkv": jnp.stack(wqkv).astype(jnp.bfloat16),
        "bqkv": jnp.zeros((N_LAYERS, 1, 3 * HIDDEN), jnp.float32),
        "wo": jnp.stack(wo).astype(jnp.bfloat16),
        "bo": jnp.zeros((N_LAYERS, 1, HIDDEN), jnp.float32),
        "ln1_g": jnp.ones((N_LAYERS, 1, HIDDEN), jnp.float32),
        "ln1_b": jnp.zeros((N_LAYERS, 1, HIDDEN), jnp.float32),
        "w1": jnp.stack(w1).astype(jnp.bfloat16),
        "b1": jnp.zeros((N_LAYERS, 1, INTERMEDIATE), jnp.float32),
        "w2": jnp.stack(w2).astype(jnp.bfloat16),
        "b2": jnp.zeros((N_LAYERS, 1, HIDDEN), jnp.float32),
        "ln2_g": jnp.ones((N_LAYERS, 1, HIDDEN), jnp.float32),
        "ln2_b": jnp.zeros((N_LAYERS, 1, HIDDEN), jnp.float32),
    })
    return params


def node_aug_text_encoder_forward(text_ids, text_mask, params):
    """text_ids: (B, L) int32 token ids (tokenizer output); text_mask: (B, L)."""
    # TODO(synk): the HuggingFace tokenizer (string -> ids, padding='longest',
    # truncation, max_length=30) has no Pallas equivalent; ids are taken as input.
    B, L = text_ids.shape
    special = jnp.tile(jnp.array([[SOUND_ID, REL_ID, ATTR_ID]], jnp.int32), (B, 1))
    input_ids = jnp.concatenate([special, text_ids.astype(jnp.int32)], axis=1)
    attention_mask = jnp.concatenate(
        [jnp.zeros((B, 3), jnp.float32), text_mask.astype(jnp.float32)], axis=1)
    S = input_ids.shape[1]
    assert S <= MAX_POS, f"sequence length {S} exceeds MAX_POS={MAX_POS}"

    # Pad the sequence to a multiple of 8 for clean (8,128) tiles; padded
    # positions carry attention mask 0 so they never influence real tokens.
    S_pad = ((S + 7) // 8) * 8
    pad = S_pad - S
    input_ids_p = jnp.pad(input_ids, ((0, 0), (0, pad)))        # pad id 0
    mask_p = jnp.pad(attention_mask, ((0, 0), (0, pad)))        # pad mask 0

    # Embedding gathers + sum are plain-JAX glue; LayerNorm onwards runs inside
    # the single fused Pallas kernel.
    emb = (params["word_emb"][input_ids_p]
           + params["pos_emb"][None, :S_pad, :]
           + params["type_emb"][0][None, None, :])
    emb_flat = emb.reshape(B * S_pad, HIDDEN)

    # HF BERT extended attention mask: (1 - mask) * finfo.min, broadcast over
    # heads and query positions inside the kernel.
    mask_bias = ((1.0 - mask_p) * NEG_INF).reshape(B, 1, S_pad)

    out = run_encoder(emb_flat, mask_bias, params, B, S_pad)
    return out.reshape(B, S_pad, HIDDEN)[:, :S, :]   # last hidden state (B, 3+L, H)


# ----------------------------------- main -------------------------------------
if __name__ == "__main__":
    key = jax.random.PRNGKey(0)
    k_param, k_ids = jax.random.split(key)

    B, L = 2, 8                                   # batch, tokenized text length
    params = make_params(k_param)

    # Simulated tokenizer output (ids + attention mask, with padding on row 1).
    text_ids = jax.random.randint(k_ids, (B, L), 1, VOCAB - 3, dtype=jnp.int32)
    text_mask = jnp.ones((B, L), jnp.float32)
    text_ids = text_ids.at[1, -2:].set(0)         # pad token id
    text_mask = text_mask.at[1, -2:].set(0.0)     # padded positions masked out

    out = node_aug_text_encoder_forward(text_ids, text_mask, params)
    out = jax.block_until_ready(out)

    assert out.shape == (B, 3 + L, HIDDEN), out.shape
    assert bool(jnp.all(jnp.isfinite(out)))
    print("KERNEL_OK")
</pallas_src>

<mosaic_0001>
module attributes {stable_mosaic.version = 11 : i64} {
  func.func @_encoder_kernel(%arg0: memref<32x128xf32, #tpu.memory_space<vmem>>, %arg1: memref<2x1x16xf32, #tpu.memory_space<vmem>>, %arg2: memref<1x128xf32, #tpu.memory_space<vmem>>, %arg3: memref<1x128xf32, #tpu.memory_space<vmem>>, %arg4: memref<2x128x384xbf16, #tpu.memory_space<vmem>>, %arg5: memref<2x1x384xf32, #tpu.memory_space<vmem>>, %arg6: memref<2x128x128xbf16, #tpu.memory_space<vmem>>, %arg7: memref<2x1x128xf32, #tpu.memory_space<vmem>>, %arg8: memref<2x1x128xf32, #tpu.memory_space<vmem>>, %arg9: memref<2x1x128xf32, #tpu.memory_space<vmem>>, %arg10: memref<2x128x512xbf16, #tpu.memory_space<vmem>>, %arg11: memref<2x1x512xf32, #tpu.memory_space<vmem>>, %arg12: memref<2x512x128xbf16, #tpu.memory_space<vmem>>, %arg13: memref<2x1x128xf32, #tpu.memory_space<vmem>>, %arg14: memref<2x1x128xf32, #tpu.memory_space<vmem>>, %arg15: memref<2x1x128xf32, #tpu.memory_space<vmem>>, %arg16: memref<32x128xf32, #tpu.memory_space<vmem>>, %arg17: memref<32x128xf32, #tpu.memory_space<vmem>>) attributes {dimension_semantics = [], scalar_prefetch = 0 : i64, scratch_operands = 1 : i64, tpu.core_type = #tpu.core_type<tc>} {
    %c0 = arith.constant 0 : index
    %c0_0 = arith.constant 0 : index
    %0 = vector.load %arg0[%c0, %c0_0] : memref<32x128xf32, #tpu.memory_space<vmem>>, vector<32x128xf32>
    %c0_1 = arith.constant 0 : index
    %c0_2 = arith.constant 0 : index
    %1 = vector.load %arg2[%c0_1, %c0_2] : memref<1x128xf32, #tpu.memory_space<vmem>>, vector<1x128xf32>
    %c0_3 = arith.constant 0 : index
    %c0_4 = arith.constant 0 : index
    %2 = vector.load %arg3[%c0_3, %c0_4] : memref<1x128xf32, #tpu.memory_space<vmem>>, vector<1x128xf32>
    %cst = arith.constant dense<0.000000e+00> : vector<32xf32>
    %3 = vector.multi_reduction <add>, %0, %cst [1] : vector<32x128xf32> to vector<32xf32>
    %4 = vector.shape_cast %3 : vector<32xf32> to vector<32x1xf32>
    %cst_5 = arith.constant 1.280000e+02 : f32
    %5 = vector.broadcast %cst_5 : f32 to vector<32x1xf32>
    %6 = arith.divf %4, %5 : vector<32x1xf32>
    %7 = vector.broadcast %6 : vector<32x1xf32> to vector<32x128xf32>
    %8 = arith.subf %0, %7 : vector<32x128xf32>
    %9 = arith.mulf %8, %8 : vector<32x128xf32>
    %cst_6 = arith.constant dense<0.000000e+00> : vector<32xf32>
    %10 = vector.multi_reduction <add>, %9, %cst_6 [1] : vector<32x128xf32> to vector<32xf32>
    %11 = vector.shape_cast %10 : vector<32xf32> to vector<32x1xf32>
    %cst_7 = arith.constant 1.280000e+02 : f32
    %12 = vector.broadcast %cst_7 : f32 to vector<32x1xf32>
    %13 = arith.divf %11, %12 : vector<32x1xf32>
    %14 = vector.broadcast %6 : vector<32x1xf32> to vector<32x128xf32>
    %15 = arith.subf %0, %14 : vector<32x128xf32>
    %cst_8 = arith.constant 9.99999996E-13 : f32
    %16 = vector.broadcast %cst_8 : f32 to vector<32x1xf32>
    %17 = arith.addf %13, %16 : vector<32x1xf32>
    %18 = math.rsqrt %17 : vector<32x1xf32>
    %19 = vector.broadcast %18 : vector<32x1xf32> to vector<32x128xf32>
    %20 = arith.mulf %15, %19 : vector<32x128xf32>
    %21 = vector.broadcast %1 : vector<1x128xf32> to vector<32x128xf32>
    %22 = arith.mulf %20, %21 : vector<32x128xf32>
    %23 = vector.broadcast %2 : vector<1x128xf32> to vector<32x128xf32>
    %24 = arith.addf %22, %23 : vector<32x128xf32>
    %25 = arith.truncf %24 : vector<32x128xf32> to vector<32x128xbf16>
    %c0_9 = arith.constant 0 : index
    %c0_10 = arith.constant 0 : index
    %c0_11 = arith.constant 0 : index
    %26 = vector.load %arg4[%c0_9, %c0_10, %c0_11] : memref<2x128x384xbf16, #tpu.memory_space<vmem>>, vector<1x128x384xbf16>
    %27 = vector.shape_cast %26 : vector<1x128x384xbf16> to vector<128x384xbf16>
    %cst_12 = arith.constant dense<0.000000e+00> : vector<32x384xf32>
    %28 = tpu.matmul %25, %27, %cst_12 {dimension_numbers = #tpu.dot_dimension_numbers<[1], [0], [0], [1], [0, 0, 1, 1], [], []>} : vector<32x128xbf16>, vector<128x384xbf16>, vector<32x384xf32> -> vector<32x384xf32>
    %c0_13 = arith.constant 0 : index
    %c0_14 = arith.constant 0 : index
    %c0_15 = arith.constant 0 : index
    %29 = vector.load %arg5[%c0_13, %c0_14, %c0_15] : memref<2x1x384xf32, #tpu.memory_space<vmem>>, vector<1x1x384xf32>
    %30 = vector.shape_cast %29 : vector<1x1x384xf32> to vector<1x384xf32>
    %31 = vector.broadcast %30 : vector<1x384xf32> to vector<32x384xf32>
    %32 = arith.addf %28, %31 : vector<32x384xf32>
    %33 = vector.extract_strided_slice %32 {offsets = [0, 0], sizes = [32, 128], strides = [1, 1]} : vector<32x384xf32> to vector<32x128xf32>
    %34 = vector.extract_strided_slice %32 {offsets = [0, 128], sizes = [32, 128], strides = [1, 1]} : vector<32x384xf32> to vector<32x128xf32>
    %35 = vector.extract_strided_slice %32 {offsets = [0, 256], sizes = [32, 128], strides = [1, 1]} : vector<32x384xf32> to vector<32x128xf32>
    %c0_16 = arith.constant 0 : index
    %c0_17 = arith.constant 0 : index
    %c0_18 = arith.constant 0 : index
    %36 = vector.load %arg1[%c0_16, %c0_17, %c0_18] : memref<2x1x16xf32, #tpu.memory_space<vmem>>, vector<1x1x16xf32>
    %37 = vector.shape_cast %36 : vector<1x1x16xf32> to vector<1x16xf32>
    %38 = vector.extract_strided_slice %33 {offsets = [0, 0], sizes = [16, 64], strides = [1, 1]} : vector<32x128xf32> to vector<16x64xf32>
    %39 = arith.truncf %38 : vector<16x64xf32> to vector<16x64xbf16>
    %40 = vector.extract_strided_slice %34 {offsets = [0, 0], sizes = [16, 64], strides = [1, 1]} : vector<32x128xf32> to vector<16x64xf32>
    %41 = arith.truncf %40 : vector<16x64xf32> to vector<16x64xbf16>
    %42 = vector.extract_strided_slice %35 {offsets = [0, 0], sizes = [16, 64], strides = [1, 1]} : vector<32x128xf32> to vector<16x64xf32>
    %43 = arith.truncf %42 : vector<16x64xf32> to vector<16x64xbf16>
    %cst_19 = arith.constant dense<0.000000e+00> : vector<16x16xf32>
    %44 = tpu.matmul %39, %41, %cst_19 {dimension_numbers = #tpu.dot_dimension_numbers<[1], [1], [0], [0], [0, 0, 1, 0], [], []>} : vector<16x64xbf16>, vector<16x64xbf16>, vector<16x16xf32> -> vector<16x16xf32>
    %cst_20 = arith.constant 1.250000e-01 : f32
    %45 = vector.broadcast %cst_20 : f32 to vector<16x16xf32>
    %46 = arith.mulf %44, %45 : vector<16x16xf32>
    %47 = vector.broadcast %37 : vector<1x16xf32> to vector<16x16xf32>
    %48 = arith.addf %46, %47 : vector<16x16xf32>
    %cst_21 = arith.constant dense<0xFF800000> : vector<16xf32>
    %49 = vector.multi_reduction <maximumf>, %48, %cst_21 [1] : vector<16x16xf32> to vector<16xf32>
    %50 = vector.shape_cast %49 : vector<16xf32> to vector<16x1xf32>
    %51 = vector.broadcast %50 : vector<16x1xf32> to vector<16x16xf32>
    %52 = arith.subf %48, %51 : vector<16x16xf32>
    %53 = math.exp %52 : vector<16x16xf32>
    %cst_22 = arith.constant dense<0.000000e+00> : vector<16xf32>
    %54 = vector.multi_reduction <add>, %53, %cst_22 [1] : vector<16x16xf32> to vector<16xf32>
    %55 = vector.shape_cast %54 : vector<16xf32> to vector<16x1xf32>
    %56 = tpu.reciprocal %55 {approx = true} : vector<16x1xf32> -> vector<16x1xf32>
    %57 = vector.broadcast %56 : vector<16x1xf32> to vector<16x16xf32>
    %58 = arith.mulf %53, %57 : vector<16x16xf32>
    %59 = arith.truncf %58 : vector<16x16xf32> to vector<16x16xbf16>
    %cst_23 = arith.constant dense<0.000000e+00> : vector<16x64xf32>
    %60 = tpu.matmul %59, %43, %cst_23 {dimension_numbers = #tpu.dot_dimension_numbers<[1], [0], [0], [1], [0, 0, 1, 1], [], []>} : vector<16x16xbf16>, vector<16x64xbf16>, vector<16x64xf32> -> vector<16x64xf32>
    %c0_24 = arith.constant 0 : index
    %c0_25 = arith.constant 0 : index
    %61 = vector.load %arg17[%c0_24, %c0_25] : memref<32x128xf32, #tpu.memory_space<vmem>>, vector<16x64xf32>
    tpu.vector_store %arg17[%c0_24, %c0_25], %60 {strides = array<i32>} : memref<32x128xf32, #tpu.memory_space<vmem>>, vector<16x64xf32>,
    %62 = vector.extract_strided_slice %33 {offsets = [0, 64], sizes = [16, 64], strides = [1, 1]} : vector<32x128xf32> to vector<16x64xf32>
    %63 = arith.truncf %62 : vector<16x64xf32> to vector<16x64xbf16>
    %64 = vector.extract_strided_slice %34 {offsets = [0, 64], sizes = [16, 64], strides = [1, 1]} : vector<32x128xf32> to vector<16x64xf32>
    %65 = arith.truncf %64 : vector<16x64xf32> to vector<16x64xbf16>
    %66 = vector.extract_strided_slice %35 {offsets = [0, 64], sizes = [16, 64], strides = [1, 1]} : vector<32x128xf32> to vector<16x64xf32>
    %67 = arith.truncf %66 : vector<16x64xf32> to vector<16x64xbf16>
    %cst_26 = arith.constant dense<0.000000e+00> : vector<16x16xf32>
    %68 = tpu.matmul %63, %65, %cst_26 {dimension_numbers = #tpu.dot_dimension_numbers<[1], [1], [0], [0], [0, 0, 1, 0], [], []>} : vector<16x64xbf16>, vector<16x64xbf16>, vector<16x16xf32> -> vector<16x16xf32>
    %cst_27 = arith.constant 1.250000e-01 : f32
    %69 = vector.broadcast %cst_27 : f32 to vector<16x16xf32>
    %70 = arith.mulf %68, %69 : vector<16x16xf32>
    %71 = vector.broadcast %37 : vector<1x16xf32> to vector<16x16xf32>
    %72 = arith.addf %70, %71 : vector<16x16xf32>
    %cst_28 = arith.constant dense<0xFF800000> : vector<16xf32>
    %73 = vector.multi_reduction <maximumf>, %72, %cst_28 [1] : vector<16x16xf32> to vector<16xf32>
    %74 = vector.shape_cast %73 : vector<16xf32> to vector<16x1xf32>
    %75 = vector.broadcast %74 : vector<16x1xf32> to vector<16x16xf32>
    %76 = arith.subf %72, %75 : vector<16x16xf32>
    %77 = math.exp %76 : vector<16x16xf32>
    %cst_29 = arith.constant dense<0.000000e+00> : vector<16xf32>
    %78 = vector.multi_reduction <add>, %77, %cst_29 [1] : vector<16x16xf32> to vector<16xf32>
    %79 = vector.shape_cast %78 : vector<16xf32> to vector<16x1xf32>
    %80 = tpu.reciprocal %79 {approx = true} : vector<16x1xf32> -> vector<16x1xf32>
    %81 = vector.broadcast %80 : vector<16x1xf32> to vector<16x16xf32>
    %82 = arith.mulf %77, %81 : vector<16x16xf32>
    %83 = arith.truncf %82 : vector<16x16xf32> to vector<16x16xbf16>
    %cst_30 = arith.constant dense<0.000000e+00> : vector<16x64xf32>
    %84 = tpu.matmul %83, %67, %cst_30 {dimension_numbers = #tpu.dot_dimension_numbers<[1], [0], [0], [1], [0, 0, 1, 1], [], []>} : vector<16x16xbf16>, vector<16x64xbf16>, vector<16x64xf32> -> vector<16x64xf32>
    %c0_31 = arith.constant 0 : index
    %c64 = arith.constant 64 : index
    %85 = vector.load %arg17[%c0_31, %c64] : memref<32x128xf32, #tpu.memory_space<vmem>>, vector<16x64xf32>
    tpu.vector_store %arg17[%c0_31, %c64], %84 {strides = array<i32>} : memref<32x128xf32, #tpu.memory_space<vmem>>, vector<16x64xf32>,
    %c1 = arith.constant 1 : index
    %c0_32 = arith.constant 0 : index
    %c0_33 = arith.constant 0 : index
    %86 = vector.load %arg1[%c1, %c0_32, %c0_33] : memref<2x1x16xf32, #tpu.memory_space<vmem>>, vector<1x1x16xf32>
    %87 = vector.shape_cast %86 : vector<1x1x16xf32> to vector<1x16xf32>
    %88 = vector.extract_strided_slice %33 {offsets = [16, 0], sizes = [16, 64], strides = [1, 1]} : vector<32x128xf32> to vector<16x64xf32>
    %89 = arith.truncf %88 : vector<16x64xf32> to vector<16x64xbf16>
    %90 = vector.extract_strided_slice %34 {offsets = [16, 0], sizes = [16, 64], strides = [1, 1]} : vector<32x128xf32> to vector<16x64xf32>
    %91 = arith.truncf %90 : vector<16x64xf32> to vector<16x64xbf16>
    %92 = vector.extract_strided_slice %35 {offsets = [16, 0], sizes = [16, 64], strides = [1, 1]} : vector<32x128xf32> to vector<16x64xf32>
    %93 = arith.truncf %92 : vector<16x64xf32> to vector<16x64xbf16>
    %cst_34 = arith.constant dense<0.000000e+00> : vector<16x16xf32>
    %94 = tpu.matmul %89, %91, %cst_34 {dimension_numbers = #tpu.dot_dimension_numbers<[1], [1], [0], [0], [0, 0, 1, 0], [], []>} : vector<16x64xbf16>, vector<16x64xbf16>, vector<16x16xf32> -> vector<16x16xf32>
    %cst_35 = arith.constant 1.250000e-01 : f32
    %95 = vector.broadcast %cst_35 : f32 to vector<16x16xf32>
    %96 = arith.mulf %94, %95 : vector<16x16xf32>
    %97 = vector.broadcast %87 : vector<1x16xf32> to vector<16x16xf32>
    %98 = arith.addf %96, %97 : vector<16x16xf32>
    %cst_36 = arith.constant dense<0xFF800000> : vector<16xf32>
    %99 = vector.multi_reduction <maximumf>, %98, %cst_36 [1] : vector<16x16xf32> to vector<16xf32>
    %100 = vector.shape_cast %99 : vector<16xf32> to vector<16x1xf32>
    %101 = vector.broadcast %100 : vector<16x1xf32> to vector<16x16xf32>
    %102 = arith.subf %98, %101 : vector<16x16xf32>
    %103 = math.exp %102 : vector<16x16xf32>
    %cst_37 = arith.constant dense<0.000000e+00> : vector<16xf32>
    %104 = vector.multi_reduction <add>, %103, %cst_37 [1] : vector<16x16xf32> to vector<16xf32>
    %105 = vector.shape_cast %104 : vector<16xf32> to vector<16x1xf32>
    %106 = tpu.reciprocal %105 {approx = true} : vector<16x1xf32> -> vector<16x1xf32>
    %107 = vector.broadcast %106 : vector<16x1xf32> to vector<16x16xf32>
    %108 = arith.mulf %103, %107 : vector<16x16xf32>
    %109 = arith.truncf %108 : vector<16x16xf32> to vector<16x16xbf16>
    %cst_38 = arith.constant dense<0.000000e+00> : vector<16x64xf32>
    %110 = tpu.matmul %109, %93, %cst_38 {dimension_numbers = #tpu.dot_dimension_numbers<[1], [0], [0], [1], [0, 0, 1, 1], [], []>} : vector<16x16xbf16>, vector<16x64xbf16>, vector<16x64xf32> -> vector<16x64xf32>
    %c16 = arith.constant 16 : index
    %c0_39 = arith.constant 0 : index
    %111 = vector.load %arg17[%c16, %c0_39] : memref<32x128xf32, #tpu.memory_space<vmem>>, vector<16x64xf32>
    tpu.vector_store %arg17[%c16, %c0_39], %110 {strides = array<i32>} : memref<32x128xf32, #tpu.memory_space<vmem>>, vector<16x64xf32>,
    %112 = vector.extract_strided_slice %33 {offsets = [16, 64], sizes = [16, 64], strides = [1, 1]} : vector<32x128xf32> to vector<16x64xf32>
    %113 = arith.truncf %112 : vector<16x64xf32> to vector<16x64xbf16>
    %114 = vector.extract_strided_slice %34 {offsets = [16, 64], sizes = [16, 64], strides = [1, 1]} : vector<32x128xf32> to vector<16x64xf32>
    %115 = arith.truncf %114 : vector<16x64xf32> to vector<16x64xbf16>
    %116 = vector.extract_strided_slice %35 {offsets = [16, 64], sizes = [16, 64], strides = [1, 1]} : vector<32x128xf32> to vector<16x64xf32>
    %117 = arith.truncf %116 : vector<16x64xf32> to vector<16x64xbf16>
    %cst_40 = arith.constant dense<0.000000e+00> : vector<16x16xf32>
    %118 = tpu.matmul %113, %115, %cst_40 {dimension_numbers = #tpu.dot_dimension_numbers<[1], [1], [0], [0], [0, 0, 1, 0], [], []>} : vector<16x64xbf16>, vector<16x64xbf16>, vector<16x16xf32> -> vector<16x16xf32>
    %cst_41 = arith.constant 1.250000e-01 : f32
    %119 = vector.broadcast %cst_41 : f32 to vector<16x16xf32>
    %120 = arith.mulf %118, %119 : vector<16x16xf32>
    %121 = vector.broadcast %87 : vector<1x16xf32> to vector<16x16xf32>
    %122 = arith.addf %120, %121 : vector<16x16xf32>
    %cst_42 = arith.constant dense<0xFF800000> : vector<16xf32>
    %123 = vector.multi_reduction <maximumf>, %122, %cst_42 [1] : vector<16x16xf32> to vector<16xf32>
    %124 = vector.shape_cast %123 : vector<16xf32> to vector<16x1xf32>
    %125 = vector.broadcast %124 : vector<16x1xf32> to vector<16x16xf32>
    %126 = arith.subf %122, %125 : vector<16x16xf32>
    %127 = math.exp %126 : vector<16x16xf32>
    %cst_43 = arith.constant dense<0.000000e+00> : vector<16xf32>
    %128 = vector.multi_reduction <add>, %127, %cst_43 [1] : vector<16x16xf32> to vector<16xf32>
    %129 = vector.shape_cast %128 : vector<16xf32> to vector<16x1xf32>
    %130 = tpu.reciprocal %129 {approx = true} : vector<16x1xf32> -> vector<16x1xf32>
    %131 = vector.broadcast %130 : vector<16x1xf32> to vector<16x16xf32>
    %132 = arith.mulf %127, %131 : vector<16x16xf32>
    %133 = arith.truncf %132 : vector<16x16xf32> to vector<16x16xbf16>
    %cst_44 = arith.constant dense<0.000000e+00> : vector<16x64xf32>
    %134 = tpu.matmul %133, %117, %cst_44 {dimension_numbers = #tpu.dot_dimension_numbers<[1], [0], [0], [1], [0, 0, 1, 1], [], []>} : vector<16x16xbf16>, vector<16x64xbf16>, vector<16x64xf32> -> vector<16x64xf32>
    %c16_45 = arith.constant 16 : index
    %c64_46 = arith.constant 64 : index
    %135 = vector.load %arg17[%c16_45, %c64_46] : memref<32x128xf32, #tpu.memory_space<vmem>>, vector<16x64xf32>
    tpu.vector_store %arg17[%c16_45, %c64_46], %134 {strides = array<i32>} : memref<32x128xf32, #tpu.memory_space<vmem>>, vector<16x64xf32>,
    %c0_47 = arith.constant 0 : index
    %c0_48 = arith.constant 0 : index
    %136 = vector.load %arg17[%c0_47, %c0_48] : memref<32x128xf32, #tpu.memory_space<vmem>>, vector<32x128xf32>
    %137 = arith.truncf %136 : vector<32x128xf32> to vector<32x128xbf16>
    %c0_49 = arith.constant 0 : index
    %c0_50 = arith.constant 0 : index
    %c0_51 = arith.constant 0 : index
    %138 = vector.load %arg6[%c0_49, %c0_50, %c0_51] : memref<2x128x128xbf16, #tpu.memory_space<vmem>>, vector<1x128x128xbf16>
    %139 = vector.shape_cast %138 : vector<1x128x128xbf16> to vector<128x128xbf16>
    %cst_52 = arith.constant dense<0.000000e+00> : vector<32x128xf32>
    %140 = tpu.matmul %137, %139, %cst_52 {dimension_numbers = #tpu.dot_dimension_numbers<[1], [0], [0], [1], [0, 0, 1, 1], [], []>} : vector<32x128xbf16>, vector<128x128xbf16>, vector<32x128xf32> -> vector<32x128xf32>
    %c0_53 = arith.constant 0 : index
    %c0_54 = arith.constant 0 : index
    %c0_55 = arith.constant 0 : index
    %141 = vector.load %arg7[%c0_53, %c0_54, %c0_55] : memref<2x1x128xf32, #tpu.memory_space<vmem>>, vector<1x1x128xf32>
    %142 = vector.shape_cast %141 : vector<1x1x128xf32> to vector<1x128xf32>
    %143 = vector.broadcast %142 : vector<1x128xf32> to vector<32x128xf32>
    %144 = arith.addf %140, %143 : vector<32x128xf32>
    %145 = arith.addf %24, %144 : vector<32x128xf32>
    %c0_56 = arith.constant 0 : index
    %c0_57 = arith.constant 0 : index
    %c0_58 = arith.constant 0 : index
    %146 = vector.load %arg8[%c0_56, %c0_57, %c0_58] : memref<2x1x128xf32, #tpu.memory_space<vmem>>, vector<1x1x128xf32>
    %147 = vector.shape_cast %146 : vector<1x1x128xf32> to vector<1x128xf32>
    %c0_59 = arith.constant 0 : index
    %c0_60 = arith.constant 0 : index
    %c0_61 = arith.constant 0 : index
    %148 = vector.load %arg9[%c0_59, %c0_60, %c0_61] : memref<2x1x128xf32, #tpu.memory_space<vmem>>, vector<1x1x128xf32>
    %149 = vector.shape_cast %148 : vector<1x1x128xf32> to vector<1x128xf32>
    %cst_62 = arith.constant dense<0.000000e+00> : vector<32xf32>
    %150 = vector.multi_reduction <add>, %145, %cst_62 [1] : vector<32x128xf32> to vector<32xf32>
    %151 = vector.shape_cast %150 : vector<32xf32> to vector<32x1xf32>
    %cst_63 = arith.constant 1.280000e+02 : f32
    %152 = vector.broadcast %cst_63 : f32 to vector<32x1xf32>
    %153 = arith.divf %151, %152 : vector<32x1xf32>
    %154 = vector.broadcast %153 : vector<32x1xf32> to vector<32x128xf32>
    %155 = arith.subf %145, %154 : vector<32x128xf32>
    %156 = arith.mulf %155, %155 : vector<32x128xf32>
    %cst_64 = arith.constant dense<0.000000e+00> : vector<32xf32>
    %157 = vector.multi_reduction <add>, %156, %cst_64 [1] : vector<32x128xf32> to vector<32xf32>
    %158 = vector.shape_cast %157 : vector<32xf32> to vector<32x1xf32>
    %cst_65 = arith.constant 1.280000e+02 : f32
    %159 = vector.broadcast %cst_65 : f32 to vector<32x1xf32>
    %160 = arith.divf %158, %159 : vector<32x1xf32>
    %161 = vector.broadcast %153 : vector<32x1xf32> to vector<32x128xf32>
    %162 = arith.subf %145, %161 : vector<32x128xf32>
    %cst_66 = arith.constant 9.99999996E-13 : f32
    %163 = vector.broadcast %cst_66 : f32 to vector<32x1xf32>
    %164 = arith.addf %160, %163 : vector<32x1xf32>
    %165 = math.rsqrt %164 : vector<32x1xf32>
    %166 = vector.broadcast %165 : vector<32x1xf32> to vector<32x128xf32>
    %167 = arith.mulf %162, %166 : vector<32x128xf32>
    %168 = vector.broadcast %147 : vector<1x128xf32> to vector<32x128xf32>
    %169 = arith.mulf %167, %168 : vector<32x128xf32>
    %170 = vector.broadcast %149 : vector<1x128xf32> to vector<32x128xf32>
    %171 = arith.addf %169, %170 : vector<32x128xf32>
    %172 = arith.truncf %171 : vector<32x128xf32> to vector<32x128xbf16>
    %c0_67 = arith.constant 0 : index
    %c0_68 = arith.constant 0 : index
    %c0_69 = arith.constant 0 : index
    %173 = vector.load %arg10[%c0_67, %c0_68, %c0_69] : memref<2x128x512xbf16, #tpu.memory_space<vmem>>, vector<1x128x512xbf16>
    %174 = vector.shape_cast %173 : vector<1x128x512xbf16> to vector<128x512xbf16>
    %cst_70 = arith.constant dense<0.000000e+00> : vector<32x512xf32>
    %175 = tpu.matmul %172, %174, %cst_70 {dimension_numbers = #tpu.dot_dimension_numbers<[1], [0], [0], [1], [0, 0, 1, 1], [], []>} : vector<32x128xbf16>, vector<128x512xbf16>, vector<32x512xf32> -> vector<32x512xf32>
    %c0_71 = arith.constant 0 : index
    %c0_72 = arith.constant 0 : index
    %c0_73 = arith.constant 0 : index
    %176 = vector.load %arg11[%c0_71, %c0_72, %c0_73] : memref<2x1x512xf32, #tpu.memory_space<vmem>>, vector<1x1x512xf32>
    %177 = vector.shape_cast %176 : vector<1x1x512xf32> to vector<1x512xf32>
    %178 = vector.broadcast %177 : vector<1x512xf32> to vector<32x512xf32>
    %179 = arith.addf %175, %178 : vector<32x512xf32>
    %cst_74 = arith.constant 5.000000e-01 : f32
    %180 = vector.broadcast %cst_74 : f32 to vector<32x512xf32>
    %181 = arith.mulf %180, %179 : vector<32x512xf32>
    %cst_75 = arith.constant 4.471500e-02 : f32
    %182 = vector.broadcast %cst_75 : f32 to vector<32x512xf32>
    %183 = arith.mulf %182, %179 : vector<32x512xf32>
    %184 = arith.mulf %183, %179 : vector<32x512xf32>
    %185 = arith.mulf %184, %179 : vector<32x512xf32>
    %186 = arith.addf %179, %185 : vector<32x512xf32>
    %cst_76 = arith.constant 0.797884583 : f32
    %187 = vector.broadcast %cst_76 : f32 to vector<32x512xf32>
    %188 = arith.mulf %187, %186 : vector<32x512xf32>
    %189 = math.tanh %188 : vector<32x512xf32>
    %cst_77 = arith.constant 1.000000e+00 : f32
    %190 = vector.broadcast %cst_77 : f32 to vector<32x512xf32>
    %191 = arith.addf %190, %189 : vector<32x512xf32>
    %192 = arith.mulf %181, %191 : vector<32x512xf32>
    %193 = arith.truncf %192 : vector<32x512xf32> to vector<32x512xbf16>
    %c0_78 = arith.constant 0 : index
    %c0_79 = arith.constant 0 : index
    %c0_80 = arith.constant 0 : index
    %194 = vector.load %arg12[%c0_78, %c0_79, %c0_80] : memref<2x512x128xbf16, #tpu.memory_space<vmem>>, vector<1x512x128xbf16>
    %195 = vector.shape_cast %194 : vector<1x512x128xbf16> to vector<512x128xbf16>
    %cst_81 = arith.constant dense<0.000000e+00> : vector<32x128xf32>
    %196 = tpu.matmul %193, %195, %cst_81 {dimension_numbers = #tpu.dot_dimension_numbers<[1], [0], [0], [1], [0, 0, 1, 1], [], []>} : vector<32x512xbf16>, vector<512x128xbf16>, vector<32x128xf32> -> vector<32x128xf32>
    %c0_82 = arith.constant 0 : index
    %c0_83 = arith.constant 0 : index
    %c0_84 = arith.constant 0 : index
    %197 = vector.load %arg13[%c0_82, %c0_83, %c0_84] : memref<2x1x128xf32, #tpu.memory_space<vmem>>, vector<1x1x128xf32>
    %198 = vector.shape_cast %197 : vector<1x1x128xf32> to vector<1x128xf32>
    %199 = vector.broadcast %198 : vector<1x128xf32> to vector<32x128xf32>
    %200 = arith.addf %196, %199 : vector<32x128xf32>
    %201 = arith.addf %171, %200 : vector<32x128xf32>
    %c0_85 = arith.constant 0 : index
    %c0_86 = arith.constant 0 : index
    %c0_87 = arith.constant 0 : index
    %202 = vector.load %arg14[%c0_85, %c0_86, %c0_87] : memref<2x1x128xf32, #tpu.memory_space<vmem>>, vector<1x1x128xf32>
    %203 = vector.shape_cast %202 : vector<1x1x128xf32> to vector<1x128xf32>
    %c0_88 = arith.constant 0 : index
    %c0_89 = arith.constant 0 : index
    %c0_90 = arith.constant 0 : index
    %204 = vector.load %arg15[%c0_88, %c0_89, %c0_90] : memref<2x1x128xf32, #tpu.memory_space<vmem>>, vector<1x1x128xf32>
    %205 = vector.shape_cast %204 : vector<1x1x128xf32> to vector<1x128xf32>
    %cst_91 = arith.constant dense<0.000000e+00> : vector<32xf32>
    %206 = vector.multi_reduction <add>, %201, %cst_91 [1] : vector<32x128xf32> to vector<32xf32>
    %207 = vector.shape_cast %206 : vector<32xf32> to vector<32x1xf32>
    %cst_92 = arith.constant 1.280000e+02 : f32
    %208 = vector.broadcast %cst_92 : f32 to vector<32x1xf32>
    %209 = arith.divf %207, %208 : vector<32x1xf32>
    %210 = vector.broadcast %209 : vector<32x1xf32> to vector<32x128xf32>
    %211 = arith.subf %201, %210 : vector<32x128xf32>
    %212 = arith.mulf %211, %211 : vector<32x128xf32>
    %cst_93 = arith.constant dense<0.000000e+00> : vector<32xf32>
    %213 = vector.multi_reduction <add>, %212, %cst_93 [1] : vector<32x128xf32> to vector<32xf32>
    %214 = vector.shape_cast %213 : vector<32xf32> to vector<32x1xf32>
    %cst_94 = arith.constant 1.280000e+02 : f32
    %215 = vector.broadcast %cst_94 : f32 to vector<32x1xf32>
    %216 = arith.divf %214, %215 : vector<32x1xf32>
    %217 = vector.broadcast %209 : vector<32x1xf32> to vector<32x128xf32>
    %218 = arith.subf %201, %217 : vector<32x128xf32>
    %cst_95 = arith.constant 9.99999996E-13 : f32
    %219 = vector.broadcast %cst_95 : f32 to vector<32x1xf32>
    %220 = arith.addf %216, %219 : vector<32x1xf32>
    %221 = math.rsqrt %220 : vector<32x1xf32>
    %222 = vector.broadcast %221 : vector<32x1xf32> to vector<32x128xf32>
    %223 = arith.mulf %218, %222 : vector<32x128xf32>
    %224 = vector.broadcast %203 : vector<1x128xf32> to vector<32x128xf32>
    %225 = arith.mulf %223, %224 : vector<32x128xf32>
    %226 = vector.broadcast %205 : vector<1x128xf32> to vector<32x128xf32>
    %227 = arith.addf %225, %226 : vector<32x128xf32>
    %228 = arith.truncf %227 : vector<32x128xf32> to vector<32x128xbf16>
    %c1_96 = arith.constant 1 : index
    %c0_97 = arith.constant 0 : index
    %c0_98 = arith.constant 0 : index
    %229 = vector.load %arg4[%c1_96, %c0_97, %c0_98] : memref<2x128x384xbf16, #tpu.memory_space<vmem>>, vector<1x128x384xbf16>
    %230 = vector.shape_cast %229 : vector<1x128x384xbf16> to vector<128x384xbf16>
    %cst_99 = arith.constant dense<0.000000e+00> : vector<32x384xf32>
    %231 = tpu.matmul %228, %230, %cst_99 {dimension_numbers = #tpu.dot_dimension_numbers<[1], [0], [0], [1], [0, 0, 1, 1], [], []>} : vector<32x128xbf16>, vector<128x384xbf16>, vector<32x384xf32> -> vector<32x384xf32>
    %c1_100 = arith.constant 1 : index
    %c0_101 = arith.constant 0 : index
    %c0_102 = arith.constant 0 : index
    %232 = vector.load %arg5[%c1_100, %c0_101, %c0_102] : memref<2x1x384xf32, #tpu.memory_space<vmem>>, vector<1x1x384xf32>
    %233 = vector.shape_cast %232 : vector<1x1x384xf32> to vector<1x384xf32>
    %234 = vector.broadcast %233 : vector<1x384xf32> to vector<32x384xf32>
    %235 = arith.addf %231, %234 : vector<32x384xf32>
    %236 = vector.extract_strided_slice %235 {offsets = [0, 0], sizes = [32, 128], strides = [1, 1]} : vector<32x384xf32> to vector<32x128xf32>
    %237 = vector.extract_strided_slice %235 {offsets = [0, 128], sizes = [32, 128], strides = [1, 1]} : vector<32x384xf32> to vector<32x128xf32>
    %238 = vector.extract_strided_slice %235 {offsets = [0, 256], sizes = [32, 128], strides = [1, 1]} : vector<32x384xf32> to vector<32x128xf32>
    %c0_103 = arith.constant 0 : index
    %c0_104 = arith.constant 0 : index
    %c0_105 = arith.constant 0 : index
    %239 = vector.load %arg1[%c0_103, %c0_104, %c0_105] : memref<2x1x16xf32, #tpu.memory_space<vmem>>, vector<1x1x16xf32>
    %240 = vector.shape_cast %239 : vector<1x1x16xf32> to vector<1x16xf32>
    %241 = vector.extract_strided_slice %236 {offsets = [0, 0], sizes = [16, 64], strides = [1, 1]} : vector<32x128xf32> to vector<16x64xf32>
    %242 = arith.truncf %241 : vector<16x64xf32> to vector<16x64xbf16>
    %243 = vector.extract_strided_slice %237 {offsets = [0, 0], sizes = [16, 64], strides = [1, 1]} : vector<32x128xf32> to vector<16x64xf32>
    %244 = arith.truncf %243 : vector<16x64xf32> to vector<16x64xbf16>
    %245 = vector.extract_strided_slice %238 {offsets = [0, 0], sizes = [16, 64], strides = [1, 1]} : vector<32x128xf32> to vector<16x64xf32>
    %246 = arith.truncf %245 : vector<16x64xf32> to vector<16x64xbf16>
    %cst_106 = arith.constant dense<0.000000e+00> : vector<16x16xf32>
    %247 = tpu.matmul %242, %244, %cst_106 {dimension_numbers = #tpu.dot_dimension_numbers<[1], [1], [0], [0], [0, 0, 1, 0], [], []>} : vector<16x64xbf16>, vector<16x64xbf16>, vector<16x16xf32> -> vector<16x16xf32>
    %cst_107 = arith.constant 1.250000e-01 : f32
    %248 = vector.broadcast %cst_107 : f32 to vector<16x16xf32>
    %249 = arith.mulf %247, %248 : vector<16x16xf32>
    %250 = vector.broadcast %240 : vector<1x16xf32> to vector<16x16xf32>
    %251 = arith.addf %249, %250 : vector<16x16xf32>
    %cst_108 = arith.constant dense<0xFF800000> : vector<16xf32>
    %252 = vector.multi_reduction <maximumf>, %251, %cst_108 [1] : vector<16x16xf32> to vector<16xf32>
    %253 = vector.shape_cast %252 : vector<16xf32> to vector<16x1xf32>
    %254 = vector.broadcast %253 : vector<16x1xf32> to vector<16x16xf32>
    %255 = arith.subf %251, %254 : vector<16x16xf32>
    %256 = math.exp %255 : vector<16x16xf32>
    %cst_109 = arith.constant dense<0.000000e+00> : vector<16xf32>
    %257 = vector.multi_reduction <add>, %256, %cst_109 [1] : vector<16x16xf32> to vector<16xf32>
    %258 = vector.shape_cast %257 : vector<16xf32> to vector<16x1xf32>
    %259 = tpu.reciprocal %258 {approx = true} : vector<16x1xf32> -> vector<16x1xf32>
    %260 = vector.broadcast %259 : vector<16x1xf32> to vector<16x16xf32>
    %261 = arith.mulf %256, %260 : vector<16x16xf32>
    %262 = arith.truncf %261 : vector<16x16xf32> to vector<16x16xbf16>
    %cst_110 = arith.constant dense<0.000000e+00> : vector<16x64xf32>
    %263 = tpu.matmul %262, %246, %cst_110 {dimension_numbers = #tpu.dot_dimension_numbers<[1], [0], [0], [1], [0, 0, 1, 1], [], []>} : vector<16x16xbf16>, vector<16x64xbf16>, vector<16x64xf32> -> vector<16x64xf32>
    %c0_111 = arith.constant 0 : index
    %c0_112 = arith.constant 0 : index
    %264 = vector.load %arg17[%c0_111, %c0_112] : memref<32x128xf32, #tpu.memory_space<vmem>>, vector<16x64xf32>
    tpu.vector_store %arg17[%c0_111, %c0_112], %263 {strides = array<i32>} : memref<32x128xf32, #tpu.memory_space<vmem>>, vector<16x64xf32>,
    %265 = vector.extract_strided_slice %236 {offsets = [0, 64], sizes = [16, 64], strides = [1, 1]} : vector<32x128xf32> to vector<16x64xf32>
    %266 = arith.truncf %265 : vector<16x64xf32> to vector<16x64xbf16>
    %267 = vector.extract_strided_slice %237 {offsets = [0, 64], sizes = [16, 64], strides = [1, 1]} : vector<32x128xf32> to vector<16x64xf32>
    %268 = arith.truncf %267 : vector<16x64xf32> to vector<16x64xbf16>
    %269 = vector.extract_strided_slice %238 {offsets = [0, 64], sizes = [16, 64], strides = [1, 1]} : vector<32x128xf32> to vector<16x64xf32>
    %270 = arith.truncf %269 : vector<16x64xf32> to vector<16x64xbf16>
    %cst_113 = arith.constant dense<0.000000e+00> : vector<16x16xf32>
    %271 = tpu.matmul %266, %268, %cst_113 {dimension_numbers = #tpu.dot_dimension_numbers<[1], [1], [0], [0], [0, 0, 1, 0], [], []>} : vector<16x64xbf16>, vector<16x64xbf16>, vector<16x16xf32> -> vector<16x16xf32>
    %cst_114 = arith.constant 1.250000e-01 : f32
    %272 = vector.broadcast %cst_114 : f32 to vector<16x16xf32>
    %273 = arith.mulf %271, %272 : vector<16x16xf32>
    %274 = vector.broadcast %240 : vector<1x16xf32> to vector<16x16xf32>
    %275 = arith.addf %273, %274 : vector<16x16xf32>
    %cst_115 = arith.constant dense<0xFF800000> : vector<16xf32>
    %276 = vector.multi_reduction <maximumf>, %275, %cst_115 [1] : vector<16x16xf32> to vector<16xf32>
    %277 = vector.shape_cast %276 : vector<16xf32> to vector<16x1xf32>
    %278 = vector.broadcast %277 : vector<16x1xf32> to vector<16x16xf32>
    %279 = arith.subf %275, %278 : vector<16x16xf32>
    %280 = math.exp %279 : vector<16x16xf32>
    %cst_116 = arith.constant dense<0.000000e+00> : vector<16xf32>
    %281 = vector.multi_reduction <add>, %280, %cst_116 [1] : vector<16x16xf32> to vector<16xf32>
    %282 = vector.shape_cast %281 : vector<16xf32> to vector<16x1xf32>
    %283 = tpu.reciprocal %282 {approx = true} : vector<16x1xf32> -> vector<16x1xf32>
    %284 = vector.broadcast %283 : vector<16x1xf32> to vector<16x16xf32>
    %285 = arith.mulf %280, %284 : vector<16x16xf32>
    %286 = arith.truncf %285 : vector<16x16xf32> to vector<16x16xbf16>
    %cst_117 = arith.constant dense<0.000000e+00> : vector<16x64xf32>
    %287 = tpu.matmul %286, %270, %cst_117 {dimension_numbers = #tpu.dot_dimension_numbers<[1], [0], [0], [1], [0, 0, 1, 1], [], []>} : vector<16x16xbf16>, vector<16x64xbf16>, vector<16x64xf32> -> vector<16x64xf32>
    %c0_118 = arith.constant 0 : index
    %c64_119 = arith.constant 64 : index
    %288 = vector.load %arg17[%c0_118, %c64_119] : memref<32x128xf32, #tpu.memory_space<vmem>>, vector<16x64xf32>
    tpu.vector_store %arg17[%c0_118, %c64_119], %287 {strides = array<i32>} : memref<32x128xf32, #tpu.memory_space<vmem>>, vector<16x64xf32>,
    %c1_120 = arith.constant 1 : index
    %c0_121 = arith.constant 0 : index
    %c0_122 = arith.constant 0 : index
    %289 = vector.load %arg1[%c1_120, %c0_121, %c0_122] : memref<2x1x16xf32, #tpu.memory_space<vmem>>, vector<1x1x16xf32>
    %290 = vector.shape_cast %289 : vector<1x1x16xf32> to vector<1x16xf32>
    %291 = vector.extract_strided_slice %236 {offsets = [16, 0], sizes = [16, 64], strides = [1, 1]} : vector<32x128xf32> to vector<16x64xf32>
    %292 = arith.truncf %291 : vector<16x64xf32> to vector<16x64xbf16>
    %293 = vector.extract_strided_slice %237 {offsets = [16, 0], sizes = [16, 64], strides = [1, 1]} : vector<32x128xf32> to vector<16x64xf32>
    %294 = arith.truncf %293 : vector<16x64xf32> to vector<16x64xbf16>
    %295 = vector.extract_strided_slice %238 {offsets = [16, 0], sizes = [16, 64], strides = [1, 1]} : vector<32x128xf32> to vector<16x64xf32>
    %296 = arith.truncf %295 : vector<16x64xf32> to vector<16x64xbf16>
    %cst_123 = arith.constant dense<0.000000e+00> : vector<16x16xf32>
    %297 = tpu.matmul %292, %294, %cst_123 {dimension_numbers = #tpu.dot_dimension_numbers<[1], [1], [0], [0], [0, 0, 1, 0], [], []>} : vector<16x64xbf16>, vector<16x64xbf16>, vector<16x16xf32> -> vector<16x16xf32>
    %cst_124 = arith.constant 1.250000e-01 : f32
    %298 = vector.broadcast %cst_124 : f32 to vector<16x16xf32>
    %299 = arith.mulf %297, %298 : vector<16x16xf32>
    %300 = vector.broadcast %290 : vector<1x16xf32> to vector<16x16xf32>
    %301 = arith.addf %299, %300 : vector<16x16xf32>
    %cst_125 = arith.constant dense<0xFF800000> : vector<16xf32>
    %302 = vector.multi_reduction <maximumf>, %301, %cst_125 [1] : vector<16x16xf32> to vector<16xf32>
    %303 = vector.shape_cast %302 : vector<16xf32> to vector<16x1xf32>
    %304 = vector.broadcast %303 : vector<16x1xf32> to vector<16x16xf32>
    %305 = arith.subf %301, %304 : vector<16x16xf32>
    %306 = math.exp %305 : vector<16x16xf32>
    %cst_126 = arith.constant dense<0.000000e+00> : vector<16xf32>
    %307 = vector.multi_reduction <add>, %306, %cst_126 [1] : vector<16x16xf32> to vector<16xf32>
    %308 = vector.shape_cast %307 : vector<16xf32> to vector<16x1xf32>
    %309 = tpu.reciprocal %308 {approx = true} : vector<16x1xf32> -> vector<16x1xf32>
    %310 = vector.broadcast %309 : vector<16x1xf32> to vector<16x16xf32>
    %311 = arith.mulf %306, %310 : vector<16x16xf32>
    %312 = arith.truncf %311 : vector<16x16xf32> to vector<16x16xbf16>
    %cst_127 = arith.constant dense<0.000000e+00> : vector<16x64xf32>
    %313 = tpu.matmul %312, %296, %cst_127 {dimension_numbers = #tpu.dot_dimension_numbers<[1], [0], [0], [1], [0, 0, 1, 1], [], []>} : vector<16x16xbf16>, vector<16x64xbf16>, vector<16x64xf32> -> vector<16x64xf32>
    %c16_128 = arith.constant 16 : index
    %c0_129 = arith.constant 0 : index
    %314 = vector.load %arg17[%c16_128, %c0_129] : memref<32x128xf32, #tpu.memory_space<vmem>>, vector<16x64xf32>
    tpu.vector_store %arg17[%c16_128, %c0_129], %313 {strides = array<i32>} : memref<32x128xf32, #tpu.memory_space<vmem>>, vector<16x64xf32>,
    %315 = vector.extract_strided_slice %236 {offsets = [16, 64], sizes = [16, 64], strides = [1, 1]} : vector<32x128xf32> to vector<16x64xf32>
    %316 = arith.truncf %315 : vector<16x64xf32> to vector<16x64xbf16>
    %317 = vector.extract_strided_slice %237 {offsets = [16, 64], sizes = [16, 64], strides = [1, 1]} : vector<32x128xf32> to vector<16x64xf32>
    %318 = arith.truncf %317 : vector<16x64xf32> to vector<16x64xbf16>
    %319 = vector.extract_strided_slice %238 {offsets = [16, 64], sizes = [16, 64], strides = [1, 1]} : vector<32x128xf32> to vector<16x64xf32>
    %320 = arith.truncf %319 : vector<16x64xf32> to vector<16x64xbf16>
    %cst_130 = arith.constant dense<0.000000e+00> : vector<16x16xf32>
    %321 = tpu.matmul %316, %318, %cst_130 {dimension_numbers = #tpu.dot_dimension_numbers<[1], [1], [0], [0], [0, 0, 1, 0], [], []>} : vector<16x64xbf16>, vector<16x64xbf16>, vector<16x16xf32> -> vector<16x16xf32>
    %cst_131 = arith.constant 1.250000e-01 : f32
    %322 = vector.broadcast %cst_131 : f32 to vector<16x16xf32>
    %323 = arith.mulf %321, %322 : vector<16x16xf32>
    %324 = vector.broadcast %290 : vector<1x16xf32> to vector<16x16xf32>
    %325 = arith.addf %323, %324 : vector<16x16xf32>
    %cst_132 = arith.constant dense<0xFF800000> : vector<16xf32>
    %326 = vector.multi_reduction <maximumf>, %325, %cst_132 [1] : vector<16x16xf32> to vector<16xf32>
    %327 = vector.shape_cast %326 : vector<16xf32> to vector<16x1xf32>
    %328 = vector.broadcast %327 : vector<16x1xf32> to vector<16x16xf32>
    %329 = arith.subf %325, %328 : vector<16x16xf32>
    %330 = math.exp %329 : vector<16x16xf32>
    %cst_133 = arith.constant dense<0.000000e+00> : vector<16xf32>
    %331 = vector.multi_reduction <add>, %330, %cst_133 [1] : vector<16x16xf32> to vector<16xf32>
    %332 = vector.shape_cast %331 : vector<16xf32> to vector<16x1xf32>
    %333 = tpu.reciprocal %332 {approx = true} : vector<16x1xf32> -> vector<16x1xf32>
    %334 = vector.broadcast %333 : vector<16x1xf32> to vector<16x16xf32>
    %335 = arith.mulf %330, %334 : vector<16x16xf32>
    %336 = arith.truncf %335 : vector<16x16xf32> to vector<16x16xbf16>
    %cst_134 = arith.constant dense<0.000000e+00> : vector<16x64xf32>
    %337 = tpu.matmul %336, %320, %cst_134 {dimension_numbers = #tpu.dot_dimension_numbers<[1], [0], [0], [1], [0, 0, 1, 1], [], []>} : vector<16x16xbf16>, vector<16x64xbf16>, vector<16x64xf32> -> vector<16x64xf32>
    %c16_135 = arith.constant 16 : index
    %c64_136 = arith.constant 64 : index
    %338 = vector.load %arg17[%c16_135, %c64_136] : memref<32x128xf32, #tpu.memory_space<vmem>>, vector<16x64xf32>
    tpu.vector_store %arg17[%c16_135, %c64_136], %337 {strides = array<i32>} : memref<32x128xf32, #tpu.memory_space<vmem>>, vector<16x64xf32>,
    %c0_137 = arith.constant 0 : index
    %c0_138 = arith.constant 0 : index
    %339 = vector.load %arg17[%c0_137, %c0_138] : memref<32x128xf32, #tpu.memory_space<vmem>>, vector<32x128xf32>
    %340 = arith.truncf %339 : vector<32x128xf32> to vector<32x128xbf16>
    %c1_139 = arith.constant 1 : index
    %c0_140 = arith.constant 0 : index
    %c0_141 = arith.constant 0 : index
    %341 = vector.load %arg6[%c1_139, %c0_140, %c0_141] : memref<2x128x128xbf16, #tpu.memory_space<vmem>>, vector<1x128x128xbf16>
    %342 = vector.shape_cast %341 : vector<1x128x128xbf16> to vector<128x128xbf16>
    %cst_142 = arith.constant dense<0.000000e+00> : vector<32x128xf32>
    %343 = tpu.matmul %340, %342, %cst_142 {dimension_numbers = #tpu.dot_dimension_numbers<[1], [0], [0], [1], [0, 0, 1, 1], [], []>} : vector<32x128xbf16>, vector<128x128xbf16>, vector<32x128xf32> -> vector<32x128xf32>
    %c1_143 = arith.constant 1 : index
    %c0_144 = arith.constant 0 : index
    %c0_145 = arith.constant 0 : index
    %344 = vector.load %arg7[%c1_143, %c0_144, %c0_145] : memref<2x1x128xf32, #tpu.memory_space<vmem>>, vector<1x1x128xf32>
    %345 = vector.shape_cast %344 : vector<1x1x128xf32> to vector<1x128xf32>
    %346 = vector.broadcast %345 : vector<1x128xf32> to vector<32x128xf32>
    %347 = arith.addf %343, %346 : vector<32x128xf32>
    %348 = arith.addf %227, %347 : vector<32x128xf32>
    %c1_146 = arith.constant 1 : index
    %c0_147 = arith.constant 0 : index
    %c0_148 = arith.constant 0 : index
    %349 = vector.load %arg8[%c1_146, %c0_147, %c0_148] : memref<2x1x128xf32, #tpu.memory_space<vmem>>, vector<1x1x128xf32>
    %350 = vector.shape_cast %349 : vector<1x1x128xf32> to vector<1x128xf32>
    %c1_149 = arith.constant 1 : index
    %c0_150 = arith.constant 0 : index
    %c0_151 = arith.constant 0 : index
    %351 = vector.load %arg9[%c1_149, %c0_150, %c0_151] : memref<2x1x128xf32, #tpu.memory_space<vmem>>, vector<1x1x128xf32>
    %352 = vector.shape_cast %351 : vector<1x1x128xf32> to vector<1x128xf32>
    %cst_152 = arith.constant dense<0.000000e+00> : vector<32xf32>
    %353 = vector.multi_reduction <add>, %348, %cst_152 [1] : vector<32x128xf32> to vector<32xf32>
    %354 = vector.shape_cast %353 : vector<32xf32> to vector<32x1xf32>
    %cst_153 = arith.constant 1.280000e+02 : f32
    %355 = vector.broadcast %cst_153 : f32 to vector<32x1xf32>
    %356 = arith.divf %354, %355 : vector<32x1xf32>
    %357 = vector.broadcast %356 : vector<32x1xf32> to vector<32x128xf32>
    %358 = arith.subf %348, %357 : vector<32x128xf32>
    %359 = arith.mulf %358, %358 : vector<32x128xf32>
    %cst_154 = arith.constant dense<0.000000e+00> : vector<32xf32>
    %360 = vector.multi_reduction <add>, %359, %cst_154 [1] : vector<32x128xf32> to vector<32xf32>
    %361 = vector.shape_cast %360 : vector<32xf32> to vector<32x1xf32>
    %cst_155 = arith.constant 1.280000e+02 : f32
    %362 = vector.broadcast %cst_155 : f32 to vector<32x1xf32>
    %363 = arith.divf %361, %362 : vector<32x1xf32>
    %364 = vector.broadcast %356 : vector<32x1xf32> to vector<32x128xf32>
    %365 = arith.subf %348, %364 : vector<32x128xf32>
    %cst_156 = arith.constant 9.99999996E-13 : f32
    %366 = vector.broadcast %cst_156 : f32 to vector<32x1xf32>
    %367 = arith.addf %363, %366 : vector<32x1xf32>
    %368 = math.rsqrt %367 : vector<32x1xf32>
    %369 = vector.broadcast %368 : vector<32x1xf32> to vector<32x128xf32>
    %370 = arith.mulf %365, %369 : vector<32x128xf32>
    %371 = vector.broadcast %350 : vector<1x128xf32> to vector<32x128xf32>
    %372 = arith.mulf %370, %371 : vector<32x128xf32>
    %373 = vector.broadcast %352 : vector<1x128xf32> to vector<32x128xf32>
    %374 = arith.addf %372, %373 : vector<32x128xf32>
    %375 = arith.truncf %374 : vector<32x128xf32> to vector<32x128xbf16>
    %c1_157 = arith.constant 1 : index
    %c0_158 = arith.constant 0 : index
    %c0_159 = arith.constant 0 : index
    %376 = vector.load %arg10[%c1_157, %c0_158, %c0_159] : memref<2x128x512xbf16, #tpu.memory_space<vmem>>, vector<1x128x512xbf16>
    %377 = vector.shape_cast %376 : vector<1x128x512xbf16> to vector<128x512xbf16>
    %cst_160 = arith.constant dense<0.000000e+00> : vector<32x512xf32>
    %378 = tpu.matmul %375, %377, %cst_160 {dimension_numbers = #tpu.dot_dimension_numbers<[1], [0], [0], [1], [0, 0, 1, 1], [], []>} : vector<32x128xbf16>, vector<128x512xbf16>, vector<32x512xf32> -> vector<32x512xf32>
    %c1_161 = arith.constant 1 : index
    %c0_162 = arith.constant 0 : index
    %c0_163 = arith.constant 0 : index
    %379 = vector.load %arg11[%c1_161, %c0_162, %c0_163] : memref<2x1x512xf32, #tpu.memory_space<vmem>>, vector<1x1x512xf32>
    %380 = vector.shape_cast %379 : vector<1x1x512xf32> to vector<1x512xf32>
    %381 = vector.broadcast %380 : vector<1x512xf32> to vector<32x512xf32>
    %382 = arith.addf %378, %381 : vector<32x512xf32>
    %cst_164 = arith.constant 5.000000e-01 : f32
    %383 = vector.broadcast %cst_164 : f32 to vector<32x512xf32>
    %384 = arith.mulf %383, %382 : vector<32x512xf32>
    %cst_165 = arith.constant 4.471500e-02 : f32
    %385 = vector.broadcast %cst_165 : f32 to vector<32x512xf32>
    %386 = arith.mulf %385, %382 : vector<32x512xf32>
    %387 = arith.mulf %386, %382 : vector<32x512xf32>
    %388 = arith.mulf %387, %382 : vector<32x512xf32>
    %389 = arith.addf %382, %388 : vector<32x512xf32>
    %cst_166 = arith.constant 0.797884583 : f32
    %390 = vector.broadcast %cst_166 : f32 to vector<32x512xf32>
    %391 = arith.mulf %390, %389 : vector<32x512xf32>
    %392 = math.tanh %391 : vector<32x512xf32>
    %cst_167 = arith.constant 1.000000e+00 : f32
    %393 = vector.broadcast %cst_167 : f32 to vector<32x512xf32>
    %394 = arith.addf %393, %392 : vector<32x512xf32>
    %395 = arith.mulf %384, %394 : vector<32x512xf32>
    %396 = arith.truncf %395 : vector<32x512xf32> to vector<32x512xbf16>
    %c1_168 = arith.constant 1 : index
    %c0_169 = arith.constant 0 : index
    %c0_170 = arith.constant 0 : index
    %397 = vector.load %arg12[%c1_168, %c0_169, %c0_170] : memref<2x512x128xbf16, #tpu.memory_space<vmem>>, vector<1x512x128xbf16>
    %398 = vector.shape_cast %397 : vector<1x512x128xbf16> to vector<512x128xbf16>
    %cst_171 = arith.constant dense<0.000000e+00> : vector<32x128xf32>
    %399 = tpu.matmul %396, %398, %cst_171 {dimension_numbers = #tpu.dot_dimension_numbers<[1], [0], [0], [1], [0, 0, 1, 1], [], []>} : vector<32x512xbf16>, vector<512x128xbf16>, vector<32x128xf32> -> vector<32x128xf32>
    %c1_172 = arith.constant 1 : index
    %c0_173 = arith.constant 0 : index
    %c0_174 = arith.constant 0 : index
    %400 = vector.load %arg13[%c1_172, %c0_173, %c0_174] : memref<2x1x128xf32, #tpu.memory_space<vmem>>, vector<1x1x128xf32>
    %401 = vector.shape_cast %400 : vector<1x1x128xf32> to vector<1x128xf32>
    %402 = vector.broadcast %401 : vector<1x128xf32> to vector<32x128xf32>
    %403 = arith.addf %399, %402 : vector<32x128xf32>
    %404 = arith.addf %374, %403 : vector<32x128xf32>
    %c1_175 = arith.constant 1 : index
    %c0_176 = arith.constant 0 : index
    %c0_177 = arith.constant 0 : index
    %405 = vector.load %arg14[%c1_175, %c0_176, %c0_177] : memref<2x1x128xf32, #tpu.memory_space<vmem>>, vector<1x1x128xf32>
    %406 = vector.shape_cast %405 : vector<1x1x128xf32> to vector<1x128xf32>
    %c1_178 = arith.constant 1 : index
    %c0_179 = arith.constant 0 : index
    %c0_180 = arith.constant 0 : index
    %407 = vector.load %arg15[%c1_178, %c0_179, %c0_180] : memref<2x1x128xf32, #tpu.memory_space<vmem>>, vector<1x1x128xf32>
    %408 = vector.shape_cast %407 : vector<1x1x128xf32> to vector<1x128xf32>
    %cst_181 = arith.constant dense<0.000000e+00> : vector<32xf32>
    %409 = vector.multi_reduction <add>, %404, %cst_181 [1] : vector<32x128xf32> to vector<32xf32>
    %410 = vector.shape_cast %409 : vector<32xf32> to vector<32x1xf32>
    %cst_182 = arith.constant 1.280000e+02 : f32
    %411 = vector.broadcast %cst_182 : f32 to vector<32x1xf32>
    %412 = arith.divf %410, %411 : vector<32x1xf32>
    %413 = vector.broadcast %412 : vector<32x1xf32> to vector<32x128xf32>
    %414 = arith.subf %404, %413 : vector<32x128xf32>
    %415 = arith.mulf %414, %414 : vector<32x128xf32>
    %cst_183 = arith.constant dense<0.000000e+00> : vector<32xf32>
    %416 = vector.multi_reduction <add>, %415, %cst_183 [1] : vector<32x128xf32> to vector<32xf32>
    %417 = vector.shape_cast %416 : vector<32xf32> to vector<32x1xf32>
    %cst_184 = arith.constant 1.280000e+02 : f32
    %418 = vector.broadcast %cst_184 : f32 to vector<32x1xf32>
    %419 = arith.divf %417, %418 : vector<32x1xf32>
    %420 = vector.broadcast %412 : vector<32x1xf32> to vector<32x128xf32>
    %421 = arith.subf %404, %420 : vector<32x128xf32>
    %cst_185 = arith.constant 9.99999996E-13 : f32
    %422 = vector.broadcast %cst_185 : f32 to vector<32x1xf32>
    %423 = arith.addf %419, %422 : vector<32x1xf32>
    %424 = math.rsqrt %423 : vector<32x1xf32>
    %425 = vector.broadcast %424 : vector<32x1xf32> to vector<32x128xf32>
    %426 = arith.mulf %421, %425 : vector<32x128xf32>
    %427 = vector.broadcast %406 : vector<1x128xf32> to vector<32x128xf32>
    %428 = arith.mulf %426, %427 : vector<32x128xf32>
    %429 = vector.broadcast %408 : vector<1x128xf32> to vector<32x128xf32>
    %430 = arith.addf %428, %429 : vector<32x128xf32>
    %c0_186 = arith.constant 0 : index
    %c0_187 = arith.constant 0 : index
    %431 = vector.load %arg16[%c0_186, %c0_187] : memref<32x128xf32, #tpu.memory_space<vmem>>, vector<32x128xf32>
    tpu.vector_store %arg16[%c0_186, %c0_187], %430 {strides = array<i32>} : memref<32x128xf32, #tpu.memory_space<vmem>>, vector<32x128xf32>,
    return
  }
}

</mosaic_0001>

<bundles_post_ra>
// kernel: tpu_custom_call.1
= control target key start
LH: loop header
LB: loop body
LE: loop exit
PB: predicated region body
PF: predicated region fallthrough
CT: control target
= control target key end

     0   :  { %s6198_s0 = inlined_call_operand.hbm [shape: f32[32,128], index: 0, kind: input, shape index: {}]   ;;  %s6199_s1 = inlined_call_operand.hbm [shape: f32[2,1,16], index: 1, kind: input, shape index: {}]   ;;  %s6200_s2 = inlined_call_operand.hbm [shape: f32[1,128], index: 2, kind: input, shape index: {}]   ;;  %s6201_s3 = inlined_call_operand.hbm [shape: f32[1,128], index: 3, kind: input, shape index: {}]   ;;  %s6202_s4 = inlined_call_operand.hbm [shape: bf16[2,128,384], index: 4, kind: input, shape index: {}]   ;;  %s6203_s5 = inlined_call_operand.vmem [shape: f32[2,1,384], index: 5, kind: input, shape index: {}]   ;;  %s6204_s6 = inlined_call_operand.hbm [shape: bf16[2,128,128], index: 6, kind: input, shape index: {}]   ;;  %s6205_s7 = inlined_call_operand.vmem [shape: f32[2,1,128], index: 7, kind: input, shape index: {}]   ;;  %s6206_s8 = inlined_call_operand.vmem [shape: f32[2,1,128], index: 8, kind: input, shape index: {}]   ;;  %s6207_s9 = inlined_call_operand.vmem [shape: f32[2,1,128], index: 9, kind: input, shape index: {}]   ;;  %s6208_s10 = inlined_call_operand.hbm [shape: bf16[2,128,512], index: 10, kind: input, shape index: {}]   ;;  %s6209_s11 = inlined_call_operand.vmem [shape: f32[2,1,512], index: 11, kind: input, shape index: {}]   ;;  %s6210_s12 = inlined_call_operand.hbm [shape: bf16[2,512,128], index: 12, kind: input, shape index: {}]   ;;  %s6211_s13 = inlined_call_operand.vmem [shape: f32[2,1,128], index: 13, kind: input, shape index: {}]   ;;  %s6212_s14 = inlined_call_operand.vmem [shape: f32[2,1,128], index: 14, kind: input, shape index: {}]   ;;  %s6213_s15 = inlined_call_operand.vmem [shape: f32[2,1,128], index: 15, kind: input, shape index: {}]   ;;  %s6214_s16 = inlined_call_operand.hbm [shape: f32[32,128], index: 16, kind: output, shape index: {}]  }
   0x1   :  { %6219 = sst [smem:[#allocation24_spill]] %s6198_s0 }
   0x2   :  { %6220 = sst [smem:[#allocation25_spill]] %s6214_s16 }
   0x3   :  { %21 = vsyncpa [#allocation4], 0 }
   0x4   :  { %22 = vsyncpa [#allocation7], 0 }
   0x5   :  { %23 = vsyncpa [#allocation10], 0 }
   0x6   :  { %24 = vsyncpa [#allocation13], 0 }
   0x7   :  { %25 = vsyncpa [#allocation16], 0 }
   0x8   :  { %26 = vsyncpa [#allocation5], 0  ;;  %s5341_s21 = smov [#allocation6]   ;;  %s5131_s25 = scalar_lea.hbm %s6199_s1, 32 }
   0x9   :  { %s44_s22 = sshll.u32 %s5341_s21, 4  ;;  %p5132_p0 = scmp.ne.s32.totalorder %s6199_s1, %s5131_s25  ;;  %s45_s22 = int_to_ptr.vmem [resolvable:$true] %s44_s22 }
   0xa   :  { %p5135_p1 = scmp.lt.u32.totalorder %s5131_s25, %s6199_s1 }
   0xc   :  { %p5137_p2 = pnand %p5135_p1, %p5132_p0 }
   0xe   :  { %5140 = shalt.err (!%p5137_p2)
}
   0xf   :  { %s5141_s30 = scalar_lea.vmem %s45_s22, 32  ;;  %p5146_p4 = scmp.lt.s32.totalorder %s45_s22, %s45_s22 }
  0x10   :  { %p5142_p3 = scmp.ne.s32.totalorder %s45_s22, %s5141_s30  ;;  %p5147_p5 = scmp.lt.s32.totalorder %s5141_s30, %s5141_s30 }
  0x12   :  { %p5148_p6 = por %p5147_p5, %p5146_p4 }
  0x14   :  { %p5149_p7 = pnand %p5148_p6, %p5142_p3 }
  0x16   :  { %5152 = shalt.err (!%p5149_p7)
}
  0x17   :  { %s5342_s0 = smov 16   ;;  %s5343_s17 = smov 1  }
  0x18   :  { %50 = dma.hbm_to_vmem [thread:$0]  %s6199_s1, 32, %s45_s22, [#allocation7], %s5342_s0, %s5342_s0, %s5343_s17  }
  0x19   :  { %s5344_s20 = smov [#allocation9]   ;;  %s5345_s23 = smov [#allocation12]  }
  0x1a   :  { %s67_s21 = sshll.u32 %s5344_s20, 4  ;;  %s90_s24 = sshll.u32 %s5345_s23, 4  ;;  %s68_s21 = int_to_ptr.vmem [resolvable:$true] %s67_s21  ;;  %s91_s24 = int_to_ptr.vmem [resolvable:$true] %s90_s24 }
  0x1b   :  { %s5153_s27 = scalar_lea.hbm %s6201_s3, 16 }
  0x1c   :  { %p5154_p8 = scmp.ne.s32.totalorder %s6201_s3, %s5153_s27  ;;  %p5157_p9 = scmp.lt.u32.totalorder %s5153_s27, %s6201_s3 }
  0x1e   :  { %p5159_p10 = pnand %p5157_p9, %p5154_p8 }
  0x20   :  { %5162 = shalt.err (!%p5159_p10)
}
  0x21   :  { %s5163_s1 = scalar_lea.vmem %s68_s21, 16  ;;  %s5167_s22 = scalar_lea.vmem %s68_s21, 32 }
  0x22   :  { %p5164_p11 = scmp.ne.s32.totalorder %s68_s21, %s5163_s1  ;;  %p5168_p12 = scmp.lt.s32.totalorder %s68_s21, %s68_s21 }
  0x23   :  { %p5169_p13 = scmp.lt.s32.totalorder %s5167_s22, %s5163_s1 }
  0x25   :  { %p5170_p0 = por %p5169_p13, %p5168_p12 }
  0x27   :  { %p5171_p1 = pnand %p5170_p0, %p5164_p11 }
  0x29   :  { %5174 = shalt.err (!%p5171_p1)
}
  0x2a   :  { %70 = dma.hbm_to_vmem [thread:$0]  %s6201_s3, 16, %s68_s21, [#allocation10]  }
  0x2b   :  { %s5175_s16 = scalar_lea.hbm %s6204_s6, 2048 }
  0x2c   :  { %p5176_p2 = scmp.ne.s32.totalorder %s6204_s6, %s5175_s16  ;;  %p5179_p3 = scmp.lt.u32.totalorder %s5175_s16, %s6204_s6 }
  0x2e   :  { %p5181_p4 = pnand %p5179_p3, %p5176_p2 }
  0x30   :  { %5184 = shalt.err (!%p5181_p4)
}
  0x31   :  { %s5185_s28 = scalar_lea.vmem %s91_s24, 2048  ;;  %p5190_p6 = scmp.lt.s32.totalorder %s91_s24, %s91_s24 }
  0x32   :  { %p5186_p5 = scmp.ne.s32.totalorder %s91_s24, %s5185_s28  ;;  %p5191_p7 = scmp.lt.s32.totalorder %s5185_s28, %s5185_s28 }
  0x34   :  { %p5192_p8 = por %p5191_p7, %p5190_p6 }
  0x36   :  { %p5193_p9 = pnand %p5192_p8, %p5186_p5 }
  0x38   :  { %5196 = shalt.err (!%p5193_p9)
}
  0x39   :  { %s6217_s3 = smov 64   ;;  %s5347_s21 = smov 4  }
  0x3a   :  { %96 = dma.hbm_to_vmem [thread:$0]  %s6204_s6, 2048, %s91_s24, [#allocation13], %s6217_s3, %s6217_s3, %s5347_s21  }
  0x3b   :  { %s5348_s1 = smov [#allocation3]   ;;  %s6221_s19 = sld [smem:[#allocation24_spill]] }
  0x3c   :  { %s32_s22 = sshll.u32 %s5348_s1, 4  ;;  %s33_s22 = int_to_ptr.vmem [resolvable:$true] %s32_s22 }
  0x41   :  { %s5197_s20 = scalar_lea.hbm %s6221_s19, 512 }
  0x42   :  { %p5198_p10 = scmp.ne.s32.totalorder %s6221_s19, %s5197_s20  ;;  %p5201_p11 = scmp.lt.u32.totalorder %s5197_s20, %s6221_s19 }
  0x44   :  { %p5203_p12 = pnand %p5201_p11, %p5198_p10 }
  0x46   :  { %5206 = shalt.err (!%p5203_p12)
}
  0x47   :  { %s5207_s27 = scalar_lea.vmem %s33_s22, 512  ;;  %p5212_p0 = scmp.lt.s32.totalorder %s33_s22, %s33_s22 }
  0x48   :  { %p5208_p13 = scmp.ne.s32.totalorder %s33_s22, %s5207_s27  ;;  %p5213_p1 = scmp.lt.s32.totalorder %s5207_s27, %s5207_s27 }
  0x4a   :  { %p5214_p2 = por %p5213_p1, %p5212_p0 }
  0x4c   :  { %p5215_p3 = pnand %p5214_p2, %p5208_p13 }
  0x4e   :  { %5218 = shalt.err (!%p5215_p3)
}
  0x4f   :  { %s5349_s6 = smov 128   ;;  %s5350_s24 = smov 8  }
  0x50   :  { %38 = dma.hbm_to_vmem [thread:$0]  %s6221_s19, 512, %s33_s22, [#allocation4], %s5349_s6, %s5349_s6, %s5350_s24  }
  0x51   :  { %s5351_s30 = smov [#allocation8]   ;;  %s5352_s17 = smov [#allocation11]  }
  0x52   :  { %s57_s1 = sshll.u32 %s5351_s30, 4  ;;  %s76_s18 = sshll.u32 %s5352_s17, 4  ;;  %s58_s1 = int_to_ptr.vmem [resolvable:$true] %s57_s1  ;;  %s5503_s18 = int_to_ptr.vmem [resolvable:$true] %s76_s18 }
  0x53   :  { %s5219_s23 = scalar_lea.hbm %s6200_s2, 16 }
  0x54   :  { %p5220_p4 = scmp.ne.s32.totalorder %s6200_s2, %s5219_s23  ;;  %p5223_p5 = scmp.lt.u32.totalorder %s5219_s23, %s6200_s2 }
  0x56   :  { %p5225_p6 = pnand %p5223_p5, %p5220_p4 }
  0x58   :  { %5228 = shalt.err (!%p5225_p6)
}
  0x59   :  { %s5229_s22 = scalar_lea.vmem %s58_s1, 16  ;;  %s5233_s19 = scalar_lea.vmem %s58_s1, 32 }
  0x5a   :  { %p5230_p7 = scmp.ne.s32.totalorder %s58_s1, %s5229_s22  ;;  %p5234_p8 = scmp.lt.s32.totalorder %s58_s1, %s58_s1 }
  0x5b   :  { %p5235_p9 = scmp.lt.s32.totalorder %s5233_s19, %s5229_s22 }
  0x5d   :  { %p5236_p10 = por %p5235_p9, %p5234_p8 }
  0x5f   :  { %p5237_p11 = pnand %p5236_p10, %p5230_p7 }
  0x61   :  { %5240 = shalt.err (!%p5237_p11)
}
  0x62   :  { %60 = dma.hbm_to_vmem [thread:$0]  %s6200_s2, 16, %s58_s1, [#allocation7]  }
  0x63   :  { %s5241_s20 = scalar_lea.hbm %s6202_s4, 6144 }
  0x64   :  { %p5242_p12 = scmp.ne.s32.totalorder %s6202_s4, %s5241_s20  ;;  %p5245_p13 = scmp.lt.u32.totalorder %s5241_s20, %s6202_s4 }
  0x66   :  { %p5247_p0 = pnand %p5245_p13, %p5242_p12 }
  0x68   :  { %5250 = shalt.err (!%p5247_p0)
}
  0x69   :  { %s5251_s26 = scalar_lea.vmem %s5503_s18, 6144  ;;  %p5256_p2 = scmp.lt.s32.totalorder %s5503_s18, %s5503_s18 }
  0x6a   :  { %p5252_p1 = scmp.ne.s32.totalorder %s5503_s18, %s5251_s26  ;;  %p5257_p3 = scmp.lt.s32.totalorder %s5251_s26, %s5251_s26 }
  0x6c   :  { %p5258_p4 = por %p5257_p3, %p5256_p2 }
  0x6e   :  { %p5259_p5 = pnand %p5258_p4, %p5252_p1 }
  0x70   :  { %5262 = shalt.err (!%p5259_p5)
}
  0x71   :  { %s5353_s2 = smov 192   ;;  %s5354_s1 = smov 12  }
  0x72   :  { %82 = dma.hbm_to_vmem [thread:$0]  %s6202_s4, 6144, %s5503_s18, [#allocation10], %s5353_s2, %s5353_s2, %s5354_s1  }
  0x73   :  { %s5355_s19 = smov [#allocation14]   ;;  %s5356_s29 = smov [#allocation15]  }
  0x74   :  { %s108_s28 = sshll.u32 %s5355_s19, 4  ;;  %s122_s30 = sshll.u32 %s5356_s29, 4  ;;  %s109_s28 = int_to_ptr.vmem [resolvable:$true] %s108_s28  ;;  %s123_s30 = int_to_ptr.vmem [resolvable:$true] %s122_s30 }
  0x75   :  { %s5263_s3 = scalar_lea.hbm %s6208_s10, 8192 }
  0x76   :  { %p5264_p6 = scmp.ne.s32.totalorder %s6208_s10, %s5263_s3  ;;  %p5267_p7 = scmp.lt.u32.totalorder %s5263_s3, %s6208_s10 }
  0x78   :  { %p5269_p8 = pnand %p5267_p7, %p5264_p6 }
  0x7a   :  { %5272 = shalt.err (!%p5269_p8)
}
  0x7b   :  { %s5273_s4 = scalar_lea.vmem %s109_s28, 8192  ;;  %p5278_p10 = scmp.lt.s32.totalorder %s109_s28, %s109_s28 }
  0x7c   :  { %p5274_p9 = scmp.ne.s32.totalorder %s109_s28, %s5273_s4  ;;  %p5279_p11 = scmp.lt.s32.totalorder %s5273_s4, %s5273_s4 }
  0x7e   :  { %p5280_p12 = por %p5279_p11, %p5278_p10 }
  0x80   :  { %p5281_p13 = pnand %p5280_p12, %p5274_p9 }
  0x82   :  { %5284 = shalt.err (!%p5281_p13)
}
  0x83   :  { %s5357_s18 = smov 256   ;;  %s5285_s19 = scalar_lea.hbm %s6210_s12, 8192 }
  0x84   :  { %114 = dma.hbm_to_vmem [thread:$0]  %s6208_s10, 8192, %s109_s28, [#allocation13], %s5357_s18, %s5357_s18, %s5342_s0  }
  0x85   :  { %p5286_p0 = scmp.ne.s32.totalorder %s6210_s12, %s5285_s19  ;;  %p5289_p1 = scmp.lt.u32.totalorder %s5285_s19, %s6210_s12 }
  0x87   :  { %p5291_p2 = pnand %p5289_p1, %p5286_p0 }
  0x89   :  { %5294 = shalt.err (!%p5291_p2)
}
  0x8a   :  { %s5295_s16 = scalar_lea.vmem %s123_s30, 8192  ;;  %p5300_p4 = scmp.lt.s32.totalorder %s123_s30, %s123_s30 }
  0x8b   :  { %p5296_p3 = scmp.ne.s32.totalorder %s123_s30, %s5295_s16  ;;  %p5301_p5 = scmp.lt.s32.totalorder %s5295_s16, %s5295_s16 }
  0x8d   :  { %p5302_p6 = por %p5301_p5, %p5300_p4 }
  0x8f   :  { %p5303_p7 = pnand %p5302_p6, %p5296_p3 }
  0x91   :  { %5306 = shalt.err (!%p5303_p7)
}
  0x92   :  { %s6222_s10 = smov 64  }
  0x93   :  { %128 = dma.hbm_to_vmem [thread:$0]  %s6210_s12, 8192, %s123_s30, [#allocation16], %s6222_s10, %s6222_s10, %s5347_s21  }
  0x94   :  { %5329 = dma.done.wait [#allocation4], 512  }
  0x95   :  { %5330 = vsyncadd [#allocation4], 4294966784 }
  0x96   :  { %5331 = dma.done.wait [#allocation7], 48  }
  0x97   :  { %5332 = vsyncadd [#allocation7], 4294967248 }
  0x98   :  { %5333 = dma.done.wait [#allocation10], 6160  }
  0x99   :  { %5334 = vsyncadd [#allocation10], 4294961136 }
  0x9a   :  { %5335 = dma.done.wait [#allocation13], 10240  }
  0x9b   :  { %5336 = vsyncadd [#allocation13], 4294957056 }
  0x9c   :  { %5337 = dma.done.wait [#allocation16], 8192  }
  0x9d   :  { %5338 = vsyncadd [#allocation16], 4294959104  ;;  %v160_v0 = vld [vmem:[#allocation3] sm:$0xff]  ;;  %v161_v1 = vld [vmem:[#allocation3 + $0x8] sm:$0xff]  ;;  %v5358_v30 = vmov 0   ;;  %v5359_v62 = vmov 0.0  }
  0x9e   :  { %166 = vadd.xlane.f32.xlu0 %v160_v0  ;;  %v162_v2 = vld [vmem:[#allocation3 + $0x10] sm:$0xff]  ;;  %v163_v17 = vld [vmem:[#allocation3 + $0x18] sm:$0xff]  ;;  %442 = vmatprep.mubr.bf16.mxu0 %v5358_v30  ;;  %v4108_v48 = vld [vmem:[#allocation8] ss:$0 sm:$0xff]  ;;  %vm5360_vm0 = vmmov 0   ;;  %vm516_vm1 = vcmask 523264  }
  0x9f   :  { %v4723_v3 = vld [vmem:[#allocation11 + $0x4] ss:$12 sps:$4 sm:$0xff]   ;;  %v4725_v4 = vld [vmem:[#allocation11] ss:$12 sps:$4 sm:$0xff]   ;;  %v4726_v5 = vld [vmem:[#allocation11 + $0x1c] ss:$12 sps:$4 sm:$0xff]  }
  0xa0   :  { %410 = vmatprep.subr.bf16.mxu0 %v4723_v3  ;;  %v4728_v19 = vld [vmem:[#allocation11 + $0x18] ss:$12 sps:$4 sm:$0xff]   ;;  %v4729_v20 = vld [vmem:[#allocation11 + $0x34] ss:$12 sps:$4 sm:$0xff]   ;;  %v4731_v21 = vld [vmem:[#allocation11 + $0x30] ss:$12 sps:$4 sm:$0xff]  }
  0xa1   :  { %411 = vmatpush1.bf16.msra.mxu0 %v4725_v4  ;;  %v4732_v22 = vld [vmem:[#allocation11 + $0x4c] ss:$12 sps:$4 sm:$0xff]   ;;  %v4734_v23 = vld [vmem:[#allocation11 + $0x48] ss:$12 sps:$4 sm:$0xff]   ;;  %v4735_v24 = vld [vmem:[#allocation11 + $0x64] ss:$12 sps:$4 sm:$0xff]  }
  0xa2   :  { %168 = vadd.xlane.f32.xlu0 %v161_v1  ;;  %412 = vmatprep.subr.bf16.mxu0 %v4726_v5  ;;  %v4737_v25 = vld [vmem:[#allocation11 + $0x60] ss:$12 sps:$4 sm:$0xff]   ;;  %v4738_v26 = vld [vmem:[#allocation11 + $0x7c] ss:$12 sps:$4 sm:$0xff]   ;;  %v4740_v27 = vld [vmem:[#allocation11 + $0x78] ss:$12 sps:$4 sm:$0xff]  }
  0xa3   :  { %v4741_v28 = vld [vmem:[#allocation11 + $0x94] ss:$12 sps:$4 sm:$0xff]   ;;  %v4743_v29 = vld [vmem:[#allocation11 + $0x90] ss:$12 sps:$4 sm:$0xff]   ;;  %v4744_v31 = vld [vmem:[#allocation11 + $0xac] ss:$12 sps:$4 sm:$0xff]  }
  0xa4   :  { %v4746_v32 = vld [vmem:[#allocation11 + $0xa8] ss:$12 sps:$4 sm:$0xff]   ;;  %v4748_v34 = vld [vmem:[#allocation11 + $0x20] ss:$12 sps:$4 sm:$0xff]   ;;  %v4749_v35 = vld [vmem:[#allocation11 + $0x38] ss:$12 sps:$4 sm:$0xff]  }
  0xa5   :  { %413 = vmatpush1.bf16.msra.mxu0 %v4728_v19  ;;  %v4747_v33 = vld [vmem:[#allocation11 + $0x8] ss:$12 sps:$4 sm:$0xff]   ;;  %v4109_v52 = vld [vmem:[#allocation9] ss:$0 sm:$0xff]  ;;  %v4752_v59 = vld [vmem:[#allocation11 + $0x80] ss:$12 sps:$4 sm:$0xff]  }
  0xa6   :  { %170 = vadd.xlane.f32.xlu0 %v162_v2  ;;  %414 = vmatprep.subr.bf16.mxu0 %v4729_v20  ;;  %v4750_v57 = vld [vmem:[#allocation11 + $0x50] ss:$12 sps:$4 sm:$0xff]   ;;  %v4751_v58 = vld [vmem:[#allocation11 + $0x68] ss:$12 sps:$4 sm:$0xff]   ;;  %v4753_v60 = vld [vmem:[#allocation11 + $0x98] ss:$12 sps:$4 sm:$0xff]  }
  0xa7   :  { %4526 = vmatprep.subr.bf16.mxu1 %v4747_v33  ;;  %v4754_v61 = vld [vmem:[#allocation11 + $0xb0] ss:$12 sps:$4 sm:$0xff]   ;;  %vm574_vm2 = vcmask 130048   ;;  %vm780_vm3 = vcmask 1048064  }
  0xa8   :  { %4527 = vmatpush3.bf16.msra.mxu1 %v4747_v33 }
  0xa9   :  { %415 = vmatpush1.bf16.msra.mxu0 %v4731_v21  ;;  %4528 = vmatprep.subr.bf16.mxu1 %v4748_v34 }
  0xaa   :  { %416 = vmatprep.subr.bf16.mxu0 %v4732_v22 }
  0xac   :  { %4529 = vmatpush3.bf16.msra.mxu1 %v4748_v34 }
  0xad   :  { %417 = vmatpush1.bf16.msra.mxu0 %v4734_v23  ;;  %4530 = vmatprep.subr.bf16.mxu1 %v4749_v35 }
  0xae   :  { %418 = vmatprep.subr.bf16.mxu0 %v4735_v24 }
  0xb0   :  { %4531 = vmatpush3.bf16.msra.mxu1 %v4749_v35 }
  0xb1   :  { %419 = vmatpush1.bf16.msra.mxu0 %v4737_v25  ;;  %4532 = vmatprep.subr.bf16.mxu1 %v4750_v57 }
  0xb2   :  { %420 = vmatprep.subr.bf16.mxu0 %v4738_v26 }
  0xb4   :  { %4533 = vmatpush3.bf16.msra.mxu1 %v4750_v57 }
  0xb5   :  { %421 = vmatpush1.bf16.msra.mxu0 %v4740_v27  ;;  %4534 = vmatprep.subr.bf16.mxu1 %v4751_v58 }
  0xb6   :  { %422 = vmatprep.subr.bf16.mxu0 %v4741_v28 }
  0xb8   :  { %4535 = vmatpush3.bf16.msra.mxu1 %v4751_v58  ;;  %v4135_v58 = vld [vmem:[#allocation6] ss:$0 sm:$0xff] }
  0xb9   :  { %423 = vmatpush1.bf16.msra.mxu0 %v4743_v29  ;;  %4536 = vmatprep.subr.bf16.mxu1 %v4752_v59 }
  0xba   :  { %424 = vmatprep.subr.bf16.mxu0 %v4744_v31 }
  0xbc   :  { %4537 = vmatpush3.bf16.msra.mxu1 %v4752_v59 }
  0xbd   :  { %425 = vmatpush1.bf16.msra.mxu0 %v4746_v32  ;;  %4538 = vmatprep.subr.bf16.mxu1 %v4753_v60 }
  0xbe   :  { %4576 = vmatprep.subr.bf16.mxu0 %v5359_v62 }
  0xc0   :  { %4539 = vmatpush3.bf16.msra.mxu1 %v4753_v60 }
  0xc1   :  { %4540 = vmatprep.subr.bf16.mxu1 %v4754_v61 }
  0xc4   :  { %4541 = vmatpush3.bf16.msra.mxu1 %v4754_v61 }
  0xc5   :  { %4546 = vmatprep.subr.bf16.mxu1 %v5359_v62 }
 0x12b   :  { %v167_v6 = vpop.xlane.xlu0 %166 }
 0x12c   :  { %v175_v7 = vmul.f32 0.0078125, %v167_v6 }
 0x12e   :  { %v5562_v8 = vsub.f32 %v160_v0, %v175_v7 }
 0x12f   :  { %v169_v9 = vpop.xlane.xlu0 %168 }
 0x130   :  { %v176_v10 = vmul.f32 0.0078125, %v169_v9  ;;  %v183_v11 = vmul.f32 %v5562_v8, %v5562_v8 }
 0x132   :  { %v5566_v12 = vsub.f32 %v161_v1, %v176_v10  ;;  %187 = vadd.xlane.f32.xlu1 %v183_v11 }
 0x133   :  { %v171_v13 = vpop.xlane.xlu0 %170 }
 0x134   :  { %v184_v14 = vmul.f32 %v5566_v12, %v5566_v12  ;;  %v177_v15 = vmul.f32 0.0078125, %v171_v13 }
 0x136   :  { %189 = vadd.xlane.f32.xlu1 %v184_v14  ;;  %v5570_v16 = vsub.f32 %v162_v2, %v177_v15  ;;  %v267_v14 = vlaneseq }
 0x138   :  { %v185_v18 = vmul.f32 %v5570_v16, %v5570_v16  ;;  %v5597_v15 = vshrl.u32 %v267_v14, 7 }
 0x13a   :  { %172 = vadd.xlane.f32.xlu1 %v163_v17  ;;  %191 = vadd.xlane.f32.xlu0 %v185_v18  ;;  %v5606_v18 = vsub.s32 1, %v5597_v15  ;;  %v5616_v33 = vsub.s32 2, %v5597_v15 }
 0x1bf   :  { %v188_v36 = vpop.xlane.xlu1 %187 }
 0x1c0   :  { %v195_v37 = vmul.f32 0.0078125, %v188_v36 }
 0x1c2   :  { %v199_v38 = vadd.f32 1e-12, %v195_v37 }
 0x1c3   :  { %v190_v39 = vpop.xlane.xlu1 %189 }
 0x1c4   :  { %4963 = vrsqrt.f32 %v199_v38  ;;  %v196_v40 = vmul.f32 0.0078125, %v190_v39 }
 0x1c6   :  { %v200_v41 = vadd.f32 1e-12, %v196_v40 }
 0x1c7   :  { %v173_v42 = vpop.xlane.xlu1 %172  ;;  %v192_v63 = vpop.xlane.xlu0 %191 }
 0x1c8   :  { %4965 = vrsqrt.f32 %v200_v41  ;;  %v178_v43 = vmul.f32 0.0078125, %v173_v42  ;;  %v197_v0 = vmul.f32 0.0078125, %v192_v63 }
 0x1ca   :  { %v182_v44 = vsub.f32 %v163_v17, %v178_v43  ;;  %v201_v1 = vadd.f32 1e-12, %v197_v0  ;;  %v265_v17 = vld [vmem:[%s6203_s5] sm:$0x7] }
 0x1cb   :  { %v274_v21 = vrot.slane %v265_v17, %v5606_v18  ;;  %v278_v34 = vrot.slane %v265_v17, %v5616_v33 }
 0x1cc   :  { %v186_v45 = vmul.f32 %v182_v44, %v182_v44  ;;  %4967 = vrsqrt.f32 %v201_v1 }
 0x1ce   :  { %v4964_v46 = vpop.eup %4963  ;;  %193 = vadd.xlane.f32.xlu1 %v186_v45 }
 0x1cf   :  { %v207_v47 = vmul.f32 %v4964_v46, %v5562_v8 }
 0x1d1   :  { %v217_v51 = vmul.f32 %v4108_v48, %v207_v47 }
 0x1d2   :  { %v4966_v49 = vpop.eup %4965 }
 0x1d3   :  { %v208_v50 = vmul.f32 %v4966_v49, %v5566_v12  ;;  %v5577_v54 = vadd.f32 %v4109_v52, %v217_v51 }
 0x1d5   :  { %v218_v53 = vmul.f32 %v4108_v48, %v208_v50 }
 0x1d6   :  { %v4968_v5 = vpop.eup %4967 }
 0x1d7   :  { %v5579_v55 = vadd.f32 %v4109_v52, %v218_v53  ;;  %v209_v6 = vmul.f32 %v4968_v5, %v5570_v16  ;;  %v5600_v16 = vsub.s32 0, %v5597_v15 }
 0x1d9   :  { %v231_v56 = vpack.c.bf16 %v5579_v55, %v5577_v54  ;;  %v219_v9 = vmul.f32 %v4108_v48, %v209_v6  ;;  %v270_v19 = vrot.slane %v265_v17, %v5600_v16 }
 0x1db   :  { %443 = vmatmul.mubr.bf16.vlgmr.msra.gmra.mrb[0].mxu0 %v231_v56  ;;  %4542 = vmatprep.mubr.bf16.mxu1 %v231_v56  ;;  %v5587_v11 = vadd.f32 %v4109_v52, %v219_v9 }
 0x1dc   :  { %452 = vmatprep.mubr.bf16.mxu0 %v5358_v30 }
 0x25b   :  { %v194_v2 = vpop.xlane.xlu1 %193 }
 0x25c   :  { %v198_v3 = vmul.f32 0.0078125, %v194_v2 }
 0x25e   :  { %v202_v4 = vadd.f32 1e-12, %v198_v3 }
 0x260   :  { %4969 = vrsqrt.f32 %v202_v4 }
 0x26a   :  { %v4970_v7 = vpop.eup %4969 }
 0x26b   :  { %v210_v8 = vmul.f32 %v4970_v7, %v182_v44 }
 0x26d   :  { %v220_v10 = vmul.f32 %v4108_v48, %v210_v8 }
 0x26f   :  { %v5589_v12 = vadd.f32 %v4109_v52, %v220_v10 }
 0x271   :  { %v232_v13 = vpack.c.bf16 %v5589_v12, %v5587_v11 }
 0x273   :  { %453 = vmatmul.mubr.bf16.gmra.mrb[4].mxu0 %v232_v13  ;;  %4543 = vmatmul.mubr.bf16.vlgmr.msra.gmra.mrb[0].mxu1 %v232_v13 }
 0x274   :  { %4548 = vmatprep.mubr.msk.bf16.mxu1 %vm5360_vm0, %v5359_v62  ;;  %4578 = vmatprep.mubr.msk.bf16.mxu0 %vm5360_vm0, %v5359_v62 }
 0x2ae   :  { %v444_v20 = vpop.f32.mrb[0].mxu0 }
 0x2af   :  { %v446_v22 = vpop.f32.mrb[1].mxu0  ;;  %v445_v24 = vadd.f32 %v444_v20, %v270_v19 }
 0x2b0   :  { %v448_v23 = vpop.f32.mrb[2].mxu0  ;;  %v447_v27 = vadd.f32 %v446_v22, %v274_v21 }
 0x2b1   :  { %v449_v25 = vadd.f32 %v448_v23, %v270_v19  ;;  %v450_v26 = vpop.f32.mrb[3].mxu0 }
 0x2b2   :  { %v451_v28 = vadd.f32 %v450_v26, %v274_v21 }
 0x2b3   :  { %v513_v29 = vpack.c.bf16 %v449_v25, %v445_v24 }
 0x2b4   :  { %v514_v31 = vpack.c.bf16 %v451_v28, %v447_v27 }
 0x2b6   :  { %v521_v32 = vsel %vm516_vm1, %v514_v31, 0 }
 0x2b7   :  { %4547 = vmatpush3.bf16.xpose.msra.mxu1 %v521_v32 }
 0x2b8   :  { %4552 = vmatprep.subr.bf16.mxu1 %v5359_v62 }
 0x2be   :  { %4549 = vmatmul.mubr.msk.bf16.vlgmr.msra.gmra.mrb[4].mxu1 %vm516_vm1, %v513_v29 }
 0x2bf   :  { %4554 = vmatprep.mubr.msk.bf16.mxu1 %vm5360_vm0, %v5359_v62 }
 0x346   :  { %v454_v35 = vpop.f32.mrb[4].mxu0  ;;  %v4544_v36 = vpop.f32.mrb[0].mxu1 }
 0x347   :  { %v456_v37 = vpop.f32.mrb[5].mxu0  ;;  %v497_v38 = vpop.f32.mrb[1].mxu1  ;;  %v455_v41 = vadd.f32 %v454_v35, %v270_v19  ;;  %v506_v42 = vadd.f32 %v4544_v36, %v278_v34 }
 0x348   :  { %v458_v39 = vpop.f32.mrb[6].mxu0  ;;  %v4545_v40 = vpop.f32.mrb[2].mxu1  ;;  %v457_v47 = vadd.f32 %v456_v37, %v274_v21  ;;  %v498_v48 = vadd.f32 %v497_v38, %v278_v34 }
 0x349   :  { %v459_v43 = vadd.f32 %v458_v39, %v270_v19  ;;  %v509_v44 = vadd.f32 %v4545_v40, %v278_v34  ;;  %v460_v45 = vpop.f32.mrb[7].mxu0  ;;  %v500_v46 = vpop.f32.mrb[3].mxu1 }
 0x34a   :  { %v461_v49 = vadd.f32 %v460_v45, %v274_v21  ;;  %v501_v50 = vadd.f32 %v500_v46, %v278_v34 }
 0x34b   :  { %v5619_v51 = vpack.c.bf16 %v509_v44, %v506_v42  ;;  %v5621_v52 = vpack.c.bf16 %v459_v43, %v455_v41 }
 0x34c   :  { %v5623_v53 = vpack.c.bf16 %v501_v50, %v498_v48  ;;  %v5625_v56 = vpack.c.bf16 %v461_v49, %v457_v47 }
 0x34d   :  { %4577 = vmatpush3.bf16.msra.mxu0 %v5619_v51 }
 0x34e   :  { %4553 = vmatpush3.bf16.msra.mxu1 %v5623_v53  ;;  %4588 = vmatprep.subr.bf16.mxu0 %v5359_v62 }
 0x34f   :  { %4558 = vmatprep.subr.bf16.mxu1 %v5359_v62 }
 0x391   :  { %v557_v57 = vpop.f32.mrb[4].mxu1 }
 0x392   :  { %v564_v59 = vmul.f32 0.125, %v557_v57  ;;  %v4550_v60 = vpop.f32.mrb[5].mxu1 }
 0x393   :  { %v560_v61 = vpop.f32.mrb[6].mxu1 }
 0x394   :  { %v565_v63 = vmul.f32 0.125, %v560_v61  ;;  %v4551_v0 = vpop.f32.mrb[7].mxu1  ;;  %v572_v1 = vadd.f32 %v4135_v58, %v564_v59 }
 0x396   :  { %v575_v2 = vsel %vm574_vm2, %v572_v1, -inf  ;;  %v573_v3 = vadd.f32 %v4135_v58, %v565_v63 }
 0x397   :  { %576 = vmax.xlane.f32.xlu0 %v575_v2 }
 0x398   :  { %v578_v4 = vsel %vm574_vm2, %v573_v3, -inf }
 0x399   :  { %579 = vmax.xlane.f32.xlu1 %v578_v4 }
 0x424   :  { %v577_v5 = vpop.xlane.xlu0 %576 }
 0x425   :  { %v581_v6 = vsub.f32 %v572_v1, %v577_v5 }
 0x426   :  { %v580_v7 = vpop.xlane.xlu1 %579 }
 0x427   :  { %v583_v8 = vmul.f32 1.442695, %v581_v6  ;;  %v582_v9 = vsub.f32 %v573_v3, %v580_v7 }
 0x429   :  { %4971 = vpow2.f32 %v583_v8  ;;  %v585_v10 = vmul.f32 1.442695, %v582_v9 }
 0x42b   :  { %4973 = vpow2.f32 %v585_v10 }
 0x433   :  { %v4972_v13 = vpop.eup %4971 }
 0x434   :  { %v587_v14 = vsel %vm574_vm2, %v4972_v13, 0.0 }
 0x435   :  { %v4974_v17 = vpop.eup %4973  ;;  %588 = vadd.xlane.f32.xlu0 %v587_v14 }
 0x436   :  { %v590_v19 = vsel %vm574_vm2, %v4974_v17, 0.0 }
 0x437   :  { %591 = vadd.xlane.f32.xlu1 %v590_v19  ;;  %v4140_v19 = vld [vmem:[#allocation6 + $0x1] ss:$0 sm:$0xff] }
 0x448   :  { %645 = vrot.lane.b32.xlu1 %v513_v29, %s6222_s10 }
 0x44b   :  { %648 = vrot.lane.b32.xlu0 %v514_v31, %s6222_s10 }
 0x4c2   :  { %v589_v20 = vpop.xlane.xlu0 %588 }
 0x4c3   :  { %4975 = vrcp.f32 %v589_v20 }
 0x4c4   :  { %v592_v21 = vpop.xlane.xlu1 %591 }
 0x4c5   :  { %4977 = vrcp.f32 %v592_v21 }
 0x4c6   :  { %v649_v26 = vpop.permute.xlu0 %648 }
 0x4c7   :  { %v654_v28 = vsel %vm516_vm1, %v649_v26, 0 }
 0x4c8   :  { %v646_v29 = vpop.permute.xlu1 %645 }
 0x4cd   :  { %v4976_v22 = vpop.eup %4975 }
 0x4ce   :  { %v595_v24 = vmul.f32 %v4976_v22, %v4972_v13 }
 0x4cf   :  { %v4978_v23 = vpop.eup %4977 }
 0x4d0   :  { %v596_v25 = vmul.f32 %v4978_v23, %v4974_v17 }
 0x4d2   :  { %v597_v27 = vpack.c.bf16 %v596_v25, %v595_v24 }
 0x4d4   :  { %4555 = vmatmul.mubr.msk.bf16.vlgmr.msra.gmra.mrb[8].mxu1 %vm574_vm2, %v597_v27 }
 0x4d5   :  { %4559 = vmatpush3.bf16.xpose.msra.mxu1 %v654_v28  ;;  %4560 = vmatprep.mubr.msk.bf16.mxu1 %vm5360_vm0, %v5359_v62 }
 0x4d6   :  { %4564 = vmatprep.subr.bf16.mxu1 %v5359_v62 }
 0x4dc   :  { %4561 = vmatmul.mubr.msk.bf16.vlgmr.msra.gmra.mrb[12].mxu1 %vm516_vm1, %v646_v29 }
 0x4dd   :  { %4566 = vmatprep.mubr.msk.bf16.mxu1 %vm5360_vm0, %v5359_v62 }
 0x5a7   :  { %v635_v31 = vpop.f32.mrb[8].mxu1 }
 0x5a8   :  { %642 = vst.msk [vmem:[#allocation2] sm:$0xff] %vm516_vm1, %v635_v31  ;;  %v4556_v32 = vpop.f32.mrb[9].mxu1 }
 0x5a9   :  { %v638_v34 = vpop.f32.mrb[10].mxu1 }
 0x5aa   :  { %643 = vst.msk [vmem:[#allocation2 + $0x8] sm:$0xff] %vm516_vm1, %v638_v34  ;;  %v4557_v35 = vpop.f32.mrb[11].mxu1 }
 0x5af   :  { %v690_v36 = vpop.f32.mrb[12].mxu1 }
 0x5b0   :  { %v697_v37 = vmul.f32 0.125, %v690_v36  ;;  %v4562_v38 = vpop.f32.mrb[13].mxu1 }
 0x5b1   :  { %v693_v39 = vpop.f32.mrb[14].mxu1 }
 0x5b2   :  { %v698_v40 = vmul.f32 0.125, %v693_v39  ;;  %v4563_v41 = vpop.f32.mrb[15].mxu1  ;;  %v699_v42 = vadd.f32 %v4135_v58, %v697_v37 }
 0x5b4   :  { %v701_v43 = vsel %vm574_vm2, %v699_v42, -inf  ;;  %v700_v44 = vadd.f32 %v4135_v58, %v698_v40 }
 0x5b5   :  { %702 = vmax.xlane.f32.xlu1 %v701_v43 }
 0x5b6   :  { %v704_v45 = vsel %vm574_vm2, %v700_v44, -inf }
 0x5b7   :  { %705 = vmax.xlane.f32.xlu0 %v704_v45 }
 0x642   :  { %v703_v46 = vpop.xlane.xlu1 %702 }
 0x643   :  { %v707_v47 = vsub.f32 %v699_v42, %v703_v46 }
 0x644   :  { %v706_v48 = vpop.xlane.xlu0 %705 }
 0x645   :  { %v709_v49 = vmul.f32 1.442695, %v707_v47  ;;  %v708_v50 = vsub.f32 %v700_v44, %v706_v48 }
 0x647   :  { %4979 = vpow2.f32 %v709_v49  ;;  %v711_v57 = vmul.f32 1.442695, %v708_v50 }
 0x649   :  { %4981 = vpow2.f32 %v711_v57 }
 0x651   :  { %v4980_v59 = vpop.eup %4979 }
 0x652   :  { %v713_v60 = vsel %vm574_vm2, %v4980_v59, 0.0 }
 0x653   :  { %v4982_v61 = vpop.eup %4981  ;;  %714 = vadd.xlane.f32.xlu0 %v713_v60 }
 0x654   :  { %v716_v63 = vsel %vm574_vm2, %v4982_v61, 0.0 }
 0x655   :  { %717 = vadd.xlane.f32.xlu1 %v716_v63 }
 0x666   :  { %918 = vrot.lane.b32.xlu1 %v5625_v56, %s6222_s10 }
 0x669   :  { %725 = vrot.lane.b32.xlu0 %v5623_v53, %s6222_s10  ;;  %v792_v53 = vsel %vm516_vm1, %v5625_v56, 0 }
 0x66a   :  { %915 = vrot.lane.b32.xlu1 %v5621_v52, %s6222_s10 }
 0x6e0   :  { %v715_v58 = vpop.xlane.xlu0 %714 }
 0x6e1   :  { %4983 = vrcp.f32 %v715_v58 }
 0x6e2   :  { %v718_v0 = vpop.xlane.xlu1 %717 }
 0x6e3   :  { %4985 = vrcp.f32 %v718_v0 }
 0x6e4   :  { %v726_v1 = vpop.permute.xlu0 %725 }
 0x6e5   :  { %4565 = vmatpush3.bf16.msra.mxu1 %v726_v1 }
 0x6e6   :  { %4570 = vmatprep.subr.bf16.mxu1 %v5359_v62  ;;  %v919_v7 = vpop.permute.xlu1 %918 }
 0x6e7   :  { %v924_v8 = vsel %vm516_vm1, %v919_v7, 0 }
 0x6ea   :  { %v916_v9 = vpop.permute.xlu1 %915 }
 0x6eb   :  { %v4984_v2 = vpop.eup %4983 }
 0x6ec   :  { %v721_v4 = vmul.f32 %v4984_v2, %v4980_v59 }
 0x6ed   :  { %v4986_v3 = vpop.eup %4985 }
 0x6ee   :  { %v722_v5 = vmul.f32 %v4986_v3, %v4982_v61 }
 0x6f0   :  { %v723_v6 = vpack.c.bf16 %v722_v5, %v721_v4 }
 0x6f2   :  { %4567 = vmatmul.mubr.msk.bf16.vlgmr.msra.gmra.mrb[16].mxu1 %vm574_vm2, %v723_v6 }
 0x6f3   :  { %4571 = vmatpush3.bf16.xpose.msra.mxu1 %v792_v53  ;;  %4572 = vmatprep.mubr.msk.bf16.mxu1 %vm5360_vm0, %v5359_v62 }
 0x6f4   :  { %4582 = vmatprep.subr.bf16.mxu1 %v5359_v62 }
 0x6fa   :  { %4573 = vmatmul.mubr.msk.bf16.vlgmr.msra.gmra.mrb[20].mxu1 %vm516_vm1, %v5621_v52 }
 0x6fb   :  { %4583 = vmatpush3.bf16.xpose.msra.mxu1 %v924_v8  ;;  %4584 = vmatprep.mubr.msk.bf16.mxu1 %vm5360_vm0, %v5359_v62 }
 0x702   :  { %4585 = vmatmul.mubr.msk.bf16.vlgmr.msra.gmra.mrb[24].mxu1 %vm516_vm1, %v916_v9 }
 0x7c5   :  { %v765_v56 = vpop.f32.mrb[16].mxu1 }
 0x7c6   :  { %v4568_v10 = vpop.f32.mrb[17].mxu1 }
 0x7c7   :  { %v768_v13 = vpop.f32.mrb[18].mxu1 }
 0x7c8   :  { %v4569_v14 = vpop.f32.mrb[19].mxu1 }
 0x7cd   :  { %v828_v17 = vpop.f32.mrb[20].mxu1 }
 0x7ce   :  { %v835_v20 = vmul.f32 0.125, %v828_v17  ;;  %v4574_v21 = vpop.f32.mrb[21].mxu1 }
 0x7cf   :  { %v831_v22 = vpop.f32.mrb[22].mxu1 }
 0x7d0   :  { %v836_v23 = vmul.f32 0.125, %v831_v22  ;;  %v4575_v24 = vpop.f32.mrb[23].mxu1  ;;  %v843_v25 = vadd.f32 %v4140_v19, %v835_v20 }
 0x7d2   :  { %v845_v52 = vsel %vm574_vm2, %v843_v25, -inf  ;;  %v844_v26 = vadd.f32 %v4140_v19, %v836_v23 }
 0x7d3   :  { %846 = vmax.xlane.f32.xlu1 %v845_v52  ;;  %v4756_v52 = vld [vmem:[#allocation12 + $0x8] sm:$0xff]  }
 0x7d4   :  { %v848_v27 = vsel %vm574_vm2, %v844_v26, -inf }
 0x7d5   :  { %849 = vmax.xlane.f32.xlu0 %v848_v27  ;;  %v960_v28 = vpop.f32.mrb[24].mxu1  ;;  %v4758_v27 = vld [vmem:[#allocation12 + $0x18] sm:$0xff]  }
 0x7d6   :  { %v967_v29 = vmul.f32 0.125, %v960_v28  ;;  %v4586_v31 = vpop.f32.mrb[25].mxu1  ;;  %v4759_v28 = vld [vmem:[#allocation12 + $0x20] sm:$0xff]  }
 0x7d7   :  { %v963_v32 = vpop.f32.mrb[26].mxu1 }
 0x7d8   :  { %v968_v34 = vmul.f32 0.125, %v963_v32  ;;  %v4587_v35 = vpop.f32.mrb[27].mxu1  ;;  %v969_v36 = vadd.f32 %v4140_v19, %v967_v29  ;;  %v4760_v29 = vld [vmem:[#allocation12 + $0x28] sm:$0xff]  }
 0x7d9   :  { %v4761_v35 = vld [vmem:[#allocation12 + $0x30] sm:$0xff]  }
 0x7da   :  { %v971_v37 = vsel %vm574_vm2, %v969_v36, -inf  ;;  %v970_v38 = vadd.f32 %v4140_v19, %v968_v34 }
 0x7db   :  { %972 = vmax.xlane.f32.xlu0 %v971_v37 }
 0x7dc   :  { %v974_v39 = vsel %vm574_vm2, %v970_v38, -inf }
 0x7df   :  { %975 = vmax.xlane.f32.xlu0 %v974_v39 }
 0x860   :  { %v847_v40 = vpop.xlane.xlu1 %846 }
 0x861   :  { %v851_v41 = vsub.f32 %v843_v25, %v847_v40  ;;  %v4755_v25 = vld [vmem:[#allocation12] sm:$0xff]  }
 0x862   :  { %v850_v42 = vpop.xlane.xlu0 %849  ;;  %4594 = vmatprep.subr.bf16.mxu1 %v4755_v25 }
 0x863   :  { %v853_v43 = vmul.f32 1.442695, %v851_v41  ;;  %v852_v44 = vsub.f32 %v844_v26, %v850_v42  ;;  %4595 = vmatpush3.bf16.msra.mxu1 %v4755_v25  ;;  %v4757_v26 = vld [vmem:[#allocation12 + $0x10] sm:$0xff]   ;;  %v4778_v25 = vld [vmem:[#allocation14 + $0x48] ss:$16 sps:$4 sm:$0xff]  }
 0x864   :  { %4596 = vmatprep.subr.bf16.mxu1 %v4756_v52 }
 0x865   :  { %4987 = vpow2.f32 %v853_v43  ;;  %v855_v45 = vmul.f32 1.442695, %v852_v44 }
 0x867   :  { %4989 = vpow2.f32 %v855_v45  ;;  %4597 = vmatpush3.bf16.msra.mxu1 %v4756_v52  ;;  %v4783_v52 = vld [vmem:[#allocation14 + $0x64] ss:$16 sps:$4 sm:$0xff]  }
 0x868   :  { %v973_v46 = vpop.xlane.xlu0 %972  ;;  %4598 = vmatprep.subr.bf16.mxu1 %v4757_v26 }
 0x869   :  { %v977_v47 = vsub.f32 %v969_v36, %v973_v46  ;;  %v4762_v36 = vld [vmem:[#allocation12 + $0x38] sm:$0xff]  }
 0x86b   :  { %v979_v48 = vmul.f32 1.442695, %v977_v47  ;;  %4599 = vmatpush3.bf16.msra.mxu1 %v4757_v26  ;;  %v4144_v47 = vld [vmem:[%s6205_s7] ss:$0 sm:$0xff]  ;;  %v4786_v26 = vld [vmem:[#allocation14 + $0x6c] ss:$16 sps:$4 sm:$0xff]  }
 0x86c   :  { %v976_v49 = vpop.xlane.xlu0 %975  ;;  %4600 = vmatprep.subr.bf16.mxu1 %v4758_v27 }
 0x86d   :  { %4991 = vpow2.f32 %v979_v48  ;;  %v978_v50 = vsub.f32 %v970_v38, %v976_v49 }
 0x86f   :  { %v4988_v57 = vpop.eup %4987  ;;  %v981_v59 = vmul.f32 1.442695, %v978_v50  ;;  %4601 = vmatpush3.bf16.msra.mxu1 %v4758_v27  ;;  %v4781_v27 = vld [vmem:[#allocation14 + $0x60] ss:$16 sps:$4 sm:$0xff]  }
 0x870   :  { %v857_v60 = vsel %vm574_vm2, %v4988_v57, 0.0  ;;  %4602 = vmatprep.subr.bf16.mxu1 %v4759_v28 }
 0x871   :  { %v4990_v61 = vpop.eup %4989  ;;  %4993 = vpow2.f32 %v981_v59  ;;  %858 = vadd.xlane.f32.xlu1 %v857_v60 }
 0x872   :  { %v860_v63 = vsel %vm574_vm2, %v4990_v61, 0.0 }
 0x873   :  { %861 = vadd.xlane.f32.xlu0 %v860_v63  ;;  %4603 = vmatpush3.bf16.msra.mxu1 %v4759_v28  ;;  %v4784_v28 = vld [vmem:[#allocation14 + $0x68] ss:$16 sps:$4 sm:$0xff]  }
 0x874   :  { %4604 = vmatprep.subr.bf16.mxu1 %v4760_v29 }
 0x877   :  { %v4992_v58 = vpop.eup %4991  ;;  %4605 = vmatpush3.bf16.msra.mxu1 %v4760_v29  ;;  %v4789_v29 = vld [vmem:[#allocation14 + $0x84] ss:$16 sps:$4 sm:$0xff]  }
 0x878   :  { %v983_v0 = vsel %vm574_vm2, %v4992_v58, 0.0  ;;  %4606 = vmatprep.subr.bf16.mxu1 %v4761_v35 }
 0x879   :  { %984 = vadd.xlane.f32.xlu1 %v983_v0 }
 0x87b   :  { %v4994_v1 = vpop.eup %4993  ;;  %4607 = vmatpush3.bf16.msra.mxu1 %v4761_v35  ;;  %v4798_v35 = vld [vmem:[#allocation14 + $0xac] ss:$16 sps:$4 sm:$0xff]  }
 0x87c   :  { %v986_v2 = vsel %vm574_vm2, %v4994_v1, 0.0  ;;  %4608 = vmatprep.subr.bf16.mxu1 %v4762_v36 }
 0x87d   :  { %987 = vadd.xlane.f32.xlu0 %v986_v2  ;;  %v4763_v2 = vld [vmem:[#allocation14] ss:$16 sps:$4 sm:$0xff]  }
 0x87f   :  { %4609 = vmatpush3.bf16.msra.mxu1 %v4762_v36  ;;  %v4793_v36 = vld [vmem:[#allocation14 + $0xa0] ss:$16 sps:$4 sm:$0xff]  }
 0x88a   :  { %995 = vrot.lane.b32.xlu1 %v5619_v51, %s6222_s10 }
 0x88e   :  { %776 = vrot.lane.b32.xlu1 %v768_v13, %s6222_s10 }
 0x893   :  { %774 = vrot.lane.b32.xlu0 %v765_v56, %s6222_s10 }
 0x8fe   :  { %v859_v3 = vpop.xlane.xlu1 %858 }
 0x8ff   :  { %4995 = vrcp.f32 %v859_v3  ;;  %v4765_v3 = vld [vmem:[#allocation14 + $0x4] ss:$16 sps:$4 sm:$0xff]  }
 0x900   :  { %v862_v4 = vpop.xlane.xlu0 %861 }
 0x901   :  { %4997 = vrcp.f32 %v862_v4  ;;  %v4766_v4 = vld [vmem:[#allocation14 + $0x8] ss:$16 sps:$4 sm:$0xff]  }
 0x906   :  { %v985_v5 = vpop.xlane.xlu1 %984 }
 0x907   :  { %4999 = vrcp.f32 %v985_v5  ;;  %v4768_v5 = vld [vmem:[#allocation14 + $0xc] ss:$16 sps:$4 sm:$0xff]  }
 0x908   :  { %1517 = vmatprep.subr.bf16.mxu1 %v4768_v5  ;;  %v5730_v5 = vld [vmem:[%s6207_s9] ss:$0 sm:$0xff] }
 0x909   :  { %v4996_v6 = vpop.eup %4995 }
 0x90a   :  { %v996_v53 = vpop.permute.xlu1 %995  ;;  %v988_v7 = vpop.xlane.xlu0 %987  ;;  %v865_v9 = vmul.f32 %v4996_v6, %v4988_v57  ;;  %v4771_v6 = vld [vmem:[#allocation14 + $0x24] ss:$16 sps:$4 sm:$0xff]  }
 0x90b   :  { %v4998_v8 = vpop.eup %4997  ;;  %5001 = vrcp.f32 %v988_v7  ;;  %v4769_v7 = vld [vmem:[#allocation14 + $0x20] ss:$16 sps:$4 sm:$0xff]  }
 0x90c   :  { %v866_v10 = vmul.f32 %v4998_v8, %v4990_v61 }
 0x90e   :  { %v867_v14 = vpack.c.bf16 %v866_v10, %v865_v9  ;;  %v777_v51 = vpop.permute.xlu1 %776  ;;  %v775_v17 = vpop.permute.xlu0 %774 }
 0x90f   :  { %782 = vst.msk [vmem:[#allocation2 + $0x8] sm:$0xff] %vm780_vm3, %v777_v51  ;;  %781 = vst.msk [vmem:[#allocation2] sm:$0xff] %vm780_vm3, %v775_v17 }
 0x910   :  { %4579 = vmatmul.mubr.msk.bf16.vlgmr.msra.gmra.mrb[8].mxu0 %vm574_vm2, %v867_v14 }
 0x911   :  { %4589 = vmatpush3.bf16.msra.mxu0 %v996_v53  ;;  %4590 = vmatprep.mubr.msk.bf16.mxu0 %vm5360_vm0, %v5359_v62  ;;  %v5000_v56 = vpop.eup %4999  ;;  %v4774_v53 = vld [vmem:[#allocation14 + $0x2c] ss:$16 sps:$4 sm:$0xff]  }
 0x912   :  { %v991_v19 = vmul.f32 %v5000_v56, %v4992_v58  ;;  %1464 = vmatprep.subr.bf16.mxu0 %v4765_v3 }
 0x915   :  { %v5002_v13 = vpop.eup %5001 }
 0x916   :  { %v992_v20 = vmul.f32 %v5002_v13, %v4994_v1  ;;  %v1052_v21 = vld [vmem:[#allocation2] sm:$0xff]  ;;  %v1053_v22 = vld [vmem:[#allocation2 + $0x8] sm:$0xff] }
 0x917   :  { %v1056_v23 = vpack.c.bf16 %v1053_v22, %v1052_v21  ;;  %v4777_v22 = vld [vmem:[#allocation14 + $0x44] ss:$16 sps:$4 sm:$0xff]  }
 0x918   :  { %v993_v24 = vpack.c.bf16 %v992_v20, %v991_v19 }
 0x919   :  { %4610 = vmatprep.mubr.bf16.mxu1 %v1056_v23  ;;  %v4780_v23 = vld [vmem:[#allocation14 + $0x4c] ss:$16 sps:$4 sm:$0xff]  }
 0x91a   :  { %4591 = vmatmul.mubr.msk.bf16.vlgmr.msra.gmra.mrb[12].mxu0 %vm574_vm2, %v993_v24  ;;  %v4775_v24 = vld [vmem:[#allocation14 + $0x40] ss:$16 sps:$4 sm:$0xff]  }
 0x91b   :  { %1496 = vmatprep.mubr.bf16.mxu0 %v5358_v30  ;;  %1465 = vmatpush1.bf16.msra.mxu0 %v4763_v2 }
 0x91c   :  { %1466 = vmatprep.subr.bf16.mxu0 %v4771_v6 }
 0x91f   :  { %1467 = vmatpush1.bf16.msra.mxu0 %v4769_v7 }
 0x920   :  { %1468 = vmatprep.subr.bf16.mxu0 %v4777_v22  ;;  %v4823_v22 = vld [vmem:[#allocation15 + $0x58] sm:$0xff]  }
 0x923   :  { %1469 = vmatpush1.bf16.msra.mxu0 %v4775_v24  ;;  %v4825_v24 = vld [vmem:[#allocation15 + $0x18] sm:$0xff]  }
 0x924   :  { %1470 = vmatprep.subr.bf16.mxu0 %v4783_v52  ;;  %v4827_v52 = vld [vmem:[#allocation15 + $0x60] sm:$0xff]  }
 0x927   :  { %1471 = vmatpush1.bf16.msra.mxu0 %v4781_v27  ;;  %v4829_v27 = vld [vmem:[#allocation15 + $0x20] sm:$0xff]  }
 0x928   :  { %1472 = vmatprep.subr.bf16.mxu0 %v4789_v29  ;;  %v4831_v29 = vld [vmem:[#allocation15 + $0x68] sm:$0xff]  }
 0x9e3   :  { %v905_v31 = vpop.f32.mrb[8].mxu0 }
 0x9e4   :  { %912 = vst.msk [vmem:[#allocation2 + $0x10] sm:$0xff] %vm516_vm1, %v905_v31  ;;  %v4580_v32 = vpop.f32.mrb[9].mxu0  ;;  %v4792_v31 = vld [vmem:[#allocation14 + $0x8c] ss:$16 sps:$4 sm:$0xff]  }
 0x9e5   :  { %v908_v34 = vpop.f32.mrb[10].mxu0  ;;  %v4790_v32 = vld [vmem:[#allocation14 + $0x88] ss:$16 sps:$4 sm:$0xff]  }
 0x9e6   :  { %913 = vst.msk [vmem:[#allocation2 + $0x18] sm:$0xff] %vm516_vm1, %v908_v34  ;;  %v4581_v37 = vpop.f32.mrb[11].mxu0  ;;  %v4795_v34 = vld [vmem:[#allocation14 + $0xa4] ss:$16 sps:$4 sm:$0xff]  }
 0x9e7   :  { %v4796_v37 = vld [vmem:[#allocation14 + $0xa8] ss:$16 sps:$4 sm:$0xff]  }
 0x9ed   :  { %v1035_v38 = vpop.f32.mrb[12].mxu0 }
 0x9ee   :  { %1044 = vrot.lane.b32.xlu1 %v1035_v38, %s6222_s10  ;;  %v4592_v39 = vpop.f32.mrb[13].mxu0  ;;  %v4801_v38 = vld [vmem:[#allocation14 + $0xc4] ss:$16 sps:$4 sm:$0xff]  }
 0x9ef   :  { %v1038_v40 = vpop.f32.mrb[14].mxu0  ;;  %v4804_v39 = vld [vmem:[#allocation14 + $0xcc] ss:$16 sps:$4 sm:$0xff]  }
 0x9f0   :  { %v4593_v41 = vpop.f32.mrb[15].mxu0 }
 0x9f1   :  { %v4802_v41 = vld [vmem:[#allocation14 + $0xc8] ss:$16 sps:$4 sm:$0xff]  }
 0x9f2   :  { %1046 = vrot.lane.b32.xlu1 %v1038_v40, %s6222_s10  ;;  %v4799_v40 = vld [vmem:[#allocation14 + $0xc0] ss:$16 sps:$4 sm:$0xff]  }
 0xa60   :  { %v1045_v42 = vpop.permute.xlu1 %1044 }
 0xa61   :  { %1050 = vst.msk [vmem:[#allocation2 + $0x10] sm:$0xff] %vm780_vm3, %v1045_v42  ;;  %v4807_v42 = vld [vmem:[#allocation14 + $0xe4] ss:$16 sps:$4 sm:$0xff]  }
 0xa64   :  { %v1047_v43 = vpop.permute.xlu1 %1046 }
 0xa65   :  { %1051 = vst.msk [vmem:[#allocation2 + $0x18] sm:$0xff] %vm780_vm3, %v1047_v43  ;;  %v4810_v43 = vld [vmem:[#allocation14 + $0xec] ss:$16 sps:$4 sm:$0xff]  }
 0xa68   :  { %v1054_v44 = vld [vmem:[#allocation2 + $0x10] sm:$0xff] }
 0xa6c   :  { %v1055_v45 = vld [vmem:[#allocation2 + $0x18] sm:$0xff] }
 0xa6d   :  { %v1057_v46 = vpack.c.bf16 %v1055_v45, %v1054_v44  ;;  %v4805_v44 = vld [vmem:[#allocation14 + $0xe0] ss:$16 sps:$4 sm:$0xff]   ;;  %v4808_v45 = vld [vmem:[#allocation14 + $0xe8] ss:$16 sps:$4 sm:$0xff]  }
 0xa6f   :  { %4611 = vmatmul.mubr.bf16.vlgmr.msra.gmra.mrb[28].mxu1 %v1057_v46 }
 0xa70   :  { %1549 = vmatprep.mubr.bf16.mxu1 %v5358_v30  ;;  %1518 = vmatpush1.bf16.msra.mxu1 %v4766_v4 }
 0xa71   :  { %1519 = vmatprep.subr.bf16.mxu1 %v4774_v53 }
 0xb42   :  { %v4612_v48 = vpop.f32.mrb[28].mxu1 }
 0xb43   :  { %v1172_v49 = vadd.f32 %v4612_v48, %v4144_v47  ;;  %v1163_v50 = vpop.f32.mrb[29].mxu1 }
 0xb44   :  { %v1164_v57 = vadd.f32 %v4144_v47, %v1163_v50  ;;  %v4613_v59 = vpop.f32.mrb[30].mxu1 }
 0xb45   :  { %v1166_v60 = vpop.f32.mrb[31].mxu1  ;;  %v1175_v58 = vadd.f32 %v4613_v59, %v4144_v47  ;;  %v1180_v21 = vadd.f32 %v1172_v49, %v5587_v11  ;;  %v4787_v11 = vld [vmem:[#allocation14 + $0x80] ss:$16 sps:$4 sm:$0xff]  }
 0xb46   :  { %v1167_v61 = vadd.f32 %v4144_v47, %v1166_v60  ;;  %v1178_v63 = vadd.f32 %v1164_v57, %v5577_v54  ;;  %v4772_v54 = vld [vmem:[#allocation14 + $0x28] ss:$16 sps:$4 sm:$0xff]   ;;  %1473 = vmatpush1.bf16.msra.mxu0 %v4787_v11 }
 0xb47   :  { %v1181_v1 = vadd.f32 %v1175_v58, %v5589_v12  ;;  %1520 = vmatpush1.bf16.msra.mxu1 %v4772_v54  ;;  %1474 = vmatprep.subr.bf16.mxu0 %v4795_v34  ;;  %v4833_v11 = vld [vmem:[#allocation15 + $0x28] sm:$0xff]   ;;  %v4835_v34 = vld [vmem:[#allocation15 + $0x70] sm:$0xff]  }
 0xb48   :  { %1184 = vadd.xlane.f32.xlu0 %v1178_v63  ;;  %v1179_v0 = vadd.f32 %v1167_v61, %v5579_v55  ;;  %1521 = vmatprep.subr.bf16.mxu1 %v4780_v23  ;;  %v4824_v23 = vld [vmem:[#allocation15 + $0xd8] sm:$0xff]  }
 0xb4a   :  { %1186 = vadd.xlane.f32.xlu1 %v1179_v0  ;;  %1475 = vmatpush1.bf16.msra.mxu0 %v4793_v36  ;;  %v4837_v36 = vld [vmem:[#allocation15 + $0x30] sm:$0xff]  }
 0xb4b   :  { %1522 = vmatpush1.bf16.msra.mxu1 %v4778_v25  ;;  %1476 = vmatprep.subr.bf16.mxu0 %v4801_v38  ;;  %v4826_v25 = vld [vmem:[#allocation15 + $0x98] sm:$0xff]  }
 0xb4c   :  { %1523 = vmatprep.subr.bf16.mxu1 %v4786_v26  ;;  %v4828_v26 = vld [vmem:[#allocation15 + $0xe0] sm:$0xff]   ;;  %v4839_v38 = vld [vmem:[#allocation15 + $0x78] sm:$0xff]  }
 0xb4e   :  { %1190 = vadd.xlane.f32.xlu1 %v1181_v1  ;;  %1477 = vmatpush1.bf16.msra.mxu0 %v4799_v40  ;;  %v4841_v40 = vld [vmem:[#allocation15 + $0x38] sm:$0xff]  }
 0xb4f   :  { %1524 = vmatpush1.bf16.msra.mxu1 %v4784_v28  ;;  %1478 = vmatprep.subr.bf16.mxu0 %v4807_v42  ;;  %v4830_v28 = vld [vmem:[#allocation15 + $0xa0] sm:$0xff]  }
 0xb50   :  { %1525 = vmatprep.subr.bf16.mxu1 %v4792_v31  ;;  %v4832_v31 = vld [vmem:[#allocation15 + $0xe8] sm:$0xff]  }
 0xb52   :  { %1479 = vmatpush1.bf16.msra.mxu0 %v4805_v44 }
 0xb53   :  { %1526 = vmatpush1.bf16.msra.mxu1 %v4790_v32  ;;  %v4834_v32 = vld [vmem:[#allocation15 + $0xa8] sm:$0xff]  }
 0xb54   :  { %1527 = vmatprep.subr.bf16.mxu1 %v4798_v35  ;;  %v4836_v35 = vld [vmem:[#allocation15 + $0xf0] sm:$0xff]  }
 0xb57   :  { %1528 = vmatpush1.bf16.msra.mxu1 %v4796_v37  ;;  %v4838_v37 = vld [vmem:[#allocation15 + $0xb0] sm:$0xff]  }
 0xb58   :  { %1529 = vmatprep.subr.bf16.mxu1 %v4804_v39  ;;  %v4840_v39 = vld [vmem:[#allocation15 + $0xf8] sm:$0xff]  }
 0xb5b   :  { %1530 = vmatpush1.bf16.msra.mxu1 %v4802_v41  ;;  %v4842_v41 = vld [vmem:[#allocation15 + $0xb8] sm:$0xff]  }
 0xb5c   :  { %1531 = vmatprep.subr.bf16.mxu1 %v4810_v43 }
 0xb5f   :  { %1532 = vmatpush1.bf16.msra.mxu1 %v4808_v45 }
 0xbd5   :  { %v1185_v55 = vpop.xlane.xlu0 %1184 }
 0xbd6   :  { %v1192_v8 = vmul.f32 0.0078125, %v1185_v55  ;;  %v4811_v55 = vld [vmem:[#allocation15 + $0x40] sm:$0xff]  }
 0xbd7   :  { %v1187_v12 = vpop.xlane.xlu1 %1186  ;;  %4378 = vmatprep.subr.bf16.mxu0 %v4811_v55 }
 0xbd8   :  { %v5702_v9 = vsub.f32 %v1178_v63, %v1192_v8  ;;  %v1193_v10 = vmul.f32 0.0078125, %v1187_v12  ;;  %v4812_v8 = vld [vmem:[#allocation15 + $0xc0] sm:$0xff]  }
 0xbd9   :  { %4406 = vmatprep.subr.bf16.mxu1 %v4812_v8  ;;  %v4813_v12 = vld [vmem:[#allocation15] sm:$0xff]  }
 0xbda   :  { %v5704_v14 = vsub.f32 %v1179_v0, %v1193_v10  ;;  %v1200_v51 = vmul.f32 %v5702_v9, %v5702_v9  ;;  %v4815_v10 = vld [vmem:[#allocation15 + $0x48] sm:$0xff]  }
 0xbdb   :  { %v1191_v17 = vpop.xlane.xlu1 %1190 }
 0xbdc   :  { %v1195_v56 = vmul.f32 0.0078125, %v1191_v17  ;;  %1204 = vadd.xlane.f32.xlu0 %v1200_v51  ;;  %v1201_v19 = vmul.f32 %v5704_v14, %v5704_v14  ;;  %v4817_v51 = vld [vmem:[#allocation15 + $0x8] sm:$0xff]  }
 0xbdd   :  { %v4818_v17 = vld [vmem:[#allocation15 + $0x88] sm:$0xff]  }
 0xbde   :  { %v5708_v13 = vsub.f32 %v1181_v1, %v1195_v56  ;;  %v5723_v1 = vld [vmem:[%s6206_s8] ss:$0 sm:$0xff]  ;;  %v4819_v56 = vld [vmem:[#allocation15 + $0x50] sm:$0xff]  }
 0xbe0   :  { %1206 = vadd.xlane.f32.xlu0 %v1201_v19  ;;  %v1203_v20 = vmul.f32 %v5708_v13, %v5708_v13  ;;  %v4820_v19 = vld [vmem:[#allocation15 + $0xd0] sm:$0xff]  }
 0xbe2   :  { %1210 = vadd.xlane.f32.xlu1 %v1203_v20  ;;  %v4821_v20 = vld [vmem:[#allocation15 + $0x10] sm:$0xff]  }
 0xbe4   :  { %1188 = vadd.xlane.f32.xlu0 %v1180_v21 }
 0xc69   :  { %v1205_v46 = vpop.xlane.xlu0 %1204 }
 0xc6a   :  { %v1212_v47 = vmul.f32 0.0078125, %v1205_v46 }
 0xc6c   :  { %v1216_v48 = vadd.f32 1e-12, %v1212_v47 }
 0xc6d   :  { %v1207_v49 = vpop.xlane.xlu0 %1206 }
 0xc6e   :  { %5003 = vrsqrt.f32 %v1216_v48  ;;  %v1213_v50 = vmul.f32 0.0078125, %v1207_v49 }
 0xc6f   :  { %v1211_v42 = vpop.xlane.xlu1 %1210 }
 0xc70   :  { %v1217_v57 = vadd.f32 1e-12, %v1213_v50  ;;  %v1215_v43 = vmul.f32 0.0078125, %v1211_v42 }
 0xc71   :  { %v1189_v59 = vpop.xlane.xlu0 %1188 }
 0xc72   :  { %5005 = vrsqrt.f32 %v1217_v57  ;;  %v1194_v60 = vmul.f32 0.0078125, %v1189_v59  ;;  %v1219_v44 = vadd.f32 1e-12, %v1215_v43 }
 0xc74   :  { %v5715_v61 = vsub.f32 %v1180_v21, %v1194_v60  ;;  %v4822_v21 = vld [vmem:[#allocation15 + $0x90] sm:$0xff]   ;;  %5007 = vrsqrt.f32 %v1219_v44 }
 0xc76   :  { %v1202_v63 = vmul.f32 %v5715_v61, %v5715_v61 }
 0xc78   :  { %v5004_v58 = vpop.eup %5003  ;;  %1208 = vadd.xlane.f32.xlu0 %v1202_v63 }
 0xc79   :  { %v1224_v0 = vmul.f32 %v5004_v58, %v5702_v9  ;;  %v4814_v9 = vld [vmem:[#allocation15 + $0x80] sm:$0xff]  }
 0xc7b   :  { %v1234_v4 = vmul.f32 %v5723_v1, %v1224_v0 }
 0xc7c   :  { %v5006_v2 = vpop.eup %5005 }
 0xc7d   :  { %v1225_v3 = vmul.f32 %v5006_v2, %v5704_v14  ;;  %v5734_v53 = vadd.f32 %v5730_v5, %v1234_v4  ;;  %v4816_v14 = vld [vmem:[#allocation15 + $0xc8] sm:$0xff]  }
 0xc7e   :  { %v5008_v48 = vpop.eup %5007 }
 0xc7f   :  { %v1235_v6 = vmul.f32 %v5723_v1, %v1225_v3  ;;  %v1227_v49 = vmul.f32 %v5008_v48, %v5708_v13  ;;  %v1282_v13 = vld [vmem:[%s6209_s11] sm:$0xf] }
 0xc80   :  { %v5760_v2 = vrot.slane %v1282_v13, %v5600_v16  ;;  %v5766_v3 = vrot.slane %v1282_v13, %v5606_v18 }
 0xc81   :  { %v5737_v7 = vadd.f32 %v5730_v5, %v1235_v6  ;;  %v1237_v59 = vmul.f32 %v5723_v1, %v1227_v49 }
 0xc83   :  { %v1248_v54 = vpack.c.bf16 %v5737_v7, %v5734_v53  ;;  %v5751_v58 = vadd.f32 %v5730_v5, %v1237_v59 }
 0xc85   :  { %1497 = vmatmul.mubr.bf16.vlgmr.msra.gmra.mrb[16].mxu0 %v1248_v54  ;;  %1550 = vmatmul.mubr.bf16.vlgmr.msra.gmra.mrb[32].mxu1 %v1248_v54 }
 0xc86   :  { %1506 = vmatprep.mubr.bf16.mxu0 %v5358_v30  ;;  %1559 = vmatprep.mubr.bf16.mxu1 %v5358_v30 }
 0xc87   :  { %4379 = vmatpush3.bf16.msra.mxu0 %v4813_v12  ;;  %4407 = vmatpush3.bf16.msra.mxu1 %v4814_v9 }
 0xc88   :  { %4380 = vmatprep.subr.bf16.mxu0 %v4815_v10  ;;  %4408 = vmatprep.subr.bf16.mxu1 %v4816_v14 }
 0xc8b   :  { %4381 = vmatpush3.bf16.msra.mxu0 %v4817_v51  ;;  %4409 = vmatpush3.bf16.msra.mxu1 %v4818_v17 }
 0xc8c   :  { %4382 = vmatprep.subr.bf16.mxu0 %v4819_v56  ;;  %4410 = vmatprep.subr.bf16.mxu1 %v4820_v19 }
 0xc8f   :  { %4383 = vmatpush3.bf16.msra.mxu0 %v4821_v20  ;;  %4411 = vmatpush3.bf16.msra.mxu1 %v4822_v21 }
 0xc90   :  { %4384 = vmatprep.subr.bf16.mxu0 %v4823_v22  ;;  %4412 = vmatprep.subr.bf16.mxu1 %v4824_v23 }
 0xc93   :  { %4385 = vmatpush3.bf16.msra.mxu0 %v4825_v24  ;;  %4413 = vmatpush3.bf16.msra.mxu1 %v4826_v25 }
 0xc94   :  { %4386 = vmatprep.subr.bf16.mxu0 %v4827_v52  ;;  %4414 = vmatprep.subr.bf16.mxu1 %v4828_v26 }
 0xc97   :  { %4387 = vmatpush3.bf16.msra.mxu0 %v4829_v27  ;;  %4415 = vmatpush3.bf16.msra.mxu1 %v4830_v28 }
 0xc98   :  { %4388 = vmatprep.subr.bf16.mxu0 %v4831_v29  ;;  %4416 = vmatprep.subr.bf16.mxu1 %v4832_v31 }
 0xc9b   :  { %4389 = vmatpush3.bf16.msra.mxu0 %v4833_v11  ;;  %4417 = vmatpush3.bf16.msra.mxu1 %v4834_v32 }
 0xc9c   :  { %4390 = vmatprep.subr.bf16.mxu0 %v4835_v34  ;;  %4418 = vmatprep.subr.bf16.mxu1 %v4836_v35 }
 0xc9f   :  { %4391 = vmatpush3.bf16.msra.mxu0 %v4837_v36  ;;  %4419 = vmatpush3.bf16.msra.mxu1 %v4838_v37 }
 0xca0   :  { %4392 = vmatprep.subr.bf16.mxu0 %v4839_v38  ;;  %4420 = vmatprep.subr.bf16.mxu1 %v4840_v39 }
 0xca3   :  { %4393 = vmatpush3.bf16.msra.mxu0 %v4841_v40  ;;  %4421 = vmatpush3.bf16.msra.mxu1 %v4842_v41 }
 0xd05   :  { %v1209_v45 = vpop.xlane.xlu0 %1208 }
 0xd06   :  { %v1214_v46 = vmul.f32 0.0078125, %v1209_v45 }
 0xd08   :  { %v1218_v47 = vadd.f32 1e-12, %v1214_v46 }
 0xd0a   :  { %5009 = vrsqrt.f32 %v1218_v47 }
 0xd14   :  { %v5010_v50 = vpop.eup %5009 }
 0xd15   :  { %v1226_v57 = vmul.f32 %v5010_v50, %v5715_v61  ;;  %v1298_v61 = vsub.s32 3, %v5597_v15 }
 0xd17   :  { %v1236_v60 = vmul.f32 %v5723_v1, %v1226_v57  ;;  %v5763_v1 = vrot.slane %v1282_v13, %v5616_v33  ;;  %v5770_v4 = vrot.slane %v1282_v13, %v1298_v61 }
 0xd19   :  { %v5748_v63 = vadd.f32 %v5730_v5, %v1236_v60 }
 0xd1b   :  { %v1249_v0 = vpack.c.bf16 %v5751_v58, %v5748_v63 }
 0xd1d   :  { %1507 = vmatmul.mubr.bf16.gmra.mrb[20].mxu0 %v1249_v0  ;;  %1560 = vmatmul.mubr.bf16.gmra.mrb[36].mxu1 %v1249_v0 }
 0xd58   :  { %v1498_v5 = vpop.f32.mrb[16].mxu0  ;;  %v1551_v6 = vpop.f32.mrb[32].mxu1 }
 0xd59   :  { %v5773_v54 = vadd.f32 %v1498_v5, %v5760_v2  ;;  %v5776_v55 = vadd.f32 %v1551_v6, %v5763_v1  ;;  %v1500_v8 = vpop.f32.mrb[17].mxu0  ;;  %v1553_v12 = vpop.f32.mrb[33].mxu1 }
 0xd5a   :  { %v5779_v9 = vadd.f32 %v1500_v8, %v5766_v3  ;;  %v5782_v10 = vadd.f32 %v1553_v12, %v5770_v4  ;;  %v1502_v14 = vpop.f32.mrb[18].mxu0  ;;  %v1555_v51 = vpop.f32.mrb[34].mxu1 }
 0xd5b   :  { %v1586_v17 = vmul.f32 0.044715, %v5773_v54  ;;  %v1588_v56 = vmul.f32 0.044715, %v5776_v55  ;;  %v1503_v21 = vadd.f32 %v1502_v14, %v5760_v2  ;;  %v1556_v22 = vadd.f32 %v1555_v51, %v5763_v1  ;;  %v1504_v23 = vpop.f32.mrb[19].mxu0  ;;  %v1557_v24 = vpop.f32.mrb[35].mxu1 }
 0xd5c   :  { %v1587_v19 = vmul.f32 0.044715, %v5779_v9  ;;  %v1589_v20 = vmul.f32 0.044715, %v5782_v10  ;;  %v1505_v26 = vadd.f32 %v1504_v23, %v5766_v3  ;;  %v5794_v27 = vadd.f32 %v1557_v24, %v5770_v4 }
 0xd5d   :  { %v1602_v25 = vmul.f32 %v1586_v17, %v5773_v54  ;;  %v1604_v52 = vmul.f32 %v1588_v56, %v5776_v55  ;;  %v1590_v31 = vmul.f32 0.044715, %v1503_v21  ;;  %v1592_v34 = vmul.f32 0.044715, %v1556_v22 }
 0xd5e   :  { %v1603_v28 = vmul.f32 %v1587_v19, %v5779_v9  ;;  %v1605_v29 = vmul.f32 %v1589_v20, %v5782_v10  ;;  %v1591_v37 = vmul.f32 0.044715, %v1505_v26  ;;  %v1593_v41 = vmul.f32 0.044715, %v5794_v27 }
 0xd5f   :  { %v1618_v11 = vmul.f32 %v1602_v25, %v5773_v54  ;;  %v1620_v32 = vmul.f32 %v1604_v52, %v5776_v55  ;;  %v1606_v36 = vmul.f32 %v1590_v31, %v1503_v21  ;;  %v1608_v40 = vmul.f32 %v1592_v34, %v1556_v22 }
 0xd60   :  { %v1619_v35 = vmul.f32 %v1603_v28, %v5779_v9  ;;  %v1621_v42 = vmul.f32 %v1605_v29, %v5782_v10  ;;  %v1607_v44 = vmul.f32 %v1591_v37, %v1505_v26  ;;  %v1609_v48 = vmul.f32 %v1593_v41, %v5794_v27 }
 0xd61   :  { %v1634_v38 = vadd.f32 %v1618_v11, %v5773_v54  ;;  %v1636_v39 = vadd.f32 %v1620_v32, %v5776_v55  ;;  %v1622_v43 = vmul.f32 %v1606_v36, %v1503_v21  ;;  %v1624_v47 = vmul.f32 %v1608_v40, %v1556_v22 }
 0xd62   :  { %v1623_v50 = vmul.f32 %v1607_v44, %v1505_v26  ;;  %v1635_v57 = vadd.f32 %v1619_v35, %v5779_v9  ;;  %v1625_v60 = vmul.f32 %v1609_v48, %v5794_v27  ;;  %v1637_v8 = vadd.f32 %v1621_v42, %v5782_v10 }
 0xd63   :  { %v1650_v45 = vmul.f32 0.7978846, %v1634_v38  ;;  %v1652_v46 = vmul.f32 0.7978846, %v1636_v39  ;;  %v1638_v49 = vadd.f32 %v1622_v43, %v1503_v21  ;;  %v1640_v59 = vadd.f32 %v1624_v47, %v1556_v22 }
 0xd64   :  { %v1639_v13 = vadd.f32 %v1623_v50, %v1505_v26  ;;  %v1651_v5 = vmul.f32 0.7978846, %v1635_v57  ;;  %v1641_v12 = vadd.f32 %v1625_v60, %v5794_v27  ;;  %v1653_v51 = vmul.f32 0.7978846, %v1637_v8 }
 0xd65   :  { %5011 = vtanh.f32 %v1650_v45  ;;  %v1654_v0 = vmul.f32 0.7978846, %v1638_v49  ;;  %v1656_v6 = vmul.f32 0.7978846, %v1640_v59  ;;  %v1570_v52 = vmul.f32 0.5, %v5773_v54 }
 0xd66   :  { %5013 = vtanh.f32 %v1652_v46  ;;  %v1655_v14 = vmul.f32 0.7978846, %v1639_v13  ;;  %v1657_v17 = vmul.f32 0.7978846, %v1641_v12  ;;  %v1574_v28 = vmul.f32 0.5, %v1503_v21 }
 0xd67   :  { %5015 = vtanh.f32 %v1654_v0  ;;  %v1572_v11 = vmul.f32 0.5, %v5776_v55  ;;  %v1576_v32 = vmul.f32 0.5, %v1556_v22  ;;  %v1571_v36 = vmul.f32 0.5, %v5779_v9 }
 0xd68   :  { %5017 = vtanh.f32 %v1656_v6  ;;  %v1575_v41 = vmul.f32 0.5, %v1505_v26  ;;  %v1573_v54 = vmul.f32 0.5, %v5782_v10  ;;  %v1577_v21 = vmul.f32 0.5, %v5794_v27 }
 0xd69   :  { %5019 = vtanh.f32 %v1651_v5 }
 0xd6a   :  { %5021 = vtanh.f32 %v1655_v14 }
 0xd6b   :  { %5023 = vtanh.f32 %v1653_v51 }
 0xd6c   :  { %5025 = vtanh.f32 %v1657_v17 }
 0xd6f   :  { %v5012_v56 = vpop.eup %5011 }
 0xd70   :  { %v5014_v19 = vpop.eup %5013  ;;  %v1682_v20 = vadd.f32 1.0, %v5012_v56 }
 0xd71   :  { %v5016_v23 = vpop.eup %5015  ;;  %v1684_v24 = vadd.f32 1.0, %v5014_v19 }
 0xd72   :  { %v5018_v25 = vpop.eup %5017  ;;  %v1686_v29 = vadd.f32 1.0, %v5016_v23  ;;  %v1698_v38 = vmul.f32 %v1682_v20, %v1570_v52 }
 0xd73   :  { %v5020_v31 = vpop.eup %5019  ;;  %v1688_v34 = vadd.f32 1.0, %v5018_v25  ;;  %v1700_v43 = vmul.f32 %v1684_v24, %v1572_v11 }
 0xd74   :  { %v5022_v35 = vpop.eup %5021  ;;  %v1683_v37 = vadd.f32 1.0, %v5020_v31  ;;  %v1702_v39 = vmul.f32 %v1686_v29, %v1574_v28 }
 0xd75   :  { %v5024_v40 = vpop.eup %5023  ;;  %v1687_v42 = vadd.f32 1.0, %v5022_v35  ;;  %v1704_v44 = vmul.f32 %v1688_v34, %v1576_v32 }
 0xd76   :  { %v5026_v45 = vpop.eup %5025  ;;  %v1685_v46 = vadd.f32 1.0, %v5024_v40  ;;  %v1714_v55 = vpack.c.bf16 %v1702_v39, %v1698_v38  ;;  %v1699_v22 = vmul.f32 %v1683_v37, %v1571_v36 }
 0xd77   :  { %v1703_v47 = vmul.f32 %v1687_v42, %v1575_v41  ;;  %v1689_v48 = vadd.f32 1.0, %v5026_v45  ;;  %v1716_v49 = vpack.c.bf16 %v1704_v44, %v1700_v43 }
 0xd78   :  { %v1701_v50 = vmul.f32 %v1685_v46, %v1573_v54 }
 0xd79   :  { %v1715_v9 = vpack.c.bf16 %v1703_v47, %v1699_v22  ;;  %v1705_v57 = vmul.f32 %v1689_v48, %v1577_v21 }
 0xd7b   :  { %2017 = vmatprep.mubr.bf16.mxu0 %v1715_v9  ;;  %v1717_v59 = vpack.c.bf16 %v1705_v57, %v1701_v50 }
 0xd7c   :  { %2018 = vmatmul.mubr.bf16.vlgmr.msra.gmra.mrb[24].mxu0 %v1714_v55 }
 0xd7d   :  { %2066 = vmatprep.mubr.bf16.mxu1 %v1717_v59 }
 0xd7e   :  { %2067 = vmatmul.mubr.bf16.vlgmr.msra.gmra.mrb[40].mxu1 %v1716_v49 }
 0xdf0   :  { %v1508_v26 = vpop.f32.mrb[20].mxu0  ;;  %v1561_v60 = vpop.f32.mrb[36].mxu1 }
 0xdf1   :  { %v5816_v10 = vadd.f32 %v1508_v26, %v5760_v2  ;;  %v5819_v27 = vadd.f32 %v1561_v60, %v5763_v1  ;;  %v1510_v0 = vpop.f32.mrb[21].mxu0  ;;  %v1563_v13 = vpop.f32.mrb[37].mxu1 }
 0xdf2   :  { %v5822_v5 = vadd.f32 %v1510_v0, %v5766_v3  ;;  %v5825_v6 = vadd.f32 %v1563_v13, %v5770_v4  ;;  %v1512_v8 = vpop.f32.mrb[22].mxu0  ;;  %v1565_v12 = vpop.f32.mrb[38].mxu1 }
 0xdf3   :  { %v1594_v14 = vmul.f32 0.044715, %v5816_v10  ;;  %v1596_v51 = vmul.f32 0.044715, %v5819_v27  ;;  %v5830_v17 = vadd.f32 %v1512_v8, %v5760_v2  ;;  %v5833_v56 = vadd.f32 %v1565_v12, %v5763_v1  ;;  %v1514_v19 = vpop.f32.mrb[23].mxu0  ;;  %v1567_v20 = vpop.f32.mrb[39].mxu1 }
 0xdf4   :  { %v1595_v23 = vmul.f32 0.044715, %v5822_v5  ;;  %v1597_v24 = vmul.f32 0.044715, %v5825_v6  ;;  %v1515_v25 = vadd.f32 %v1514_v19, %v5766_v3  ;;  %v1568_v52 = vadd.f32 %v1567_v20, %v5770_v4 }
 0xdf5   :  { %v1610_v28 = vmul.f32 %v1594_v14, %v5816_v10  ;;  %v1598_v29 = vmul.f32 0.044715, %v5830_v17  ;;  %v1600_v2 = vmul.f32 0.044715, %v5833_v56  ;;  %v1612_v35 = vmul.f32 %v1596_v51, %v5819_v27 }
 0xdf6   :  { %v1611_v31 = vmul.f32 %v1595_v23, %v5822_v5  ;;  %v1613_v1 = vmul.f32 %v1597_v24, %v5825_v6  ;;  %v1599_v11 = vmul.f32 0.044715, %v1515_v25  ;;  %v1601_v32 = vmul.f32 0.044715, %v1568_v52 }
 0xdf7   :  { %v1626_v34 = vmul.f32 %v1610_v28, %v5816_v10  ;;  %v1614_v3 = vmul.f32 %v1598_v29, %v5830_v17  ;;  %v1616_v4 = vmul.f32 %v1600_v2, %v5833_v56  ;;  %v1628_v44 = vmul.f32 %v1612_v35, %v5819_v27 }
 0xdf8   :  { %v1627_v36 = vmul.f32 %v1611_v31, %v5822_v5  ;;  %v1629_v37 = vmul.f32 %v1613_v1, %v5825_v6  ;;  %v1615_v38 = vmul.f32 %v1599_v11, %v1515_v25  ;;  %v1617_v39 = vmul.f32 %v1601_v32, %v1568_v52 }
 0xdf9   :  { %v1630_v40 = vmul.f32 %v1614_v3, %v5830_v17  ;;  %v1632_v45 = vmul.f32 %v1616_v4, %v5833_v56  ;;  %v1642_v22 = vadd.f32 %v1626_v34, %v5816_v10  ;;  %v1644_v59 = vadd.f32 %v1628_v44, %v5819_v27 }
 0xdfa   :  { %v1631_v41 = vmul.f32 %v1615_v38, %v1515_v25  ;;  %v1633_v42 = vmul.f32 %v1617_v39, %v1568_v52  ;;  %v1643_v43 = vadd.f32 %v1627_v36, %v5822_v5  ;;  %v1645_v54 = vadd.f32 %v1629_v37, %v5825_v6 }
 0xdfb   :  { %v1646_v48 = vadd.f32 %v1630_v40, %v5830_v17  ;;  %v1658_v50 = vmul.f32 0.7978846, %v1642_v22  ;;  %v1648_v26 = vadd.f32 %v1632_v45, %v5833_v56  ;;  %v1660_v60 = vmul.f32 0.7978846, %v1644_v59 }
 0xdfc   :  { %v1647_v21 = vadd.f32 %v1631_v41, %v1515_v25  ;;  %v1659_v46 = vmul.f32 0.7978846, %v1643_v43  ;;  %v1649_v55 = vadd.f32 %v1633_v42, %v1568_v52  ;;  %v1661_v47 = vmul.f32 0.7978846, %v1645_v54 }
 0xdfd   :  { %v1662_v57 = vmul.f32 0.7978846, %v1646_v48  ;;  %v1664_v0 = vmul.f32 0.7978846, %v1648_v26  ;;  %v1579_v20 = vmul.f32 0.5, %v5822_v5  ;;  %v1583_v23 = vmul.f32 0.5, %v1515_v25 }
 0xdfe   :  { %v1663_v49 = vmul.f32 0.7978846, %v1647_v21  ;;  %5027 = vtanh.f32 %v1659_v46  ;;  %v1665_v9 = vmul.f32 0.7978846, %v1649_v55  ;;  %v1581_v29 = vmul.f32 0.5, %v5825_v6 }
 0xdff   :  { %5029 = vtanh.f32 %v1661_v47  ;;  %v1585_v2 = vmul.f32 0.5, %v1568_v52  ;;  %v1578_v34 = vmul.f32 0.5, %v5816_v10  ;;  %v1582_v37 = vmul.f32 0.5, %v5830_v17 }
 0xe00   :  { %5031 = vtanh.f32 %v1663_v49  ;;  %v1580_v39 = vmul.f32 0.5, %v5819_v27  ;;  %v1584_v6 = vmul.f32 0.5, %v5833_v56  ;;  %v4187_v27 = vld [vmem:[%s6211_s13] ss:$0 sm:$0xff] }
 0xe01   :  { %5033 = vtanh.f32 %v1665_v9 }
 0xe02   :  { %5035 = vtanh.f32 %v1658_v50 }
 0xe03   :  { %5037 = vtanh.f32 %v1662_v57 }
 0xe04   :  { %5039 = vtanh.f32 %v1660_v60 }
 0xe05   :  { %5041 = vtanh.f32 %v1664_v0 }
 0xe08   :  { %v5028_v13 = vpop.eup %5027 }
 0xe09   :  { %v5030_v8 = vpop.eup %5029  ;;  %v1691_v12 = vadd.f32 1.0, %v5028_v13 }
 0xe0a   :  { %v5032_v14 = vpop.eup %5031  ;;  %v1693_v51 = vadd.f32 1.0, %v5030_v8 }
 0xe0b   :  { %v5034_v19 = vpop.eup %5033  ;;  %v1695_v24 = vadd.f32 1.0, %v5032_v14  ;;  %v1707_v11 = vmul.f32 %v1691_v12, %v1579_v20  ;;  %v4843_v12 = vld [vmem:[#allocation11 + $0xc0] ss:$12 sps:$4 sm:$0xff]   ;;  %v4845_v14 = vld [vmem:[#allocation11 + $0xc4] ss:$12 sps:$4 sm:$0xff]  }
 0xe0c   :  { %v5036_v28 = vpop.eup %5035  ;;  %v1697_v31 = vadd.f32 1.0, %v5034_v19  ;;  %v1709_v4 = vmul.f32 %v1693_v51, %v1581_v29  ;;  %v4848_v51 = vld [vmem:[#allocation11 + $0xdc] ss:$12 sps:$4 sm:$0xff]   ;;  %2334 = vmatprep.subr.bf16.mxu0 %v4845_v14  ;;  %v4846_v19 = vld [vmem:[#allocation11 + $0xd8] ss:$12 sps:$4 sm:$0xff]  }
 0xe0d   :  { %v5038_v1 = vpop.eup %5037  ;;  %v1711_v32 = vmul.f32 %v1695_v24, %v1583_v23  ;;  %v1690_v35 = vadd.f32 1.0, %v5036_v28  ;;  %2335 = vmatpush1.bf16.msra.mxu0 %v4843_v12 }
 0xe0e   :  { %v5040_v3 = vpop.eup %5039  ;;  %v1713_v36 = vmul.f32 %v1697_v31, %v1585_v2  ;;  %v1694_v38 = vadd.f32 1.0, %v5038_v1  ;;  %2336 = vmatprep.subr.bf16.mxu0 %v4848_v51  ;;  %v4220_v51 = vld [vmem:[%s6212_s14] ss:$0 sm:$0xff] }
 0xe0f   :  { %v5042_v5 = vpop.eup %5041  ;;  %v1719_v25 = vpack.c.bf16 %v1711_v32, %v1707_v11  ;;  %v1692_v52 = vadd.f32 1.0, %v5040_v3  ;;  %v1706_v41 = vmul.f32 %v1690_v35, %v1578_v34 }
 0xe10   :  { %v1721_v40 = vpack.c.bf16 %v1713_v36, %v1709_v4  ;;  %v1710_v42 = vmul.f32 %v1694_v38, %v1582_v37  ;;  %v1696_v43 = vadd.f32 1.0, %v5042_v5 }
 0xe11   :  { %2025 = vmatprep.mubr.bf16.mxu0 %v1719_v25  ;;  %v1708_v44 = vmul.f32 %v1692_v52, %v1580_v39  ;;  %2337 = vmatpush1.bf16.msra.mxu0 %v4846_v19 }
 0xe12   :  { %2074 = vmatprep.mubr.bf16.mxu1 %v1721_v40  ;;  %v1718_v10 = vpack.c.bf16 %v1710_v42, %v1706_v41  ;;  %v1712_v45 = vmul.f32 %v1696_v43, %v1584_v6  ;;  %v4851_v42 = vld [vmem:[#allocation11 + $0xf4] ss:$12 sps:$4 sm:$0xff]   ;;  %v4849_v43 = vld [vmem:[#allocation11 + $0xf0] ss:$12 sps:$4 sm:$0xff]  }
 0xe13   :  { %2338 = vmatprep.subr.bf16.mxu0 %v4851_v42 }
 0xe14   :  { %2026 = vmatmul.mubr.bf16.gmra.mrb[28].mxu0 %v1718_v10  ;;  %v1720_v54 = vpack.c.bf16 %v1712_v45, %v1708_v44  ;;  %v4854_v10 = vld [vmem:[#allocation11 + $0x10c] ss:$12 sps:$4 sm:$0xff]   ;;  %v4852_v44 = vld [vmem:[#allocation11 + $0x108] ss:$12 sps:$4 sm:$0xff]   ;;  %v4857_v45 = vld [vmem:[#allocation11 + $0x124] ss:$12 sps:$4 sm:$0xff]  }
 0xe15   :  { %2366 = vmatprep.mubr.bf16.mxu0 %v5358_v30  ;;  %2339 = vmatpush1.bf16.msra.mxu0 %v4849_v43 }
 0xe16   :  { %2075 = vmatmul.mubr.bf16.gmra.mrb[44].mxu1 %v1720_v54  ;;  %2340 = vmatprep.subr.bf16.mxu0 %v4854_v10  ;;  %v4855_v54 = vld [vmem:[#allocation11 + $0x120] ss:$12 sps:$4 sm:$0xff]  }
 0xe19   :  { %2341 = vmatpush1.bf16.msra.mxu0 %v4852_v44  ;;  %v4222_v44 = vld [vmem:[%s6203_s5 + $0x3] sm:$0x7] }
 0xe1a   :  { %2342 = vmatprep.subr.bf16.mxu0 %v4857_v45  ;;  %v2194_v45 = vrot.slane %v4222_v44, %v5600_v16 }
 0xe1d   :  { %2343 = vmatpush1.bf16.msra.mxu0 %v4855_v54 }
 0xe4f   :  { %v4394_v17 = vpop.f32.mrb[24].mxu0 }
 0xe50   :  { %v4395_v56 = vpop.f32.mrb[25].mxu0 }
 0xe51   :  { %v4422_v21 = vpop.f32.mrb[40].mxu1  ;;  %v4396_v46 = vadd.f32 %v4395_v56, %v4394_v17  ;;  %v4397_v55 = vpop.f32.mrb[26].mxu0  ;;  %v4860_v17 = vld [vmem:[#allocation11 + $0x13c] ss:$12 sps:$4 sm:$0xff]  }
 0xe52   :  { %v4423_v22 = vpop.f32.mrb[41].mxu1  ;;  %v4398_v47 = vpop.f32.mrb[27].mxu0  ;;  %2344 = vmatprep.subr.bf16.mxu0 %v4860_v17  ;;  %v4861_v56 = vld [vmem:[#allocation11 + $0x150] ss:$12 sps:$4 sm:$0xff]   ;;  %v2198_v17 = vrot.slane %v4222_v44, %v5606_v18 }
 0xe53   :  { %v2020_v48 = vadd.f32 %v4396_v46, %v4187_v27  ;;  %v4424_v49 = vadd.f32 %v4423_v22, %v4422_v21  ;;  %v4425_v9 = vpop.f32.mrb[42].mxu1  ;;  %v4399_v50 = vadd.f32 %v4398_v47, %v4397_v55  ;;  %v4864_v21 = vld [vmem:[#allocation11 + $0x168] ss:$12 sps:$4 sm:$0xff]   ;;  %v4868_v55 = vld [vmem:[#allocation11 + $0xe0] ss:$12 sps:$4 sm:$0xff]  }
 0xe54   :  { %v4426_v57 = vpop.f32.mrb[43].mxu1  ;;  %v4867_v46 = vld [vmem:[#allocation11 + $0xc8] ss:$12 sps:$4 sm:$0xff]  }
 0xe55   :  { %v2069_v59 = vadd.f32 %v4424_v49, %v2020_v48  ;;  %v2023_v26 = vadd.f32 %v4399_v50, %v4187_v27  ;;  %v4427_v60 = vadd.f32 %v4426_v57, %v4425_v9  ;;  %4614 = vmatprep.subr.bf16.mxu1 %v4867_v46 }
 0xe56   :  { %4615 = vmatpush3.bf16.msra.mxu1 %v4867_v46 }
 0xe57   :  { %v2072_v0 = vadd.f32 %v4427_v60, %v2023_v26  ;;  %v2083_v13 = vadd.f32 %v2069_v59, %v5734_v53  ;;  %4616 = vmatprep.subr.bf16.mxu1 %v4868_v55 }
 0xe59   :  { %2089 = vadd.xlane.f32.xlu0 %v2083_v13  ;;  %v2084_v8 = vadd.f32 %v2072_v0, %v5737_v7 }
 0xe5a   :  { %4617 = vmatpush3.bf16.msra.mxu1 %v4868_v55 }
 0xe5b   :  { %2091 = vadd.xlane.f32.xlu1 %v2084_v8 }
 0xee6   :  { %v2090_v20 = vpop.xlane.xlu0 %2089 }
 0xee7   :  { %v4400_v23 = vpop.f32.mrb[28].mxu0  ;;  %v2097_v24 = vmul.f32 0.0078125, %v2090_v20 }
 0xee8   :  { %v4401_v28 = vpop.f32.mrb[29].mxu0  ;;  %v2092_v2 = vpop.xlane.xlu1 %2091 }
 0xee9   :  { %v4428_v29 = vpop.f32.mrb[44].mxu1  ;;  %v4402_v31 = vadd.f32 %v4401_v28, %v4400_v23  ;;  %v5871_v53 = vsub.f32 %v2083_v13, %v2097_v24  ;;  %v2098_v7 = vmul.f32 0.0078125, %v2092_v2  ;;  %v4403_v11 = vpop.f32.mrb[30].mxu0  ;;  %v4221_v28 = vld [vmem:[%s6213_s15] ss:$0 sm:$0xff] }
 0xeea   :  { %v4429_v1 = vpop.f32.mrb[45].mxu1  ;;  %v4404_v3 = vpop.f32.mrb[31].mxu0 }
 0xeeb   :  { %v4430_v32 = vadd.f32 %v4429_v1, %v4428_v29  ;;  %v2028_v34 = vadd.f32 %v4402_v31, %v4187_v27  ;;  %v4431_v35 = vpop.f32.mrb[46].mxu1  ;;  %v5873_v4 = vsub.f32 %v2084_v8, %v2098_v7  ;;  %v4405_v36 = vadd.f32 %v4404_v3, %v4403_v11  ;;  %v4870_v7 = vld [vmem:[#allocation11 + $0x110] ss:$12 sps:$4 sm:$0xff]   ;;  %v4871_v11 = vld [vmem:[#allocation11 + $0x128] ss:$12 sps:$4 sm:$0xff]  }
 0xeec   :  { %v4432_v37 = vpop.f32.mrb[47].mxu1  ;;  %v2105_v38 = vmul.f32 %v5871_v53, %v5871_v53 }
 0xeed   :  { %v4433_v5 = vadd.f32 %v4432_v37, %v4431_v35  ;;  %v2077_v25 = vadd.f32 %v4430_v32, %v2028_v34  ;;  %v2031_v39 = vadd.f32 %v4405_v36, %v4187_v27  ;;  %v2106_v6 = vmul.f32 %v5873_v4, %v5873_v4  ;;  %v4863_v27 = vld [vmem:[#allocation11 + $0x154] ss:$12 sps:$4 sm:$0xff]   ;;  %v4873_v34 = vld [vmem:[#allocation11 + $0x158] ss:$12 sps:$4 sm:$0xff]   ;;  %v4874_v35 = vld [vmem:[#allocation11 + $0x170] ss:$12 sps:$4 sm:$0xff]  }
 0xeee   :  { %2109 = vadd.xlane.f32.xlu0 %v2105_v38  ;;  %v4872_v32 = vld [vmem:[#allocation11 + $0x140] ss:$12 sps:$4 sm:$0xff]  }
 0xeef   :  { %v2085_v52 = vadd.f32 %v2077_v25, %v5748_v63  ;;  %v2080_v40 = vadd.f32 %v4433_v5, %v2031_v39  ;;  %2111 = vadd.xlane.f32.xlu1 %v2106_v6  ;;  %v4858_v63 = vld [vmem:[#allocation11 + $0x138] ss:$12 sps:$4 sm:$0xff]  }
 0xef0   :  { %2345 = vmatpush1.bf16.msra.mxu0 %v4858_v63 }
 0xef1   :  { %v2086_v41 = vadd.f32 %v2080_v40, %v5751_v58  ;;  %2346 = vmatprep.subr.bf16.mxu0 %v4863_v27  ;;  %v4866_v58 = vld [vmem:[#allocation11 + $0x16c] ss:$12 sps:$4 sm:$0xff]  }
 0xef2   :  { %2093 = vadd.xlane.f32.xlu0 %v2085_v52 }
 0xef3   :  { %2095 = vadd.xlane.f32.xlu1 %v2086_v41 }
 0xef4   :  { %2347 = vmatpush1.bf16.msra.mxu0 %v4861_v56 }
 0xef5   :  { %2348 = vmatprep.subr.bf16.mxu0 %v4866_v58 }
 0xef8   :  { %2349 = vmatpush1.bf16.msra.mxu0 %v4864_v21 }
 0xef9   :  { %4634 = vmatprep.subr.bf16.mxu0 %v5359_v62 }
 0xf7b   :  { %v2110_v22 = vpop.xlane.xlu0 %2109 }
 0xf7c   :  { %v2117_v47 = vmul.f32 0.0078125, %v2110_v22  ;;  %v2112_v48 = vpop.xlane.xlu1 %2111 }
 0xf7d   :  { %v2118_v9 = vmul.f32 0.0078125, %v2112_v48 }
 0xf7e   :  { %v2121_v49 = vadd.f32 1e-12, %v2117_v47 }
 0xf7f   :  { %v2094_v50 = vpop.xlane.xlu0 %2093  ;;  %v2122_v57 = vadd.f32 1e-12, %v2118_v9 }
 0xf80   :  { %5043 = vrsqrt.f32 %v2121_v49  ;;  %v2099_v59 = vmul.f32 0.0078125, %v2094_v50  ;;  %v2096_v26 = vpop.xlane.xlu1 %2095  ;;  %v2202_v49 = vrot.slane %v4222_v44, %v5616_v33 }
 0xf81   :  { %5045 = vrsqrt.f32 %v2122_v57  ;;  %v2100_v0 = vmul.f32 0.0078125, %v2096_v26 }
 0xf82   :  { %v2103_v60 = vsub.f32 %v2085_v52, %v2099_v59 }
 0xf83   :  { %v2104_v13 = vsub.f32 %v2086_v41, %v2100_v0 }
 0xf84   :  { %v2107_v8 = vmul.f32 %v2103_v60, %v2103_v60 }
 0xf85   :  { %v2108_v12 = vmul.f32 %v2104_v13, %v2104_v13 }
 0xf86   :  { %2113 = vadd.xlane.f32.xlu0 %v2107_v8 }
 0xf87   :  { %2115 = vadd.xlane.f32.xlu1 %v2108_v12 }
 0xf8a   :  { %v5044_v14 = vpop.eup %5043 }
 0xf8b   :  { %v2129_v19 = vmul.f32 %v5044_v14, %v5871_v53  ;;  %v5046_v20 = vpop.eup %5045  ;;  %v4869_v53 = vld [vmem:[#allocation11 + $0xf8] ss:$12 sps:$4 sm:$0xff]  }
 0xf8c   :  { %v2130_v24 = vmul.f32 %v5046_v20, %v5873_v4  ;;  %4618 = vmatprep.subr.bf16.mxu1 %v4869_v53 }
 0xf8d   :  { %v2139_v23 = vmul.f32 %v4220_v51, %v2129_v19  ;;  %4619 = vmatpush3.bf16.msra.mxu1 %v4869_v53 }
 0xf8e   :  { %v2140_v29 = vmul.f32 %v4220_v51, %v2130_v24  ;;  %4620 = vmatprep.subr.bf16.mxu1 %v4870_v7 }
 0xf8f   :  { %v5890_v2 = vadd.f32 %v4221_v28, %v2139_v23 }
 0xf90   :  { %v5892_v31 = vadd.f32 %v4221_v28, %v2140_v29 }
 0xf91   :  { %4621 = vmatpush3.bf16.msra.mxu1 %v4870_v7 }
 0xf92   :  { %v2153_v1 = vpack.c.bf16 %v5892_v31, %v5890_v2  ;;  %4622 = vmatprep.subr.bf16.mxu1 %v4871_v11 }
 0xf94   :  { %2367 = vmatmul.mubr.bf16.vlgmr.msra.gmra.mrb[32].mxu0 %v2153_v1  ;;  %4630 = vmatprep.mubr.bf16.mxu1 %v2153_v1 }
 0xf95   :  { %2376 = vmatprep.mubr.bf16.mxu0 %v5358_v30  ;;  %4623 = vmatpush3.bf16.msra.mxu1 %v4871_v11  ;;  %v5925_v11 = vld [vmem:[#allocation6] ss:$0 sm:$0xff] }
 0xf96   :  { %4624 = vmatprep.subr.bf16.mxu1 %v4872_v32 }
 0xf99   :  { %4625 = vmatpush3.bf16.msra.mxu1 %v4872_v32 }
 0xf9a   :  { %4626 = vmatprep.subr.bf16.mxu1 %v4873_v34 }
 0xf9d   :  { %4627 = vmatpush3.bf16.msra.mxu1 %v4873_v34 }
 0xf9e   :  { %4628 = vmatprep.subr.bf16.mxu1 %v4874_v35 }
 0xfa1   :  { %4629 = vmatpush3.bf16.msra.mxu1 %v4874_v35 }
 0xfa2   :  { %4652 = vmatprep.subr.bf16.mxu1 %v5359_v62 }
0x1013   :  { %v2114_v3 = vpop.xlane.xlu0 %2113 }
0x1014   :  { %v2119_v4 = vmul.f32 0.0078125, %v2114_v3  ;;  %v2116_v36 = vpop.xlane.xlu1 %2115 }
0x1015   :  { %v2120_v38 = vmul.f32 0.0078125, %v2116_v36 }
0x1016   :  { %v2123_v37 = vadd.f32 1e-12, %v2119_v4 }
0x1017   :  { %v2124_v5 = vadd.f32 1e-12, %v2120_v38 }
0x1018   :  { %5047 = vrsqrt.f32 %v2123_v37 }
0x1019   :  { %5049 = vrsqrt.f32 %v2124_v5 }
0x1022   :  { %v5048_v25 = vpop.eup %5047 }
0x1023   :  { %v2131_v39 = vmul.f32 %v5048_v25, %v2103_v60  ;;  %v5050_v6 = vpop.eup %5049 }
0x1024   :  { %v2132_v52 = vmul.f32 %v5050_v6, %v2104_v13 }
0x1025   :  { %v2141_v40 = vmul.f32 %v4220_v51, %v2131_v39 }
0x1026   :  { %v2142_v41 = vmul.f32 %v4220_v51, %v2132_v52 }
0x1027   :  { %v5898_v42 = vadd.f32 %v4221_v28, %v2141_v40 }
0x1028   :  { %v5900_v43 = vadd.f32 %v4221_v28, %v2142_v41 }
0x102a   :  { %v2154_v10 = vpack.c.bf16 %v5900_v43, %v5898_v42 }
0x102c   :  { %2377 = vmatmul.mubr.bf16.gmra.mrb[36].mxu0 %v2154_v10  ;;  %4631 = vmatmul.mubr.bf16.vlgmr.msra.gmra.mrb[48].mxu1 %v2154_v10 }
0x102d   :  { %4636 = vmatprep.mubr.msk.bf16.mxu0 %vm5360_vm0, %v5359_v62  ;;  %4654 = vmatprep.mubr.msk.bf16.mxu1 %vm5360_vm0, %v5359_v62 }
0x1067   :  { %v2368_v54 = vpop.f32.mrb[32].mxu0 }
0x1068   :  { %v2370_v63 = vpop.f32.mrb[33].mxu0  ;;  %v2369_v56 = vadd.f32 %v2368_v54, %v2194_v45 }
0x1069   :  { %v2372_v27 = vpop.f32.mrb[34].mxu0  ;;  %v2371_v46 = vadd.f32 %v2370_v63, %v2198_v17 }
0x106a   :  { %v2373_v58 = vadd.f32 %v2372_v27, %v2194_v45  ;;  %v2374_v21 = vpop.f32.mrb[35].mxu0 }
0x106b   :  { %v2375_v55 = vadd.f32 %v2374_v21, %v2198_v17 }
0x106c   :  { %v2437_v22 = vpack.c.bf16 %v2373_v58, %v2369_v56 }
0x106d   :  { %v2438_v47 = vpack.c.bf16 %v2375_v55, %v2371_v46 }
0x106f   :  { %v2444_v48 = vsel %vm516_vm1, %v2438_v47, 0 }
0x1070   :  { %4635 = vmatpush3.bf16.xpose.msra.mxu0 %v2444_v48 }
0x1071   :  { %4640 = vmatprep.subr.bf16.mxu0 %v5359_v62 }
0x1077   :  { %4637 = vmatmul.mubr.msk.bf16.vlgmr.msra.gmra.mrb[40].mxu0 %vm516_vm1, %v2437_v22 }
0x1078   :  { %4642 = vmatprep.mubr.msk.bf16.mxu0 %vm5360_vm0, %v5359_v62 }
0x10ff   :  { %v2378_v9 = vpop.f32.mrb[36].mxu0  ;;  %v4632_v50 = vpop.f32.mrb[48].mxu1 }
0x1100   :  { %v2430_v57 = vadd.f32 %v4632_v50, %v2202_v49  ;;  %v2380_v59 = vpop.f32.mrb[37].mxu0  ;;  %v2421_v26 = vpop.f32.mrb[49].mxu1  ;;  %v2379_v13 = vadd.f32 %v2378_v9, %v2194_v45 }
0x1101   :  { %v2382_v60 = vpop.f32.mrb[38].mxu0  ;;  %v4633_v0 = vpop.f32.mrb[50].mxu1  ;;  %v2381_v19 = vadd.f32 %v2380_v59, %v2198_v17  ;;  %v2422_v20 = vadd.f32 %v2421_v26, %v2202_v49 }
0x1102   :  { %v2383_v8 = vadd.f32 %v2382_v60, %v2194_v45  ;;  %v2433_v12 = vadd.f32 %v4633_v0, %v2202_v49  ;;  %v2384_v14 = vpop.f32.mrb[39].mxu0  ;;  %v2424_v51 = vpop.f32.mrb[51].mxu1 }
0x1103   :  { %v2385_v23 = vadd.f32 %v2384_v14, %v2198_v17  ;;  %v2425_v24 = vadd.f32 %v2424_v51, %v2202_v49 }
0x1104   :  { %v2705_v28 = vpack.c.bf16 %v2383_v8, %v2379_v13  ;;  %v5919_v29 = vpack.c.bf16 %v2433_v12, %v2430_v57 }
0x1105   :  { %v5921_v1 = vpack.c.bf16 %v2425_v24, %v2422_v20  ;;  %v2706_v53 = vpack.c.bf16 %v2385_v23, %v2381_v19 }
0x1107   :  { %4641 = vmatpush3.bf16.msra.mxu0 %v5921_v1 }
0x1108   :  { %4646 = vmatprep.subr.bf16.mxu0 %v5359_v62 }
0x114a   :  { %v2480_v7 = vpop.f32.mrb[40].mxu0 }
0x114b   :  { %v2487_v32 = vmul.f32 0.125, %v2480_v7  ;;  %v4638_v34 = vpop.f32.mrb[41].mxu0 }
0x114c   :  { %v2483_v35 = vpop.f32.mrb[42].mxu0 }
0x114d   :  { %v2488_v3 = vmul.f32 0.125, %v2483_v35  ;;  %v4639_v4 = vpop.f32.mrb[43].mxu0  ;;  %v2495_v36 = vadd.f32 %v5925_v11, %v2487_v32 }
0x114f   :  { %v2497_v37 = vsel %vm574_vm2, %v2495_v36, -inf  ;;  %v2496_v38 = vadd.f32 %v5925_v11, %v2488_v3 }
0x1150   :  { %2498 = vmax.xlane.f32.xlu0 %v2497_v37 }
0x1151   :  { %v2500_v5 = vsel %vm574_vm2, %v2496_v38, -inf }
0x1152   :  { %2501 = vmax.xlane.f32.xlu1 %v2500_v5 }
0x11dd   :  { %v2499_v25 = vpop.xlane.xlu0 %2498 }
0x11de   :  { %v2503_v39 = vsub.f32 %v2495_v36, %v2499_v25 }
0x11df   :  { %v2502_v6 = vpop.xlane.xlu1 %2501 }
0x11e0   :  { %v2505_v52 = vmul.f32 1.442695, %v2503_v39  ;;  %v2504_v40 = vsub.f32 %v2496_v38, %v2502_v6 }
0x11e2   :  { %5051 = vpow2.f32 %v2505_v52  ;;  %v2507_v41 = vmul.f32 1.442695, %v2504_v40 }
0x11e4   :  { %5053 = vpow2.f32 %v2507_v41 }
0x11ec   :  { %v5052_v10 = vpop.eup %5051 }
0x11ed   :  { %v2509_v44 = vsel %vm574_vm2, %v5052_v10, 0.0 }
0x11ee   :  { %v5054_v45 = vpop.eup %5053  ;;  %2510 = vadd.xlane.f32.xlu0 %v2509_v44 }
0x11ef   :  { %v2512_v54 = vsel %vm574_vm2, %v5054_v45, 0.0 }
0x11f0   :  { %2513 = vadd.xlane.f32.xlu1 %v2512_v54 }
0x1201   :  { %2567 = vrot.lane.b32.xlu1 %v2437_v22, %s6222_s10 }
0x1204   :  { %2570 = vrot.lane.b32.xlu0 %v2438_v47, %s6222_s10  ;;  %v2712_v47 = vsel %vm516_vm1, %v2706_v53, 0 }
0x1205   :  { %2838 = vrot.lane.b32.xlu1 %v2706_v53, %s6222_s10  ;;  %v4253_v53 = vld [vmem:[#allocation6 + $0x1] ss:$0 sm:$0xff] }
0x1209   :  { %2835 = vrot.lane.b32.xlu1 %v2705_v28, %s6222_s10 }
0x127b   :  { %v2511_v17 = vpop.xlane.xlu0 %2510 }
0x127c   :  { %5055 = vrcp.f32 %v2511_v17 }
0x127d   :  { %v2514_v63 = vpop.xlane.xlu1 %2513 }
0x127e   :  { %5057 = vrcp.f32 %v2514_v63 }
0x127f   :  { %v2571_v46 = vpop.permute.xlu0 %2570 }
0x1280   :  { %v2576_v48 = vsel %vm516_vm1, %v2571_v46, 0 }
0x1281   :  { %v2568_v22 = vpop.permute.xlu1 %2567 }
0x1285   :  { %v2839_v49 = vpop.permute.xlu1 %2838 }
0x1286   :  { %v5056_v27 = vpop.eup %5055  ;;  %v2844_v9 = vsel %vm516_vm1, %v2839_v49, 0 }
0x1287   :  { %v2517_v58 = vmul.f32 %v5056_v27, %v5052_v10 }
0x1288   :  { %v5058_v56 = vpop.eup %5057 }
0x1289   :  { %v2518_v21 = vmul.f32 %v5058_v56, %v5054_v45  ;;  %v2836_v50 = vpop.permute.xlu1 %2835 }
0x128b   :  { %v2519_v55 = vpack.c.bf16 %v2518_v21, %v2517_v58 }
0x128d   :  { %4643 = vmatmul.mubr.msk.bf16.vlgmr.msra.gmra.mrb[44].mxu0 %vm574_vm2, %v2519_v55 }
0x128e   :  { %4647 = vmatpush3.bf16.xpose.msra.mxu0 %v2576_v48  ;;  %4648 = vmatprep.mubr.msk.bf16.mxu0 %vm5360_vm0, %v5359_v62 }
0x128f   :  { %4658 = vmatprep.subr.bf16.mxu0 %v5359_v62 }
0x1295   :  { %4649 = vmatmul.mubr.msk.bf16.vlgmr.msra.gmra.mrb[48].mxu0 %vm516_vm1, %v2568_v22 }
0x1296   :  { %4659 = vmatpush3.bf16.xpose.msra.mxu0 %v2712_v47  ;;  %4660 = vmatprep.mubr.msk.bf16.mxu0 %vm5360_vm0, %v5359_v62 }
0x1297   :  { %4670 = vmatprep.subr.bf16.mxu0 %v5359_v62 }
0x129d   :  { %4661 = vmatmul.mubr.msk.bf16.vlgmr.msra.gmra.mrb[52].mxu0 %vm516_vm1, %v2705_v28 }
0x129e   :  { %4671 = vmatpush3.bf16.xpose.msra.mxu0 %v2844_v9  ;;  %4672 = vmatprep.mubr.msk.bf16.mxu0 %vm5360_vm0, %v5359_v62 }
0x12a5   :  { %4673 = vmatmul.mubr.msk.bf16.vlgmr.msra.gmra.mrb[56].mxu0 %vm516_vm1, %v2836_v50 }
0x1360   :  { %v2557_v57 = vpop.f32.mrb[44].mxu0 }
0x1361   :  { %2564 = vst.msk [vmem:[#allocation2] sm:$0xff] %vm516_vm1, %v2557_v57  ;;  %v4644_v59 = vpop.f32.mrb[45].mxu0 }
0x1362   :  { %v2560_v26 = vpop.f32.mrb[46].mxu0 }
0x1363   :  { %2565 = vst.msk [vmem:[#allocation2 + $0x8] sm:$0xff] %vm516_vm1, %v2560_v26  ;;  %v4645_v60 = vpop.f32.mrb[47].mxu0 }
0x1368   :  { %v2612_v0 = vpop.f32.mrb[48].mxu0 }
0x1369   :  { %v2619_v13 = vmul.f32 0.125, %v2612_v0  ;;  %v4650_v8 = vpop.f32.mrb[49].mxu0 }
0x136a   :  { %v2615_v12 = vpop.f32.mrb[50].mxu0 }
0x136b   :  { %v2620_v14 = vmul.f32 0.125, %v2615_v12  ;;  %v4651_v51 = vpop.f32.mrb[51].mxu0  ;;  %v2621_v19 = vadd.f32 %v5925_v11, %v2619_v13 }
0x136d   :  { %v2623_v20 = vsel %vm574_vm2, %v2621_v19, -inf  ;;  %v2622_v23 = vadd.f32 %v5925_v11, %v2620_v14 }
0x136e   :  { %2624 = vmax.xlane.f32.xlu0 %v2623_v20 }
0x136f   :  { %v2626_v24 = vsel %vm574_vm2, %v2622_v23, -inf }
0x1370   :  { %2627 = vmax.xlane.f32.xlu1 %v2626_v24  ;;  %v2748_v28 = vpop.f32.mrb[52].mxu0 }
0x1371   :  { %v2755_v7 = vmul.f32 0.125, %v2748_v28  ;;  %v4662_v32 = vpop.f32.mrb[53].mxu0 }
0x1372   :  { %v2751_v34 = vpop.f32.mrb[54].mxu0 }
0x1373   :  { %v2756_v35 = vmul.f32 0.125, %v2751_v34  ;;  %v4663_v3 = vpop.f32.mrb[55].mxu0  ;;  %v2763_v4 = vadd.f32 %v4253_v53, %v2755_v7 }
0x1375   :  { %v2765_v36 = vsel %vm574_vm2, %v2763_v4, -inf  ;;  %v2764_v37 = vadd.f32 %v4253_v53, %v2756_v35 }
0x1376   :  { %2766 = vmax.xlane.f32.xlu0 %v2765_v36 }
0x1377   :  { %v2768_v11 = vsel %vm574_vm2, %v2764_v37, -inf }
0x1378   :  { %v2880_v38 = vpop.f32.mrb[56].mxu0 }
0x1379   :  { %v2887_v5 = vmul.f32 0.125, %v2880_v38  ;;  %v4674_v25 = vpop.f32.mrb[57].mxu0 }
0x137a   :  { %2769 = vmax.xlane.f32.xlu0 %v2768_v11  ;;  %v2883_v39 = vpop.f32.mrb[58].mxu0 }
0x137b   :  { %v2888_v6 = vmul.f32 0.125, %v2883_v39  ;;  %v4675_v52 = vpop.f32.mrb[59].mxu0  ;;  %v2889_v40 = vadd.f32 %v4253_v53, %v2887_v5 }
0x137d   :  { %v2891_v41 = vsel %vm574_vm2, %v2889_v40, -inf  ;;  %v2890_v10 = vadd.f32 %v4253_v53, %v2888_v6 }
0x137e   :  { %2892 = vmax.xlane.f32.xlu0 %v2891_v41 }
0x137f   :  { %v2894_v44 = vsel %vm574_vm2, %v2890_v10, -inf }
0x1380   :  { %2895 = vmax.xlane.f32.xlu1 %v2894_v44 }
0x13fb   :  { %v2625_v45 = vpop.xlane.xlu0 %2624 }
0x13fc   :  { %v2629_v54 = vsub.f32 %v2621_v19, %v2625_v45  ;;  %v4875_v45 = vld [vmem:[#allocation12 + $0x40] sm:$0xff]  }
0x13fd   :  { %v2628_v17 = vpop.xlane.xlu1 %2627  ;;  %4682 = vmatprep.subr.bf16.mxu0 %v4875_v45 }
0x13fe   :  { %v2631_v63 = vmul.f32 1.442695, %v2629_v54  ;;  %v2630_v27 = vsub.f32 %v2622_v23, %v2628_v17  ;;  %4683 = vmatpush3.bf16.msra.mxu0 %v4875_v45  ;;  %v4876_v54 = vld [vmem:[#allocation12 + $0x48] sm:$0xff]   ;;  %v4877_v17 = vld [vmem:[#allocation12 + $0x50] sm:$0xff]  }
0x13ff   :  { %4684 = vmatprep.subr.bf16.mxu0 %v4876_v54 }
0x1400   :  { %5059 = vpow2.f32 %v2631_v63  ;;  %v2633_v56 = vmul.f32 1.442695, %v2630_v27  ;;  %v4878_v63 = vld [vmem:[#allocation12 + $0x58] sm:$0xff]   ;;  %v4879_v27 = vld [vmem:[#allocation12 + $0x60] sm:$0xff]  }
0x1402   :  { %5061 = vpow2.f32 %v2633_v56  ;;  %4685 = vmatpush3.bf16.msra.mxu0 %v4876_v54 }
0x1403   :  { %v2767_v58 = vpop.xlane.xlu0 %2766  ;;  %4686 = vmatprep.subr.bf16.mxu0 %v4877_v17 }
0x1404   :  { %v2771_v21 = vsub.f32 %v2763_v4, %v2767_v58 }
0x1406   :  { %v2773_v46 = vmul.f32 1.442695, %v2771_v21  ;;  %4687 = vmatpush3.bf16.msra.mxu0 %v4877_v17 }
0x1407   :  { %v2770_v55 = vpop.xlane.xlu0 %2769  ;;  %4688 = vmatprep.subr.bf16.mxu0 %v4878_v63 }
0x1408   :  { %5063 = vpow2.f32 %v2773_v46  ;;  %v2772_v48 = vsub.f32 %v2764_v37, %v2770_v55  ;;  %v4880_v46 = vld [vmem:[#allocation12 + $0x68] sm:$0xff]   ;;  %v4881_v55 = vld [vmem:[#allocation12 + $0x70] sm:$0xff]  }
0x140a   :  { %v5060_v22 = vpop.eup %5059  ;;  %v2775_v47 = vmul.f32 1.442695, %v2772_v48  ;;  %4689 = vmatpush3.bf16.msra.mxu0 %v4878_v63 }
0x140b   :  { %v2893_v49 = vpop.xlane.xlu0 %2892  ;;  %v2635_v9 = vsel %vm574_vm2, %v5060_v22, 0.0  ;;  %4690 = vmatprep.subr.bf16.mxu0 %v4879_v27 }
0x140c   :  { %v5062_v50 = vpop.eup %5061  ;;  %5065 = vpow2.f32 %v2775_v47  ;;  %v2897_v57 = vsub.f32 %v2889_v40, %v2893_v49  ;;  %2636 = vadd.xlane.f32.xlu0 %v2635_v9 }
0x140d   :  { %v2896_v59 = vpop.xlane.xlu1 %2895  ;;  %v2638_v26 = vsel %vm574_vm2, %v5062_v50, 0.0 }
0x140e   :  { %v2899_v60 = vmul.f32 1.442695, %v2897_v57  ;;  %v2898_v0 = vsub.f32 %v2890_v10, %v2896_v59  ;;  %2639 = vadd.xlane.f32.xlu1 %v2638_v26  ;;  %4691 = vmatpush3.bf16.msra.mxu0 %v4879_v27 }
0x140f   :  { %4692 = vmatprep.subr.bf16.mxu0 %v4880_v46 }
0x1410   :  { %5067 = vpow2.f32 %v2899_v60  ;;  %v2901_v13 = vmul.f32 1.442695, %v2898_v0 }
0x1412   :  { %v5064_v8 = vpop.eup %5063  ;;  %5069 = vpow2.f32 %v2901_v13  ;;  %4693 = vmatpush3.bf16.msra.mxu0 %v4880_v46  ;;  %v4897_v46 = vld [vmem:[#allocation14 + $0x144] ss:$16 sps:$4 sm:$0xff]  }
0x1413   :  { %v2777_v12 = vsel %vm574_vm2, %v5064_v8, 0.0  ;;  %4694 = vmatprep.subr.bf16.mxu0 %v4881_v55 }
0x1414   :  { %2778 = vadd.xlane.f32.xlu0 %v2777_v12 }
0x1416   :  { %v5066_v14 = vpop.eup %5065  ;;  %4695 = vmatpush3.bf16.msra.mxu0 %v4881_v55  ;;  %v4900_v55 = vld [vmem:[#allocation14 + $0x14c] ss:$16 sps:$4 sm:$0xff]  }
0x1417   :  { %v2780_v51 = vsel %vm574_vm2, %v5066_v14, 0.0 }
0x1418   :  { %2781 = vadd.xlane.f32.xlu1 %v2780_v51 }
0x141a   :  { %v5068_v19 = vpop.eup %5067 }
0x141b   :  { %v2903_v20 = vsel %vm574_vm2, %v5068_v19, 0.0 }
0x141c   :  { %v5070_v23 = vpop.eup %5069  ;;  %2904 = vadd.xlane.f32.xlu0 %v2903_v20 }
0x141d   :  { %v2906_v24 = vsel %vm574_vm2, %v5070_v23, 0.0 }
0x141e   :  { %2907 = vadd.xlane.f32.xlu1 %v2906_v24  ;;  %v4258_v24 = vld [vmem:[%s6205_s7 + $0x1] ss:$0 sm:$0xff] }
0x142f   :  { %2915 = vrot.lane.b32.xlu1 %v5919_v29, %s6222_s10 }
0x1432   :  { %2647 = vrot.lane.b32.xlu0 %v5921_v1, %s6222_s10 }
0x1499   :  { %v2637_v53 = vpop.xlane.xlu0 %2636 }
0x149b   :  { %v2640_v28 = vpop.xlane.xlu1 %2639 }
0x149c   :  { %5071 = vrcp.f32 %v2640_v28 }
0x149d   :  { %5073 = vrcp.f32 %v2637_v53 }
0x14a1   :  { %v2779_v7 = vpop.xlane.xlu0 %2778 }
0x14a5   :  { %v2782_v32 = vpop.xlane.xlu1 %2781 }
0x14a6   :  { %5075 = vrcp.f32 %v2782_v32  ;;  %v5072_v34 = vpop.eup %5071 }
0x14a7   :  { %5077 = vrcp.f32 %v2779_v7  ;;  %v5074_v3 = vpop.eup %5073  ;;  %v2644_v4 = vmul.f32 %v5072_v34, %v5062_v50 }
0x14a8   :  { %v2643_v37 = vmul.f32 %v5074_v3, %v5060_v22  ;;  %v4882_v22 = vld [vmem:[#allocation12 + $0x78] sm:$0xff]  }
0x14a9   :  { %v2905_v35 = vpop.xlane.xlu0 %2904  ;;  %4696 = vmatprep.subr.bf16.mxu0 %v4882_v22 }
0x14aa   :  { %v2645_v5 = vpack.c.bf16 %v2644_v4, %v2643_v37  ;;  %4697 = vmatpush3.bf16.msra.mxu0 %v4882_v22  ;;  %v4898_v22 = vld [vmem:[#allocation14 + $0x148] ss:$16 sps:$4 sm:$0xff]  }
0x14ab   :  { %v2908_v36 = vpop.xlane.xlu1 %2907 }
0x14ac   :  { %5079 = vrcp.f32 %v2908_v36 }
0x14ad   :  { %v2648_v38 = vpop.permute.xlu0 %2647  ;;  %5081 = vrcp.f32 %v2905_v35 }
0x14ae   :  { %4653 = vmatpush3.bf16.msra.mxu1 %v2648_v38 }
0x14af   :  { %4664 = vmatprep.subr.bf16.mxu1 %v5359_v62  ;;  %v2916_v40 = vpop.permute.xlu1 %2915 }
0x14b0   :  { %v5076_v1 = vpop.eup %5075 }
0x14b1   :  { %4655 = vmatmul.mubr.msk.bf16.vlgmr.msra.gmra.mrb[52].mxu1 %vm574_vm2, %v2645_v5  ;;  %v5078_v25 = vpop.eup %5077  ;;  %v2786_v11 = vmul.f32 %v5076_v1, %v5066_v14  ;;  %v4883_v1 = vld [vmem:[#allocation14 + $0x100] ss:$16 sps:$4 sm:$0xff]  }
0x14b2   :  { %4665 = vmatpush3.bf16.msra.mxu1 %v5919_v29  ;;  %4666 = vmatprep.mubr.msk.bf16.mxu1 %vm5360_vm0, %v5359_v62  ;;  %v2785_v39 = vmul.f32 %v5078_v25, %v5064_v8  ;;  %v4885_v25 = vld [vmem:[#allocation14 + $0x104] ss:$16 sps:$4 sm:$0xff]  }
0x14b3   :  { %4676 = vmatprep.subr.bf16.mxu1 %v5359_v62 }
0x14b4   :  { %v2787_v6 = vpack.c.bf16 %v2786_v11, %v2785_v39  ;;  %v4886_v11 = vld [vmem:[#allocation14 + $0x108] ss:$16 sps:$4 sm:$0xff]   ;;  %v4888_v39 = vld [vmem:[#allocation14 + $0x10c] ss:$16 sps:$4 sm:$0xff]  }
0x14b5   :  { %3443 = vmatprep.subr.bf16.mxu0 %v4888_v39  ;;  %v4269_v39 = vld [vmem:[%s6206_s8 + $0x1] ss:$0 sm:$0xff] }
0x14b6   :  { %v5080_v52 = vpop.eup %5079 }
0x14b7   :  { %v5082_v41 = vpop.eup %5081  ;;  %v2912_v10 = vmul.f32 %v5080_v52, %v5070_v23  ;;  %v4894_v52 = vld [vmem:[#allocation14 + $0x12c] ss:$16 sps:$4 sm:$0xff]  }
0x14b8   :  { %v2911_v44 = vmul.f32 %v5082_v41, %v5068_v19 }
0x14b9   :  { %4667 = vmatmul.mubr.msk.bf16.vlgmr.msra.gmra.mrb[56].mxu1 %vm574_vm2, %v2787_v6  ;;  %v4891_v6 = vld [vmem:[#allocation14 + $0x124] ss:$16 sps:$4 sm:$0xff]  }
0x14ba   :  { %4677 = vmatpush3.bf16.msra.mxu1 %v2916_v40  ;;  %4678 = vmatprep.mubr.msk.bf16.mxu1 %vm5360_vm0, %v5359_v62  ;;  %v2913_v29 = vpack.c.bf16 %v2912_v10, %v2911_v44 }
0x14bb   :  { %3390 = vmatprep.subr.bf16.mxu1 %v4885_v25 }
0x14c1   :  { %4679 = vmatmul.mubr.msk.bf16.vlgmr.msra.gmra.mrb[60].mxu1 %vm574_vm2, %v2913_v29 }
0x14c2   :  { %3422 = vmatprep.mubr.bf16.mxu1 %v5358_v30  ;;  %3391 = vmatpush1.bf16.msra.mxu1 %v4883_v1 }
0x14c3   :  { %3392 = vmatprep.subr.bf16.mxu1 %v4891_v6 }
0x1584   :  { %v2687_v62 = vpop.f32.mrb[52].mxu1 }
0x1585   :  { %2696 = vrot.lane.b32.xlu1 %v2687_v62, %s6222_s10  ;;  %v4656_v56 = vpop.f32.mrb[53].mxu1 }
0x1586   :  { %v2690_v58 = vpop.f32.mrb[54].mxu1 }
0x1587   :  { %v4657_v21 = vpop.f32.mrb[55].mxu1 }
0x1589   :  { %2698 = vrot.lane.b32.xlu1 %v2690_v58, %s6222_s10 }
0x158c   :  { %v2825_v48 = vpop.f32.mrb[56].mxu1 }
0x158d   :  { %2832 = vst.msk [vmem:[#allocation2 + $0x10] sm:$0xff] %vm516_vm1, %v2825_v48  ;;  %v4668_v47 = vpop.f32.mrb[57].mxu1  ;;  %v4895_v48 = vld [vmem:[#allocation14 + $0x140] ss:$16 sps:$4 sm:$0xff]  }
0x158e   :  { %v2828_v49 = vpop.f32.mrb[58].mxu1  ;;  %v4903_v47 = vld [vmem:[#allocation14 + $0x164] ss:$16 sps:$4 sm:$0xff]  }
0x158f   :  { %2833 = vst.msk [vmem:[#allocation2 + $0x18] sm:$0xff] %vm516_vm1, %v2828_v49  ;;  %v4669_v9 = vpop.f32.mrb[59].mxu1  ;;  %v4906_v49 = vld [vmem:[#allocation14 + $0x16c] ss:$16 sps:$4 sm:$0xff]  }
0x1590   :  { %v4901_v9 = vld [vmem:[#allocation14 + $0x160] ss:$16 sps:$4 sm:$0xff]  }
0x1594   :  { %v2955_v50 = vpop.f32.mrb[60].mxu1 }
0x1595   :  { %2964 = vrot.lane.b32.xlu0 %v2955_v50, %s6222_s10  ;;  %v4680_v57 = vpop.f32.mrb[61].mxu1  ;;  %v4904_v50 = vld [vmem:[#allocation14 + $0x168] ss:$16 sps:$4 sm:$0xff]  }
0x1596   :  { %v2958_v59 = vpop.f32.mrb[62].mxu1  ;;  %v4909_v57 = vld [vmem:[#allocation14 + $0x184] ss:$16 sps:$4 sm:$0xff]  }
0x1597   :  { %2966 = vrot.lane.b32.xlu1 %v2958_v59, %s6222_s10  ;;  %v4681_v26 = vpop.f32.mrb[63].mxu1  ;;  %v4912_v59 = vld [vmem:[#allocation14 + $0x18c] ss:$16 sps:$4 sm:$0xff]  }
0x1598   :  { %v4907_v26 = vld [vmem:[#allocation14 + $0x180] ss:$16 sps:$4 sm:$0xff]  }
0x15f7   :  { %v2697_v60 = vpop.permute.xlu1 %2696 }
0x15f8   :  { %2702 = vst.msk [vmem:[#allocation2] sm:$0xff] %vm780_vm3, %v2697_v60  ;;  %v4910_v60 = vld [vmem:[#allocation14 + $0x188] ss:$16 sps:$4 sm:$0xff]  }
0x15fb   :  { %v2699_v0 = vpop.permute.xlu1 %2698 }
0x15fc   :  { %2703 = vst.msk [vmem:[#allocation2 + $0x8] sm:$0xff] %vm780_vm3, %v2699_v0  ;;  %v4913_v0 = vld [vmem:[#allocation14 + $0x1a0] ss:$16 sps:$4 sm:$0xff]  }
0x15ff   :  { %v2972_v13 = vld [vmem:[#allocation2] sm:$0xff] }
0x1603   :  { %v2973_v8 = vld [vmem:[#allocation2 + $0x8] sm:$0xff] }
0x1604   :  { %v2976_v12 = vpack.c.bf16 %v2973_v8, %v2972_v13  ;;  %v4915_v13 = vld [vmem:[#allocation14 + $0x1a4] ss:$16 sps:$4 sm:$0xff]   ;;  %v4916_v8 = vld [vmem:[#allocation14 + $0x1a8] ss:$16 sps:$4 sm:$0xff]  }
0x1606   :  { %4698 = vmatprep.mubr.bf16.mxu0 %v2976_v12  ;;  %v4918_v12 = vld [vmem:[#allocation14 + $0x1ac] ss:$16 sps:$4 sm:$0xff]  }
0x1607   :  { %v2965_v14 = vpop.permute.xlu0 %2964 }
0x1608   :  { %2970 = vst.msk [vmem:[#allocation2 + $0x10] sm:$0xff] %vm780_vm3, %v2965_v14  ;;  %v4921_v14 = vld [vmem:[#allocation14 + $0x1c4] ss:$16 sps:$4 sm:$0xff]  }
0x1609   :  { %v2967_v51 = vpop.permute.xlu1 %2966 }
0x160a   :  { %2971 = vst.msk [vmem:[#allocation2 + $0x18] sm:$0xff] %vm780_vm3, %v2967_v51  ;;  %v4924_v51 = vld [vmem:[#allocation14 + $0x1cc] ss:$16 sps:$4 sm:$0xff]  }
0x160f   :  { %v2974_v19 = vld [vmem:[#allocation2 + $0x10] sm:$0xff] }
0x1611   :  { %v2975_v20 = vld [vmem:[#allocation2 + $0x18] sm:$0xff] }
0x1612   :  { %v2977_v23 = vpack.c.bf16 %v2975_v20, %v2974_v19  ;;  %v4919_v19 = vld [vmem:[#allocation14 + $0x1c0] ss:$16 sps:$4 sm:$0xff]   ;;  %v4922_v20 = vld [vmem:[#allocation14 + $0x1c8] ss:$16 sps:$4 sm:$0xff]  }
0x1614   :  { %4699 = vmatmul.mubr.bf16.vlgmr.msra.gmra.mrb[60].mxu0 %v2977_v23  ;;  %v4927_v23 = vld [vmem:[#allocation14 + $0x1e4] ss:$16 sps:$4 sm:$0xff]  }
0x1615   :  { %3475 = vmatprep.mubr.bf16.mxu0 %v5358_v30  ;;  %3444 = vmatpush1.bf16.msra.mxu0 %v4886_v11 }
0x1616   :  { %3445 = vmatprep.subr.bf16.mxu0 %v4894_v52 }
0x16e7   :  { %v4700_v28 = vpop.f32.mrb[60].mxu0 }
0x16e8   :  { %v3085_v53 = vpop.f32.mrb[61].mxu0  ;;  %v3094_v35 = vadd.f32 %v4700_v28, %v4258_v24  ;;  %v4925_v28 = vld [vmem:[#allocation14 + $0x1e0] ss:$16 sps:$4 sm:$0xff]  }
0x16e9   :  { %v3086_v7 = vadd.f32 %v4258_v24, %v3085_v53  ;;  %v4701_v32 = vpop.f32.mrb[62].mxu0  ;;  %v4928_v53 = vld [vmem:[#allocation14 + $0x1e8] ss:$16 sps:$4 sm:$0xff]  }
0x16ea   :  { %v3088_v34 = vpop.f32.mrb[63].mxu0  ;;  %v3097_v37 = vadd.f32 %v4701_v32, %v4258_v24  ;;  %v3102_v38 = vadd.f32 %v3094_v35, %v5898_v42 }
0x16eb   :  { %v3089_v3 = vadd.f32 %v4258_v24, %v3088_v34  ;;  %v3100_v4 = vadd.f32 %v3086_v7, %v5890_v2  ;;  %v4889_v2 = vld [vmem:[#allocation14 + $0x120] ss:$16 sps:$4 sm:$0xff]   ;;  %v4930_v24 = vld [vmem:[#allocation14 + $0x1ec] ss:$16 sps:$4 sm:$0xff]  }
0x16ec   :  { %v3103_v5 = vadd.f32 %v3097_v37, %v5900_v43  ;;  %3393 = vmatpush1.bf16.msra.mxu1 %v4889_v2 }
0x16ed   :  { %3108 = vadd.xlane.f32.xlu0 %v3100_v4  ;;  %v3101_v36 = vadd.f32 %v3089_v3, %v5892_v31  ;;  %v4892_v31 = vld [vmem:[#allocation14 + $0x128] ss:$16 sps:$4 sm:$0xff]   ;;  %3394 = vmatprep.subr.bf16.mxu1 %v4897_v46  ;;  %v4932_v46 = vld [vmem:[#allocation15 + $0x1c0] sm:$0xff]  }
0x16ee   :  { %3446 = vmatpush1.bf16.msra.mxu0 %v4892_v31 }
0x16ef   :  { %3110 = vadd.xlane.f32.xlu1 %v3101_v36  ;;  %3447 = vmatprep.subr.bf16.mxu0 %v4900_v55  ;;  %v4934_v55 = vld [vmem:[#allocation15 + $0x180] sm:$0xff]  }
0x16f0   :  { %3395 = vmatpush1.bf16.msra.mxu1 %v4895_v48  ;;  %v4935_v48 = vld [vmem:[#allocation15 + $0x148] sm:$0xff]  }
0x16f1   :  { %3112 = vadd.xlane.f32.xlu0 %v3102_v38  ;;  %3396 = vmatprep.subr.bf16.mxu1 %v4903_v47  ;;  %v4938_v47 = vld [vmem:[#allocation15 + $0x188] sm:$0xff]  }
0x16f2   :  { %3448 = vmatpush1.bf16.msra.mxu0 %v4898_v22  ;;  %v4936_v22 = vld [vmem:[#allocation15 + $0x1c8] sm:$0xff]  }
0x16f3   :  { %3449 = vmatprep.subr.bf16.mxu0 %v4906_v49  ;;  %v4939_v49 = vld [vmem:[#allocation15 + $0x150] sm:$0xff]  }
0x16f4   :  { %3397 = vmatpush1.bf16.msra.mxu1 %v4901_v9  ;;  %v4940_v9 = vld [vmem:[#allocation15 + $0x1d0] sm:$0xff]  }
0x16f5   :  { %3114 = vadd.xlane.f32.xlu0 %v3103_v5  ;;  %3398 = vmatprep.subr.bf16.mxu1 %v4909_v57  ;;  %v4942_v57 = vld [vmem:[#allocation15 + $0x190] sm:$0xff]  }
0x16f6   :  { %3450 = vmatpush1.bf16.msra.mxu0 %v4904_v50  ;;  %v4941_v50 = vld [vmem:[#allocation15 + $0x110] sm:$0xff]  }
0x16f7   :  { %3451 = vmatprep.subr.bf16.mxu0 %v4912_v59  ;;  %v4943_v59 = vld [vmem:[#allocation15 + $0x158] sm:$0xff]  }
0x16f8   :  { %3399 = vmatpush1.bf16.msra.mxu1 %v4907_v26  ;;  %v4944_v26 = vld [vmem:[#allocation15 + $0x1d8] sm:$0xff]  }
0x16f9   :  { %3400 = vmatprep.subr.bf16.mxu1 %v4915_v13  ;;  %v4947_v13 = vld [vmem:[#allocation15 + $0x160] sm:$0xff]  }
0x16fa   :  { %3452 = vmatpush1.bf16.msra.mxu0 %v4910_v60  ;;  %v4945_v60 = vld [vmem:[#allocation15 + $0x118] sm:$0xff]  }
0x16fb   :  { %3453 = vmatprep.subr.bf16.mxu0 %v4918_v12  ;;  %v4949_v12 = vld [vmem:[#allocation15 + $0x120] sm:$0xff]  }
0x16fc   :  { %3401 = vmatpush1.bf16.msra.mxu1 %v4913_v0  ;;  %v4946_v0 = vld [vmem:[#allocation15 + $0x198] sm:$0xff]  }
0x16fd   :  { %3402 = vmatprep.subr.bf16.mxu1 %v4921_v14  ;;  %v4950_v14 = vld [vmem:[#allocation15 + $0x1a0] sm:$0xff]  }
0x16fe   :  { %3454 = vmatpush1.bf16.msra.mxu0 %v4916_v8  ;;  %v4948_v8 = vld [vmem:[#allocation15 + $0x1e0] sm:$0xff]  }
0x16ff   :  { %3455 = vmatprep.subr.bf16.mxu0 %v4924_v51  ;;  %v4951_v51 = vld [vmem:[#allocation15 + $0x168] sm:$0xff]  }
0x1700   :  { %3403 = vmatpush1.bf16.msra.mxu1 %v4919_v19  ;;  %v4952_v19 = vld [vmem:[#allocation15 + $0x1e8] sm:$0xff]  }
0x1701   :  { %3404 = vmatprep.subr.bf16.mxu1 %v4927_v23  ;;  %v4954_v23 = vld [vmem:[#allocation15 + $0x1a8] sm:$0xff]  }
0x1702   :  { %3456 = vmatpush1.bf16.msra.mxu0 %v4922_v20  ;;  %v4953_v20 = vld [vmem:[#allocation15 + $0x128] sm:$0xff]  }
0x1703   :  { %3457 = vmatprep.subr.bf16.mxu0 %v4930_v24  ;;  %v4955_v24 = vld [vmem:[#allocation15 + $0x170] sm:$0xff]  }
0x1704   :  { %3405 = vmatpush1.bf16.msra.mxu1 %v4925_v28  ;;  %v4956_v28 = vld [vmem:[#allocation15 + $0x1f0] sm:$0xff]  }
0x1706   :  { %3458 = vmatpush1.bf16.msra.mxu0 %v4928_v53  ;;  %v4957_v53 = vld [vmem:[#allocation15 + $0x130] sm:$0xff]  }
0x1707   :  { %4498 = vmatprep.subr.bf16.mxu0 %v4932_v46 }
0x177a   :  { %v3109_v42 = vpop.xlane.xlu0 %3108 }
0x177b   :  { %v3116_v40 = vmul.f32 0.0078125, %v3109_v42 }
0x177c   :  { %v3111_v43 = vpop.xlane.xlu1 %3110 }
0x177d   :  { %v6001_v41 = vsub.f32 %v3100_v4, %v3116_v40  ;;  %v3117_v10 = vmul.f32 0.0078125, %v3111_v43  ;;  %v4270_v40 = vld [vmem:[%s6207_s9 + $0x1] ss:$0 sm:$0xff] }
0x177e   :  { %v3113_v44 = vpop.xlane.xlu0 %3112 }
0x177f   :  { %v6003_v29 = vsub.f32 %v3101_v36, %v3117_v10  ;;  %v3118_v45 = vmul.f32 0.0078125, %v3113_v44  ;;  %v3124_v54 = vmul.f32 %v6001_v41, %v6001_v41 }
0x1781   :  { %v6007_v17 = vsub.f32 %v3102_v38, %v3118_v45  ;;  %3128 = vadd.xlane.f32.xlu0 %v3124_v54  ;;  %v3125_v63 = vmul.f32 %v6003_v29, %v6003_v29 }
0x1782   :  { %v3115_v27 = vpop.xlane.xlu0 %3114 }
0x1783   :  { %v3119_v62 = vmul.f32 0.0078125, %v3115_v27  ;;  %3130 = vadd.xlane.f32.xlu1 %v3125_v63  ;;  %v3126_v56 = vmul.f32 %v6007_v17, %v6007_v17 }
0x1785   :  { %v6013_v58 = vsub.f32 %v3103_v5, %v3119_v62  ;;  %3132 = vadd.xlane.f32.xlu0 %v3126_v56 }
0x1787   :  { %v3127_v21 = vmul.f32 %v6013_v58, %v6013_v58 }
0x1789   :  { %3134 = vadd.xlane.f32.xlu1 %v3127_v21  ;;  %v4931_v21 = vld [vmem:[#allocation15 + $0x140] sm:$0xff]  }
0x178a   :  { %4470 = vmatprep.subr.bf16.mxu1 %v4931_v21 }
0x180e   :  { %v3129_v7 = vpop.xlane.xlu0 %3128 }
0x180f   :  { %v3136_v32 = vmul.f32 0.0078125, %v3129_v7  ;;  %v4958_v7 = vld [vmem:[#allocation15 + $0x1b0] sm:$0xff]  }
0x1810   :  { %v3131_v34 = vpop.xlane.xlu1 %3130 }
0x1811   :  { %v3140_v35 = vadd.f32 1e-12, %v3136_v32  ;;  %v3137_v3 = vmul.f32 0.0078125, %v3131_v34  ;;  %v4959_v32 = vld [vmem:[#allocation15 + $0x178] sm:$0xff]  }
0x1812   :  { %v3133_v4 = vpop.xlane.xlu0 %3132  ;;  %v4960_v34 = vld [vmem:[#allocation15 + $0x1f8] sm:$0xff]  }
0x1813   :  { %5083 = vrsqrt.f32 %v3140_v35  ;;  %v3141_v36 = vadd.f32 1e-12, %v3137_v3  ;;  %v3138_v37 = vmul.f32 0.0078125, %v3133_v4  ;;  %v4961_v35 = vld [vmem:[#allocation15 + $0x138] sm:$0xff]  }
0x1814   :  { %v4962_v3 = vld [vmem:[#allocation15 + $0x1b8] sm:$0xff]  }
0x1815   :  { %5085 = vrsqrt.f32 %v3141_v36  ;;  %v3142_v38 = vadd.f32 1e-12, %v3138_v37  ;;  %v4271_v4 = vld [vmem:[%s6209_s11 + $0x4] sm:$0xf] }
0x1816   :  { %v3135_v5 = vpop.xlane.xlu1 %3134  ;;  %v6045_v36 = vrot.slane %v4271_v4, %v5600_v16  ;;  %v6048_v37 = vrot.slane %v4271_v4, %v5616_v33 }
0x1817   :  { %5087 = vrsqrt.f32 %v3142_v38  ;;  %v3139_v1 = vmul.f32 0.0078125, %v3135_v5 }
0x1819   :  { %v3143_v25 = vadd.f32 1e-12, %v3139_v1  ;;  %v6051_v1 = vrot.slane %v4271_v4, %v5606_v18 }
0x181b   :  { %5089 = vrsqrt.f32 %v3143_v25 }
0x181d   :  { %v5084_v11 = vpop.eup %5083 }
0x181e   :  { %v3148_v6 = vmul.f32 %v5084_v11, %v6001_v41 }
0x181f   :  { %v5086_v52 = vpop.eup %5085 }
0x1820   :  { %v3149_v2 = vmul.f32 %v5086_v52, %v6003_v29  ;;  %v3158_v31 = vmul.f32 %v4269_v39, %v3148_v6  ;;  %v6057_v52 = vrot.slane %v4271_v4, %v1298_v61 }
0x1821   :  { %v5088_v42 = vpop.eup %5087 }
0x1822   :  { %v3159_v43 = vmul.f32 %v4269_v39, %v3149_v2  ;;  %v6025_v10 = vadd.f32 %v4270_v40, %v3158_v31  ;;  %v3150_v45 = vmul.f32 %v5088_v42, %v6007_v17 }
0x1824   :  { %v6027_v44 = vadd.f32 %v4270_v40, %v3159_v43  ;;  %v3160_v29 = vmul.f32 %v4269_v39, %v3150_v45 }
0x1825   :  { %v5090_v54 = vpop.eup %5089 }
0x1826   :  { %v3172_v41 = vpack.c.bf16 %v6027_v44, %v6025_v10  ;;  %v3151_v63 = vmul.f32 %v5090_v54, %v6013_v58  ;;  %v6037_v56 = vadd.f32 %v4270_v40, %v3160_v29  ;;  %v4933_v58 = vld [vmem:[#allocation15 + $0x100] sm:$0xff]  }
0x1828   :  { %3423 = vmatmul.mubr.bf16.vlgmr.msra.gmra.mrb[64].mxu1 %v3172_v41  ;;  %3476 = vmatmul.mubr.bf16.vlgmr.msra.gmra.mrb[64].mxu0 %v3172_v41  ;;  %v3161_v27 = vmul.f32 %v4269_v39, %v3151_v63 }
0x1829   :  { %3432 = vmatprep.mubr.bf16.mxu1 %v5358_v30  ;;  %3485 = vmatprep.mubr.bf16.mxu0 %v5358_v30  ;;  %v4937_v30 = vld [vmem:[#allocation15 + $0x108] sm:$0xff]  }
0x182a   :  { %v6035_v62 = vadd.f32 %v4270_v40, %v3161_v27  ;;  %4471 = vmatpush3.bf16.msra.mxu1 %v4933_v58  ;;  %4499 = vmatpush3.bf16.msra.mxu0 %v4934_v55 }
0x182b   :  { %4472 = vmatprep.subr.bf16.mxu1 %v4935_v48  ;;  %4500 = vmatprep.subr.bf16.mxu0 %v4936_v22 }
0x182c   :  { %v3173_v17 = vpack.c.bf16 %v6035_v62, %v6037_v56 }
0x182e   :  { %4473 = vmatpush3.bf16.msra.mxu1 %v4937_v30  ;;  %4501 = vmatpush3.bf16.msra.mxu0 %v4938_v47 }
0x182f   :  { %4474 = vmatprep.subr.bf16.mxu1 %v4939_v49  ;;  %4502 = vmatprep.subr.bf16.mxu0 %v4940_v9 }
0x1830   :  { %3433 = vmatmul.mubr.bf16.gmra.mrb[68].mxu1 %v3173_v17  ;;  %3486 = vmatmul.mubr.bf16.gmra.mrb[68].mxu0 %v3173_v17 }
0x1832   :  { %4475 = vmatpush3.bf16.msra.mxu1 %v4941_v50  ;;  %4503 = vmatpush3.bf16.msra.mxu0 %v4942_v57 }
0x1833   :  { %4476 = vmatprep.subr.bf16.mxu1 %v4943_v59  ;;  %4504 = vmatprep.subr.bf16.mxu0 %v4944_v26 }
0x1836   :  { %4477 = vmatpush3.bf16.msra.mxu1 %v4945_v60  ;;  %4505 = vmatpush3.bf16.msra.mxu0 %v4946_v0 }
0x1837   :  { %4478 = vmatprep.subr.bf16.mxu1 %v4947_v13  ;;  %4506 = vmatprep.subr.bf16.mxu0 %v4948_v8 }
0x183a   :  { %4479 = vmatpush3.bf16.msra.mxu1 %v4949_v12  ;;  %4507 = vmatpush3.bf16.msra.mxu0 %v4950_v14 }
0x183b   :  { %4480 = vmatprep.subr.bf16.mxu1 %v4951_v51  ;;  %4508 = vmatprep.subr.bf16.mxu0 %v4952_v19 }
0x183e   :  { %4481 = vmatpush3.bf16.msra.mxu1 %v4953_v20  ;;  %4509 = vmatpush3.bf16.msra.mxu0 %v4954_v23 }
0x183f   :  { %4482 = vmatprep.subr.bf16.mxu1 %v4955_v24  ;;  %4510 = vmatprep.subr.bf16.mxu0 %v4956_v28 }
0x1842   :  { %4483 = vmatpush3.bf16.msra.mxu1 %v4957_v53  ;;  %4511 = vmatpush3.bf16.msra.mxu0 %v4958_v7 }
0x1843   :  { %4484 = vmatprep.subr.bf16.mxu1 %v4959_v32  ;;  %4512 = vmatprep.subr.bf16.mxu0 %v4960_v34 }
0x1846   :  { %4485 = vmatpush3.bf16.msra.mxu1 %v4961_v35  ;;  %4513 = vmatpush3.bf16.msra.mxu0 %v4962_v3 }
0x18fb   :  { %v3424_v38 = vpop.f32.mrb[64].mxu1  ;;  %v3477_v5 = vpop.f32.mrb[64].mxu0 }
0x18fc   :  { %v3425_v25 = vadd.f32 %v3424_v38, %v6045_v36  ;;  %v3478_v11 = vadd.f32 %v3477_v5, %v6048_v37  ;;  %v3426_v39 = vpop.f32.mrb[65].mxu1  ;;  %v3479_v6 = vpop.f32.mrb[65].mxu0 }
0x18fd   :  { %v3428_v16 = vpop.f32.mrb[66].mxu1  ;;  %v3481_v2 = vpop.f32.mrb[66].mxu0  ;;  %v6060_v42 = vadd.f32 %v3426_v39, %v6051_v1  ;;  %v6070_v61 = vadd.f32 %v3479_v6, %v6057_v52 }
0x18fe   :  { %v3512_v31 = vmul.f32 0.044715, %v3425_v25  ;;  %v3514_v33 = vmul.f32 0.044715, %v3478_v11  ;;  %v3429_v18 = vadd.f32 %v3428_v16, %v6045_v36  ;;  %v6064_v40 = vadd.f32 %v3481_v2, %v6048_v37  ;;  %v3430_v43 = vpop.f32.mrb[67].mxu1  ;;  %v3483_v45 = vpop.f32.mrb[67].mxu0 }
0x18ff   :  { %v6067_v15 = vadd.f32 %v3430_v43, %v6051_v1  ;;  %v6073_v29 = vadd.f32 %v3483_v45, %v6057_v52  ;;  %v6075_v27 = vmul.f32 0.5, %v3425_v25  ;;  %v3513_v58 = vmul.f32 0.044715, %v6060_v42 }
0x1900   :  { %v3528_v54 = vmul.f32 %v3512_v31, %v3425_v25  ;;  %v3530_v41 = vmul.f32 %v3514_v33, %v3478_v11  ;;  %v3516_v63 = vmul.f32 0.044715, %v3429_v18  ;;  %v3518_v46 = vmul.f32 0.044715, %v6064_v40 }
0x1901   :  { %v3517_v48 = vmul.f32 0.044715, %v6067_v15  ;;  %v6080_v49 = vmul.f32 0.5, %v3478_v11  ;;  %v3515_v26 = vmul.f32 0.044715, %v6070_v61  ;;  %v3529_v24 = vmul.f32 %v3513_v58, %v6060_v42 }
0x1902   :  { %v3544_v17 = vmul.f32 %v3528_v54, %v3425_v25  ;;  %v3546_v21 = vmul.f32 %v3530_v41, %v3478_v11  ;;  %v3532_v55 = vmul.f32 %v3516_v63, %v3429_v18  ;;  %v3534_v50 = vmul.f32 %v3518_v46, %v6064_v40 }
0x1903   :  { %v3434_v22 = vpop.f32.mrb[68].mxu1  ;;  %v3487_v30 = vpop.f32.mrb[68].mxu0  ;;  %v3519_v0 = vmul.f32 0.044715, %v6073_v29  ;;  %v3533_v53 = vmul.f32 %v3517_v48, %v6067_v15  ;;  %v3531_v3 = vmul.f32 %v3515_v26, %v6070_v61  ;;  %v3545_v6 = vmul.f32 %v3529_v24, %v6060_v42 }
0x1904   :  { %v3560_v47 = vadd.f32 %v3544_v17, %v3425_v25  ;;  %v3562_v9 = vadd.f32 %v3546_v21, %v3478_v11  ;;  %v3436_v57 = vpop.f32.mrb[69].mxu1  ;;  %v3489_v59 = vpop.f32.mrb[69].mxu0  ;;  %v3548_v60 = vmul.f32 %v3532_v55, %v3429_v18  ;;  %v6086_v13 = vadd.f32 %v3434_v22, %v6045_v36 }
0x1905   :  { %v3438_v8 = vpop.f32.mrb[70].mxu1  ;;  %v3491_v12 = vpop.f32.mrb[70].mxu0  ;;  %v3550_v19 = vmul.f32 %v3534_v50, %v6064_v40  ;;  %v6092_v7 = vadd.f32 %v3487_v30, %v6048_v37  ;;  %v6097_v35 = vadd.f32 %v3436_v57, %v6051_v1  ;;  %v3535_v38 = vmul.f32 %v3519_v0, %v6073_v29 }
0x1906   :  { %v3576_v14 = vmul.f32 0.7978846, %v3560_v47  ;;  %v3578_v51 = vmul.f32 0.7978846, %v3562_v9  ;;  %v3440_v20 = vpop.f32.mrb[71].mxu1  ;;  %v3493_v23 = vpop.f32.mrb[71].mxu0  ;;  %v3564_v28 = vadd.f32 %v3548_v60, %v3429_v18  ;;  %v6103_v11 = vadd.f32 %v3489_v59, %v6057_v52 }
0x1907   :  { %v3566_v32 = vadd.f32 %v3550_v19, %v6064_v40  ;;  %v3520_v34 = vmul.f32 0.044715, %v6086_v13  ;;  %v3521_v25 = vmul.f32 0.044715, %v6097_v35  ;;  %v6106_v39 = vadd.f32 %v3438_v8, %v6045_v36 }
0x1908   :  { %5091 = vtanh.f32 %v3576_v14  ;;  %v3580_v4 = vmul.f32 0.7978846, %v3564_v28  ;;  %v3549_v16 = vmul.f32 %v3533_v53, %v6067_v15  ;;  %v6111_v2 = vadd.f32 %v3491_v12, %v6048_v37 }
0x1909   :  { %5093 = vtanh.f32 %v3578_v51  ;;  %v3582_v5 = vmul.f32 0.7978846, %v3566_v32  ;;  %v3536_v31 = vmul.f32 %v3520_v34, %v6086_v13  ;;  %v3522_v33 = vmul.f32 0.044715, %v6092_v7 }
0x190a   :  { %5095 = vtanh.f32 %v3580_v4  ;;  %v3523_v43 = vmul.f32 0.044715, %v6103_v11  ;;  %v3500_v45 = vmul.f32 0.5, %v3429_v18  ;;  %v3537_v54 = vmul.f32 %v3521_v25, %v6097_v35 }
0x190b   :  { %5097 = vtanh.f32 %v3582_v5  ;;  %v6118_v36 = vadd.f32 %v3440_v20, %v6051_v1  ;;  %v6121_v41 = vadd.f32 %v3493_v23, %v6057_v52  ;;  %v3547_v63 = vmul.f32 %v3531_v3, %v6070_v61 }
0x190c   :  { %v3551_v37 = vmul.f32 %v3535_v38, %v6073_v29  ;;  %v3524_v17 = vmul.f32 0.044715, %v6106_v39  ;;  %v3526_v21 = vmul.f32 0.044715, %v6111_v2  ;;  %v3539_v46 = vmul.f32 %v3523_v43, %v6103_v11 }
0x190d   :  { %v3525_v18 = vmul.f32 0.044715, %v6118_v36  ;;  %v3527_v58 = vmul.f32 0.044715, %v6121_v41  ;;  %v3561_v1 = vadd.f32 %v3545_v6, %v6060_v42  ;;  %v3502_v55 = vmul.f32 0.5, %v6064_v40 }
0x190e   :  { %v3552_v52 = vmul.f32 %v3536_v31, %v6086_v13  ;;  %v3538_v48 = vmul.f32 %v3522_v33, %v6092_v7  ;;  %v3565_v22 = vadd.f32 %v3549_v16, %v6067_v15  ;;  %v3553_v30 = vmul.f32 %v3537_v54, %v6097_v35 }
0x190f   :  { %v3541_v47 = vmul.f32 %v3525_v18, %v6118_v36  ;;  %v3543_v9 = vmul.f32 %v3527_v58, %v6121_v41  ;;  %v3577_v50 = vmul.f32 0.7978846, %v3561_v1  ;;  %v3540_v59 = vmul.f32 %v3524_v17, %v6106_v39 }
0x1910   :  { %v3581_v26 = vmul.f32 0.7978846, %v3565_v22  ;;  %v3563_v60 = vadd.f32 %v3547_v63, %v6070_v61  ;;  %v3567_v40 = vadd.f32 %v3551_v37, %v6073_v29  ;;  %v3555_v8 = vmul.f32 %v3539_v46, %v6103_v11 }
0x1911   :  { %v3542_v12 = vmul.f32 %v3526_v21, %v6111_v2  ;;  %v3557_v14 = vmul.f32 %v3541_v47, %v6118_v36  ;;  %5099 = vtanh.f32 %v3577_v50  ;;  %v3554_v24 = vmul.f32 %v3538_v48, %v6092_v7 }
0x1912   :  { %v5092_v57 = vpop.eup %5091  ;;  %5101 = vtanh.f32 %v3581_v26  ;;  %v3579_v51 = vmul.f32 0.7978846, %v3563_v60  ;;  %v3583_v19 = vmul.f32 0.7978846, %v3567_v40  ;;  %v3559_v28 = vmul.f32 %v3543_v9, %v6121_v41 }
0x1913   :  { %v5094_v0 = vpop.eup %5093  ;;  %v3608_v20 = vadd.f32 1.0, %v5092_v57  ;;  %v3569_v32 = vadd.f32 %v3553_v30, %v6097_v35  ;;  %v3556_v3 = vmul.f32 %v3540_v59, %v6106_v39  ;;  %v3573_v38 = vadd.f32 %v3557_v14, %v6118_v36 }
0x1914   :  { %v5096_v23 = vpop.eup %5095  ;;  %v3610_v53 = vadd.f32 1.0, %v5094_v0  ;;  %5103 = vtanh.f32 %v3579_v51  ;;  %v3558_v5 = vmul.f32 %v3542_v12, %v6111_v2  ;;  %v3571_v43 = vadd.f32 %v3555_v8, %v6103_v11 }
0x1915   :  { %v5098_v34 = vpop.eup %5097  ;;  %v3612_v4 = vadd.f32 1.0, %v5096_v23  ;;  %5105 = vtanh.f32 %v3583_v19  ;;  %v3585_v6 = vmul.f32 0.7978846, %v3569_v32  ;;  %v3624_v16 = vmul.f32 %v3608_v20, %v6075_v27 }
0x1916   :  { %v3614_v25 = vadd.f32 1.0, %v5098_v34  ;;  %v3589_v33 = vmul.f32 0.7978846, %v3573_v38  ;;  %v3626_v54 = vmul.f32 %v3610_v53, %v6080_v49  ;;  %v3575_v37 = vadd.f32 %v3559_v28, %v6121_v41 }
0x1917   :  { %v3628_v31 = vmul.f32 %v3612_v4, %v3500_v45  ;;  %5107 = vtanh.f32 %v3585_v6  ;;  %v3587_v21 = vmul.f32 0.7978846, %v3571_v43  ;;  %v3568_v58 = vadd.f32 %v3552_v52, %v6086_v13 }
0x1918   :  { %v3630_v63 = vmul.f32 %v3614_v25, %v3502_v55  ;;  %5109 = vtanh.f32 %v3589_v33  ;;  %v3591_v18 = vmul.f32 0.7978846, %v3575_v37  ;;  %v3572_v1 = vadd.f32 %v3556_v3, %v6106_v39 }
0x1919   :  { %v3640_v17 = vpack.c.bf16 %v3628_v31, %v3624_v16  ;;  %5111 = vtanh.f32 %v3587_v21  ;;  %v3570_v27 = vadd.f32 %v3554_v24, %v6092_v7  ;;  %v3584_v48 = vmul.f32 0.7978846, %v3568_v58 }
0x191a   :  { %v3642_v46 = vpack.c.bf16 %v3630_v63, %v3626_v54  ;;  %5113 = vtanh.f32 %v3591_v18  ;;  %v3588_v49 = vmul.f32 0.7978846, %v3572_v1  ;;  %v3574_v55 = vadd.f32 %v3558_v5, %v6111_v2 }
0x191b   :  { %v5100_v45 = vpop.eup %5099  ;;  %v3497_v30 = vmul.f32 0.5, %v6060_v42  ;;  %v3586_v9 = vmul.f32 0.7978846, %v3570_v27  ;;  %v3501_v50 = vmul.f32 0.5, %v6067_v15  ;;  %5115 = vtanh.f32 %v3584_v48 }
0x191c   :  { %v5102_v22 = vpop.eup %5101  ;;  %v3609_v47 = vadd.f32 1.0, %v5100_v45  ;;  %v3590_v52 = vmul.f32 0.7978846, %v3574_v55  ;;  %5117 = vtanh.f32 %v3588_v49  ;;  %v3499_v8 = vmul.f32 0.5, %v6070_v61 }
0x191d   :  { %v3613_v57 = vadd.f32 1.0, %v5102_v22  ;;  %5119 = vtanh.f32 %v3586_v9  ;;  %v3503_v12 = vmul.f32 0.5, %v6073_v29  ;;  %v3505_v24 = vmul.f32 0.5, %v6097_v35 }
0x191e   :  { %v5104_v59 = vpop.eup %5103  ;;  %v3625_v60 = vmul.f32 %v3609_v47, %v3497_v30  ;;  %5121 = vtanh.f32 %v3590_v52  ;;  %v3509_v28 = vmul.f32 0.5, %v6118_v36  ;;  %v3507_v38 = vmul.f32 0.5, %v6103_v11 }
0x191f   :  { %v5106_v26 = vpop.eup %5105  ;;  %v3629_v40 = vmul.f32 %v3613_v57, %v3501_v50  ;;  %v3611_v0 = vadd.f32 1.0, %v5104_v59  ;;  %v3511_v5 = vmul.f32 0.5, %v6121_v41  ;;  %v3504_v54 = vmul.f32 0.5, %v6086_v13 }
0x1920   :  { %v3615_v14 = vadd.f32 1.0, %v5106_v26  ;;  %v3508_v63 = vmul.f32 0.5, %v6106_v39  ;;  %v3506_v11 = vmul.f32 0.5, %v6092_v7  ;;  %v4305_v39 = vld [vmem:[%s6211_s13 + $0x1] ss:$0 sm:$0xff] }
0x1921   :  { %v5108_v42 = vpop.eup %5107  ;;  %v3641_v51 = vpack.c.bf16 %v3629_v40, %v3625_v60  ;;  %v3627_v15 = vmul.f32 %v3611_v0, %v3499_v8 }
0x1922   :  { %v5110_v19 = vpop.eup %5109  ;;  %v3631_v20 = vmul.f32 %v3615_v14, %v3503_v12  ;;  %v3617_v23 = vadd.f32 1.0, %v5108_v42 }
0x1923   :  { %3945 = vmatprep.mubr.bf16.mxu1 %v3641_v51  ;;  %v3621_v53 = vadd.f32 1.0, %v5110_v19  ;;  %v5112_v32 = vpop.eup %5111 }
0x1924   :  { %v3643_v34 = vpack.c.bf16 %v3631_v20, %v3627_v15  ;;  %3946 = vmatmul.mubr.bf16.vlgmr.msra.gmra.mrb[72].mxu1 %v3640_v17  ;;  %v5114_v61 = vpop.eup %5113  ;;  %v3633_v3 = vmul.f32 %v3617_v23, %v3505_v24  ;;  %v3619_v4 = vadd.f32 1.0, %v5112_v32 }
0x1925   :  { %v3637_v29 = vmul.f32 %v3621_v53, %v3509_v28  ;;  %v3623_v25 = vadd.f32 1.0, %v5114_v61  ;;  %v5116_v6 = vpop.eup %5115 }
0x1926   :  { %3994 = vmatprep.mubr.bf16.mxu0 %v3643_v34  ;;  %v5118_v35 = vpop.eup %5117  ;;  %v3635_v31 = vmul.f32 %v3619_v4, %v3507_v38  ;;  %v3616_v33 = vadd.f32 1.0, %v5116_v6 }
0x1927   :  { %3995 = vmatmul.mubr.bf16.vlgmr.msra.gmra.mrb[72].mxu0 %v3642_v46  ;;  %v3645_v16 = vpack.c.bf16 %v3637_v29, %v3633_v3  ;;  %v3639_v36 = vmul.f32 %v3623_v25, %v3511_v5  ;;  %v5120_v43 = vpop.eup %5119  ;;  %v3620_v37 = vadd.f32 1.0, %v5118_v35  ;;  %v3510_v46 = vmul.f32 0.5, %v6111_v2 }
0x1928   :  { %v5122_v17 = vpop.eup %5121  ;;  %v3618_v41 = vadd.f32 1.0, %v5120_v43  ;;  %v3632_v18 = vmul.f32 %v3616_v33, %v3504_v54 }
0x1929   :  { %3953 = vmatprep.mubr.bf16.mxu1 %v3645_v16  ;;  %v3647_v21 = vpack.c.bf16 %v3639_v36, %v3635_v31  ;;  %v3636_v58 = vmul.f32 %v3620_v37, %v3508_v63  ;;  %v3622_v1 = vadd.f32 1.0, %v5122_v17 }
0x192a   :  { %v3634_v45 = vmul.f32 %v3618_v41, %v3506_v11 }
0x192b   :  { %4002 = vmatprep.mubr.bf16.mxu0 %v3647_v21  ;;  %v3644_v27 = vpack.c.bf16 %v3636_v58, %v3632_v18  ;;  %v3638_v48 = vmul.f32 %v3622_v1, %v3510_v46 }
0x192d   :  { %3954 = vmatmul.mubr.bf16.gmra.mrb[76].mxu1 %v3644_v27  ;;  %v3646_v49 = vpack.c.bf16 %v3638_v48, %v3634_v45 }
0x192f   :  { %4003 = vmatmul.mubr.bf16.gmra.mrb[76].mxu0 %v3646_v49 }
0x19f7   :  { %v4486_v13 = vpop.f32.mrb[72].mxu1 }
0x19f8   :  { %v4487_v55 = vpop.f32.mrb[73].mxu1 }
0x19f9   :  { %v4488_v7 = vadd.f32 %v4487_v55, %v4486_v13  ;;  %v4489_v22 = vpop.f32.mrb[74].mxu1  ;;  %v4340_v55 = vld [vmem:[%s6212_s14 + $0x1] ss:$0 sm:$0xff]  ;;  %s5361_s14 = smov [#allocation17]  }
0x19fa   :  { %v4514_v30 = vpop.f32.mrb[72].mxu0  ;;  %v4490_v47 = vpop.f32.mrb[75].mxu1  ;;  %s4092_s26 = sshll.u32 %s5361_s14, 4  ;;  %s4093_s26 = int_to_ptr.vmem [resolvable:$true] %s4092_s26 }
0x19fb   :  { %v3948_v9 = vadd.f32 %v4488_v7, %v4305_v39  ;;  %v4515_v2 = vpop.f32.mrb[73].mxu0  ;;  %v4491_v50 = vadd.f32 %v4490_v47, %v4489_v22  ;;  %p5312_p9 = scmp.lt.s32.totalorder %s4093_s26, %s4093_s26 }
0x19fc   :  { %v4516_v57 = vadd.f32 %v4515_v2, %v4514_v30  ;;  %v4517_v52 = vpop.f32.mrb[74].mxu0  ;;  %v4341_v30 = vld [vmem:[%s6213_s15 + $0x1] ss:$0 sm:$0xff]  ;;  %s5307_s15 = scalar_lea.vmem %s4093_s26, 512 }
0x19fd   :  { %v3951_v59 = vadd.f32 %v4491_v50, %v4305_v39  ;;  %v4518_v26 = vpop.f32.mrb[75].mxu0  ;;  %p5308_p8 = scmp.ne.s32.totalorder %s4093_s26, %s5307_s15  ;;  %p5313_p10 = scmp.lt.s32.totalorder %s5307_s15, %s5307_s15 }
0x19fe   :  { %v3997_v60 = vadd.f32 %v4516_v57, %v3948_v9  ;;  %v4519_v40 = vadd.f32 %v4518_v26, %v4517_v52 }
0x19ff   :  { %p5314_p11 = por %p5313_p10, %p5312_p9 }
0x1a00   :  { %v4000_v0 = vadd.f32 %v4519_v40, %v3951_v59  ;;  %v4011_v8 = vadd.f32 %v3997_v60, %v6025_v10  ;;  %v4492_v12 = vpop.f32.mrb[76].mxu1 }
0x1a01   :  { %v4493_v42 = vpop.f32.mrb[77].mxu1  ;;  %p5315_p12 = pnand %p5314_p11, %p5308_p8 }
0x1a02   :  { %4019 = vadd.xlane.f32.xlu0 %v4011_v8  ;;  %v4012_v14 = vadd.f32 %v4000_v0, %v6027_v44  ;;  %v4520_v51 = vpop.f32.mrb[76].mxu0  ;;  %v4494_v19 = vadd.f32 %v4493_v42, %v4492_v12  ;;  %v4495_v15 = vpop.f32.mrb[78].mxu1 }
0x1a03   :  { %v4521_v20 = vpop.f32.mrb[77].mxu0  ;;  %v4496_v23 = vpop.f32.mrb[79].mxu1 }
0x1a04   :  { %4021 = vadd.xlane.f32.xlu1 %v4012_v14  ;;  %v3956_v24 = vadd.f32 %v4494_v19, %v4305_v39  ;;  %v4522_v28 = vadd.f32 %v4521_v20, %v4520_v51  ;;  %v4523_v53 = vpop.f32.mrb[78].mxu0  ;;  %v4497_v32 = vadd.f32 %v4496_v23, %v4495_v15 }
0x1a05   :  { %v4524_v34 = vpop.f32.mrb[79].mxu0 }
0x1a06   :  { %v4005_v61 = vadd.f32 %v4522_v28, %v3956_v24  ;;  %v3959_v3 = vadd.f32 %v4497_v32, %v4305_v39  ;;  %v4525_v29 = vadd.f32 %v4524_v34, %v4523_v53 }
0x1a08   :  { %v4008_v10 = vadd.f32 %v4525_v29, %v3959_v3  ;;  %v4013_v4 = vadd.f32 %v4005_v61, %v6037_v56 }
0x1a0a   :  { %4023 = vadd.xlane.f32.xlu0 %v4013_v4  ;;  %v4014_v44 = vadd.f32 %v4008_v10, %v6035_v62 }
0x1a0c   :  { %4025 = vadd.xlane.f32.xlu1 %v4014_v44 }
0x1a8f   :  { %v4020_v38 = vpop.xlane.xlu0 %4019 }
0x1a90   :  { %v4027_v5 = vmul.f32 0.0078125, %v4020_v38 }
0x1a91   :  { %v4022_v25 = vpop.xlane.xlu1 %4021 }
0x1a92   :  { %v4031_v6 = vsub.f32 %v4011_v8, %v4027_v5  ;;  %v4028_v16 = vmul.f32 0.0078125, %v4022_v25 }
0x1a94   :  { %v4032_v35 = vsub.f32 %v4012_v14, %v4028_v16  ;;  %v4035_v31 = vmul.f32 %v4031_v6, %v4031_v6 }
0x1a96   :  { %4039 = vadd.xlane.f32.xlu0 %v4035_v31  ;;  %v4036_v36 = vmul.f32 %v4032_v35, %v4032_v35 }
0x1a97   :  { %v4024_v33 = vpop.xlane.xlu0 %4023 }
0x1a98   :  { %4041 = vadd.xlane.f32.xlu1 %v4036_v36  ;;  %v4029_v43 = vmul.f32 0.0078125, %v4024_v33 }
0x1a99   :  { %v4026_v54 = vpop.xlane.xlu1 %4025 }
0x1a9a   :  { %v4033_v63 = vsub.f32 %v4013_v4, %v4029_v43  ;;  %v4030_v37 = vmul.f32 0.0078125, %v4026_v54 }
0x1a9c   :  { %v4034_v56 = vsub.f32 %v4014_v44, %v4030_v37  ;;  %v4037_v17 = vmul.f32 %v4033_v63, %v4033_v63 }
0x1a9e   :  { %4043 = vadd.xlane.f32.xlu0 %v4037_v17  ;;  %v4038_v62 = vmul.f32 %v4034_v56, %v4034_v56 }
0x1aa0   :  { %4045 = vadd.xlane.f32.xlu1 %v4038_v62 }
0x1b23   :  { %v4040_v21 = vpop.xlane.xlu0 %4039 }
0x1b24   :  { %v4047_v11 = vmul.f32 0.0078125, %v4040_v21 }
0x1b25   :  { %v4042_v41 = vpop.xlane.xlu1 %4041 }
0x1b26   :  { %v4051_v18 = vadd.f32 1e-12, %v4047_v11  ;;  %v4048_v58 = vmul.f32 0.0078125, %v4042_v41 }
0x1b28   :  { %5123 = vrsqrt.f32 %v4051_v18  ;;  %v4052_v46 = vadd.f32 1e-12, %v4048_v58 }
0x1b2a   :  { %5125 = vrsqrt.f32 %v4052_v46 }
0x1b2b   :  { %v4044_v1 = vpop.xlane.xlu0 %4043 }
0x1b2c   :  { %v4049_v27 = vmul.f32 0.0078125, %v4044_v1 }
0x1b2d   :  { %v4046_v45 = vpop.xlane.xlu1 %4045 }
0x1b2e   :  { %v4053_v48 = vadd.f32 1e-12, %v4049_v27  ;;  %v4050_v49 = vmul.f32 0.0078125, %v4046_v45 }
0x1b30   :  { %5127 = vrsqrt.f32 %v4053_v48  ;;  %v4054_v39 = vadd.f32 1e-12, %v4050_v49 }
0x1b32   :  { %v5124_v13 = vpop.eup %5123  ;;  %5129 = vrsqrt.f32 %v4054_v39 }
0x1b33   :  { %v4059_v7 = vmul.f32 %v5124_v13, %v4031_v6 }
0x1b34   :  { %v5126_v22 = vpop.eup %5125 }
0x1b35   :  { %v4060_v47 = vmul.f32 %v5126_v22, %v4032_v35  ;;  %v4069_v9 = vmul.f32 %v4340_v55, %v4059_v7 }
0x1b37   :  { %v4070_v2 = vmul.f32 %v4340_v55, %v4060_v47  ;;  %v4079_v50 = vadd.f32 %v4341_v30, %v4069_v9 }
0x1b39   :  { %v4080_v57 = vadd.f32 %v4341_v30, %v4070_v2  ;;  %4083 = vst [vmem:[#allocation17] sm:$0xff] %v4079_v50 }
0x1b3a   :  { %v5128_v52 = vpop.eup %5127 }
0x1b3b   :  { %4084 = vst [vmem:[#allocation17 + $0x8] sm:$0xff] %v4080_v57  ;;  %v4061_v59 = vmul.f32 %v5128_v52, %v4033_v63 }
0x1b3c   :  { %v5130_v26 = vpop.eup %5129 }
0x1b3d   :  { %v4062_v60 = vmul.f32 %v5130_v26, %v4034_v56  ;;  %v4071_v40 = vmul.f32 %v4340_v55, %v4061_v59 }
0x1b3f   :  { %v4072_v0 = vmul.f32 %v4340_v55, %v4062_v60  ;;  %v4081_v8 = vadd.f32 %v4341_v30, %v4071_v40 }
0x1b41   :  { %v4082_v12 = vadd.f32 %v4341_v30, %v4072_v0  ;;  %4085 = vst [vmem:[#allocation17 + $0x10] sm:$0xff] %v4081_v8 }
0x1b43   :  { %4086 = vst [vmem:[#allocation17 + $0x18] sm:$0xff] %v4082_v12 }
0x1b44   :  { %5318 = shalt.err (!%p5315_p12)
}
0x1b45   :  { %s6223_s2 = sld [smem:[#allocation25_spill]] }
0x1b4b   :  { %s5319_s1 = scalar_lea.hbm %s6223_s2, 512 }
0x1b4c   :  { %p5320_p13 = scmp.ne.s32.totalorder %s6223_s2, %s5319_s1  ;;  %p5323_p0 = scmp.lt.u32.totalorder %s5319_s1, %s6223_s2 }
0x1b4e   :  { %p5325_p1 = pnand %p5323_p0, %p5320_p13 }
0x1b50   :  { %5328 = shalt.err (!%p5325_p1)
}
0x1b51   :  { %4098 = dma.vmem_to_hbm [thread:$0]  %s4093_s26, 512, %s6223_s2, [#allocation5], %s5349_s6, %s5349_s6, %s5350_s24  }
0x1b52   :  { %5339 = dma.done.wait [#allocation5], 512  }
0x1b53   :  { %5340 = vsyncadd [#allocation5], 4294966784 }
0x1b54   :  { %4102 = vsyncpa [#allocation4], 1 }
0x1b55   :  { %4103 = vsyncpa [#allocation7], 1 }
0x1b56   :  { %4104 = vsyncpa [#allocation10], 1 }
0x1b57   :  { %4105 = vsyncpa [#allocation13], 1 }
0x1b58   :  { %4106 = vsyncpa [#allocation16], 1 }
0x1b59   :  { %4107 = vsyncpa [#allocation5], 1 }

</bundles_post_ra>
